<compile_context>
chip_gen: v6e
topology: v6e:2x2x1
jax: 0.10.0
libtpu: 0.0.40
codegen_flags: <defaults>
</compile_context>

<pallas_src>
import jax
import jax.numpy as jnp
from jax import lax
from jax.experimental import pallas as pl
from jax.experimental.pallas import tpu as pltpu


# ---------------------------------------------------------------------------
# Fused Pallas kernel (all LSTM layers + directions + final FC)
# ---------------------------------------------------------------------------

def make_fused_kernel(T, B, H, n_layers, num_dirs):
    """Build the fused kernel for static (T, B, H, n_layers, num_dirs).

    Kernel ref layout:
      x_ref:                 [T*B, D_in0]   bf16 (time-major, flattened)
      per (layer, dir):      wih [D_in,4H] bf16, whh [H,4H] bf16, b [1,4H] f32
      fcw_ref:               [dirs*H, O]    bf16
      fcb_ref:               [1, O]         f32
      out_ref:               [B, O]         f32
      scratch: two [T*B, dirs*H] f32 VMEM buffers (ping-pong layer outputs)
    """
    n_w = 3 * n_layers * num_dirs

    def kernel(*refs):
        x_ref = refs[0]
        w = refs[1:1 + n_w]
        fcw_ref = refs[1 + n_w]
        fcb_ref = refs[2 + n_w]
        out_ref = refs[3 + n_w]
        seq_bufs = refs[4 + n_w:]

        h = [jnp.zeros((B, H), jnp.float32) for _ in range(num_dirs)]

        for layer in range(n_layers):
            # Layer input as bf16 [T*B, D_in] (first layer: kernel input,
            # later layers: previous layer's VMEM scratch output).
            if layer == 0:
                x_bf = x_ref[...]
            else:
                x_bf = seq_bufs[(layer - 1) % 2][...].astype(jnp.bfloat16)
            out_buf = seq_bufs[layer % 2]
            last = (layer == n_layers - 1)

            # Hoisted, time-parallel input projection + bias (one GEMM / dir).
            gates_x = []
            whh = []
            for d in range(num_dirs):
                base = 3 * (layer * num_dirs + d)
                wih_ref, whh_ref, b_ref = w[base], w[base + 1], w[base + 2]
                gx = jnp.dot(x_bf, wih_ref[...],
                             preferred_element_type=jnp.float32) + b_ref[...]
                gates_x.append(gx)                       # [T*B, 4H] f32
                whh.append(whh_ref[...])                 # [H, 4H] bf16

            h = [jnp.zeros((B, H), jnp.float32) for _ in range(num_dirs)]
            c = [jnp.zeros((B, H), jnp.float32) for _ in range(num_dirs)]

            # Fully unrolled recurrence; both directions interleaved per step.
            for s in range(T):
                for d in range(num_dirs):
                    t = s if d == 0 else T - 1 - s       # bwd dir: reversed time
                    g = gates_x[d][t * B:(t + 1) * B, :] + jnp.dot(
                        h[d].astype(jnp.bfloat16), whh[d],
                        preferred_element_type=jnp.float32)
                    i_g = jax.nn.sigmoid(g[:, 0:H])
                    f_g = jax.nn.sigmoid(g[:, H:2 * H])
                    g_g = jnp.tanh(g[:, 2 * H:3 * H])
                    o_g = jax.nn.sigmoid(g[:, 3 * H:4 * H])
                    c[d] = f_g * c[d] + i_g * g_g
                    h[d] = o_g * jnp.tanh(c[d])
                    if not last:
                        # Store in original time order -> implicit fwd/bwd concat.
                        out_buf[t * B:(t + 1) * B, d * H:(d + 1) * H] = h[d]

        # Final hidden = cat(hidden[-2], hidden[-1]) (fwd, bwd of last layer).
        hidden = jnp.concatenate(h, axis=-1) if num_dirs > 1 else h[0]
        out_ref[...] = (jnp.dot(hidden.astype(jnp.bfloat16), fcw_ref[...],
                                preferred_element_type=jnp.float32)
                        + fcb_ref[...])

    return kernel


_VMEM = pl.BlockSpec(memory_space=pltpu.MemorySpace.VMEM)


def rnn_field_classifier_forward(params, text, text_lengths, tag):
    """Matches RNNFieldClassifer.forward in eval mode (dropout = identity).

    text, tag: int32 [T, B].  text_lengths is unused by the reference forward
    (it calls self.rnn(embed) directly, without packing)."""
    del text_lengths
    emb = params["embedding"][text]            # [T, B, E]
    tag_emb = params["tag_embedding"][tag]     # [T, B, 50]
    x = jnp.concatenate([emb, tag_emb], axis=-1).astype(jnp.float32)

    T, B, D0 = x.shape
    n_layers = params["n_layers"]
    num_dirs = 2 if params["bidirectional"] else 1
    H = params["hidden_dim"]
    O = params["fc_w_t"].shape[1]

    x_flat = x.reshape(T * B, D0).astype(jnp.bfloat16)

    weight_args = []
    for layer in range(n_layers):
        for d in range(num_dirs):
            wih_t, whh_t, b = params["lstm"][(layer, d)]
            weight_args += [wih_t.astype(jnp.bfloat16),
                            whh_t.astype(jnp.bfloat16),
                            b.astype(jnp.float32)]
    fcw = params["fc_w_t"].astype(jnp.bfloat16)
    fcb = params["fc_b"].astype(jnp.float32)

    kernel = make_fused_kernel(T, B, H, n_layers, num_dirs)
    n_in = 1 + len(weight_args) + 2

    return pl.pallas_call(
        kernel,
        out_shape=jax.ShapeDtypeStruct((B, O), jnp.float32),
        in_specs=[_VMEM] * n_in,
        out_specs=_VMEM,
        scratch_shapes=[pltpu.VMEM((T * B, num_dirs * H), jnp.float32),
                        pltpu.VMEM((T * B, num_dirs * H), jnp.float32)],
    )(x_flat, *weight_args, fcw, fcb)


# ---------------------------------------------------------------------------
# Pure-JAX f32 reference (module semantics) for correctness check
# ---------------------------------------------------------------------------

def _ref_lstm_layer(x, w_ih_t, w_hh_t, b):
    B = x.shape[1]
    H = w_hh_t.shape[0]

    def step(carry, x_t):
        h, c = carry
        gates = x_t @ w_ih_t + h @ w_hh_t + b
        i = jax.nn.sigmoid(gates[:, :H])
        f = jax.nn.sigmoid(gates[:, H:2 * H])
        g = jnp.tanh(gates[:, 2 * H:3 * H])
        o = jax.nn.sigmoid(gates[:, 3 * H:])
        c = f * c + i * g
        h = o * jnp.tanh(c)
        return (h, c), h

    (h, c), hs = lax.scan(step, (jnp.zeros((B, H)), jnp.zeros((B, H))), x)
    return hs, h, c


def ref_forward(params, text, text_lengths, tag):
    del text_lengths
    emb = params["embedding"][text]
    tag_emb = params["tag_embedding"][tag]
    x = jnp.concatenate([emb, tag_emb], axis=-1).astype(jnp.float32)
    num_dirs = 2 if params["bidirectional"] else 1
    h_finals = []
    layer_in = x
    for layer in range(params["n_layers"]):
        outs = []
        for d in range(num_dirs):
            w_ih_t, w_hh_t, b = params["lstm"][(layer, d)]
            xi = layer_in if d == 0 else layer_in[::-1]
            hs, h, _ = _ref_lstm_layer(xi, w_ih_t, w_hh_t, b)
            if d == 1:
                hs = hs[::-1]
            outs.append(hs)
            h_finals.append(h)
        layer_in = jnp.concatenate(outs, axis=-1) if num_dirs == 2 else outs[0]
    if params["bidirectional"]:
        hidden = jnp.concatenate([h_finals[-2], h_finals[-1]], axis=1)
    else:
        hidden = h_finals[-1]
    return hidden @ params["fc_w_t"] + params["fc_b"]


# ---------------------------------------------------------------------------
# Deterministic parameter init (shapes from the module's __init__)
# ---------------------------------------------------------------------------

def init_params(key, vocab_size, embedding_dim, hidden_dim, output_dim,
                n_layers, bidirectional, pad_idx, tag_vocab_size, tag_pad_idx):
    TAG_DIM = 50
    num_dirs = 2 if bidirectional else 1
    keys = iter(jax.random.split(key, 64))

    def nrm(shape, scale=0.1):
        return scale * jax.random.normal(next(keys), shape, dtype=jnp.float32)

    embedding = nrm((vocab_size, embedding_dim)).at[pad_idx].set(0.0)
    tag_embedding = nrm((tag_vocab_size, TAG_DIM)).at[tag_pad_idx].set(0.0)

    lstm = {}
    for layer in range(n_layers):
        d_in = (embedding_dim + TAG_DIM) if layer == 0 else hidden_dim * num_dirs
        for d in range(num_dirs):
            w_ih = nrm((4 * hidden_dim, d_in))        # PyTorch weight_ih_l{k}[_reverse]
            w_hh = nrm((4 * hidden_dim, hidden_dim))  # PyTorch weight_hh_l{k}[_reverse]
            b_ih = nrm((4 * hidden_dim,))
            b_hh = nrm((4 * hidden_dim,))
            lstm[(layer, d)] = (w_ih.T, w_hh.T, (b_ih + b_hh)[None, :])

    fc_in = hidden_dim * num_dirs
    fc_w = nrm((output_dim, fc_in))                   # PyTorch Linear: [out, in]
    fc_b = nrm((output_dim,))

    return {
        "embedding": embedding,
        "tag_embedding": tag_embedding,
        "lstm": lstm,
        "fc_w_t": fc_w.T,
        "fc_b": fc_b[None, :],
        "n_layers": n_layers,
        "bidirectional": bidirectional,
        "hidden_dim": hidden_dim,
    }


# ---------------------------------------------------------------------------
# Main
# ---------------------------------------------------------------------------

if __name__ == "__main__":
    VOCAB, EMB, HID, OUT = 100, 32, 32, 4
    N_LAYERS, BIDIR = 2, True
    PAD_IDX = 0
    TAG_VOCAB, TAG_PAD = 12, 0
    T, B = 8, 2

    key = jax.random.PRNGKey(0)
    kp, kt, kg, kl = jax.random.split(key, 4)

    params = init_params(kp, VOCAB, EMB, HID, OUT, N_LAYERS, BIDIR,
                         PAD_IDX, TAG_VOCAB, TAG_PAD)

    text = jax.random.randint(kt, (T, B), 0, VOCAB, dtype=jnp.int32)
    tag = jax.random.randint(kg, (T, B), 0, TAG_VOCAB, dtype=jnp.int32)
    text_lengths = jnp.full((B,), T, dtype=jnp.int32)  # unused (no packing)

    out = rnn_field_classifier_forward(params, text, text_lengths, tag)
    out = jax.block_until_ready(out)

    ref = ref_forward(params, text, text_lengths, tag)
    assert out.shape == (B, OUT), out.shape
    # bf16 matmul operands with f32 accumulation -> slightly wider tolerance.
    assert jnp.allclose(out, ref, atol=2e-2, rtol=2e-2), (out, ref)

    print("KERNEL_OK")
</pallas_src>

<mosaic_0001>
module attributes {stable_mosaic.version = 11 : i64} {
  func.func @kernel(%arg0: memref<16x82xbf16, #tpu.memory_space<vmem>>, %arg1: memref<82x128xbf16, #tpu.memory_space<vmem>>, %arg2: memref<32x128xbf16, #tpu.memory_space<vmem>>, %arg3: memref<1x128xf32, #tpu.memory_space<vmem>>, %arg4: memref<82x128xbf16, #tpu.memory_space<vmem>>, %arg5: memref<32x128xbf16, #tpu.memory_space<vmem>>, %arg6: memref<1x128xf32, #tpu.memory_space<vmem>>, %arg7: memref<64x128xbf16, #tpu.memory_space<vmem>>, %arg8: memref<32x128xbf16, #tpu.memory_space<vmem>>, %arg9: memref<1x128xf32, #tpu.memory_space<vmem>>, %arg10: memref<64x128xbf16, #tpu.memory_space<vmem>>, %arg11: memref<32x128xbf16, #tpu.memory_space<vmem>>, %arg12: memref<1x128xf32, #tpu.memory_space<vmem>>, %arg13: memref<64x4xbf16, #tpu.memory_space<vmem>>, %arg14: memref<1x4xf32, #tpu.memory_space<vmem>>, %arg15: memref<2x4xf32, #tpu.memory_space<vmem>>, %arg16: memref<16x64xf32, #tpu.memory_space<vmem>>, %arg17: memref<16x64xf32, #tpu.memory_space<vmem>>) attributes {dimension_semantics = [], scalar_prefetch = 0 : i64, scratch_operands = 2 : i64, tpu.core_type = #tpu.core_type<tc>} {
    %c0 = arith.constant 0 : index
    %c0_0 = arith.constant 0 : index
    %0 = vector.load %arg0[%c0, %c0_0] : memref<16x82xbf16, #tpu.memory_space<vmem>>, vector<16x82xbf16>
    %c0_1 = arith.constant 0 : index
    %c0_2 = arith.constant 0 : index
    %1 = vector.load %arg1[%c0_1, %c0_2] : memref<82x128xbf16, #tpu.memory_space<vmem>>, vector<82x128xbf16>
    %cst = arith.constant dense<0.000000e+00> : vector<16x128xf32>
    %2 = tpu.matmul %0, %1, %cst {dimension_numbers = #tpu.dot_dimension_numbers<[1], [0], [0], [1], [0, 0, 1, 1], [], []>} : vector<16x82xbf16>, vector<82x128xbf16>, vector<16x128xf32> -> vector<16x128xf32>
    %c0_3 = arith.constant 0 : index
    %c0_4 = arith.constant 0 : index
    %3 = vector.load %arg3[%c0_3, %c0_4] : memref<1x128xf32, #tpu.memory_space<vmem>>, vector<1x128xf32>
    %4 = vector.broadcast %3 : vector<1x128xf32> to vector<16x128xf32>
    %5 = arith.addf %2, %4 : vector<16x128xf32>
    %c0_5 = arith.constant 0 : index
    %c0_6 = arith.constant 0 : index
    %6 = vector.load %arg2[%c0_5, %c0_6] : memref<32x128xbf16, #tpu.memory_space<vmem>>, vector<32x128xbf16>
    %c0_7 = arith.constant 0 : index
    %c0_8 = arith.constant 0 : index
    %7 = vector.load %arg4[%c0_7, %c0_8] : memref<82x128xbf16, #tpu.memory_space<vmem>>, vector<82x128xbf16>
    %cst_9 = arith.constant dense<0.000000e+00> : vector<16x128xf32>
    %8 = tpu.matmul %0, %7, %cst_9 {dimension_numbers = #tpu.dot_dimension_numbers<[1], [0], [0], [1], [0, 0, 1, 1], [], []>} : vector<16x82xbf16>, vector<82x128xbf16>, vector<16x128xf32> -> vector<16x128xf32>
    %c0_10 = arith.constant 0 : index
    %c0_11 = arith.constant 0 : index
    %9 = vector.load %arg6[%c0_10, %c0_11] : memref<1x128xf32, #tpu.memory_space<vmem>>, vector<1x128xf32>
    %10 = vector.broadcast %9 : vector<1x128xf32> to vector<16x128xf32>
    %11 = arith.addf %8, %10 : vector<16x128xf32>
    %c0_12 = arith.constant 0 : index
    %c0_13 = arith.constant 0 : index
    %12 = vector.load %arg5[%c0_12, %c0_13] : memref<32x128xbf16, #tpu.memory_space<vmem>>, vector<32x128xbf16>
    %cst_14 = arith.constant 0.000000e+00 : f32
    %13 = vector.broadcast %cst_14 : f32 to vector<2x32xf32>
    %cst_15 = arith.constant 0.000000e+00 : f32
    %14 = vector.broadcast %cst_15 : f32 to vector<2x32xf32>
    %cst_16 = arith.constant 0.000000e+00 : f32
    %15 = vector.broadcast %cst_16 : f32 to vector<2x32xf32>
    %cst_17 = arith.constant 0.000000e+00 : f32
    %16 = vector.broadcast %cst_17 : f32 to vector<2x32xf32>
    %17 = vector.extract_strided_slice %5 {offsets = [0, 0], sizes = [2, 128], strides = [1, 1]} : vector<16x128xf32> to vector<2x128xf32>
    %18 = arith.truncf %13 : vector<2x32xf32> to vector<2x32xbf16>
    %cst_18 = arith.constant dense<0.000000e+00> : vector<2x128xf32>
    %19 = tpu.matmul %18, %6, %cst_18 {dimension_numbers = #tpu.dot_dimension_numbers<[1], [0], [0], [1], [0, 0, 1, 1], [], []>} : vector<2x32xbf16>, vector<32x128xbf16>, vector<2x128xf32> -> vector<2x128xf32>
    %20 = arith.addf %17, %19 : vector<2x128xf32>
    %21 = vector.extract_strided_slice %20 {offsets = [0, 0], sizes = [2, 32], strides = [1, 1]} : vector<2x128xf32> to vector<2x32xf32>
    %22 = arith.negf %21 : vector<2x32xf32>
    %23 = math.exp %22 : vector<2x32xf32>
    %cst_19 = arith.constant 1.000000e+00 : f32
    %24 = vector.broadcast %cst_19 : f32 to vector<2x32xf32>
    %25 = arith.addf %24, %23 : vector<2x32xf32>
    %26 = arith.divf %24, %25 : vector<2x32xf32>
    %27 = vector.extract_strided_slice %20 {offsets = [0, 32], sizes = [2, 32], strides = [1, 1]} : vector<2x128xf32> to vector<2x32xf32>
    %28 = arith.negf %27 : vector<2x32xf32>
    %29 = math.exp %28 : vector<2x32xf32>
    %cst_20 = arith.constant 1.000000e+00 : f32
    %30 = vector.broadcast %cst_20 : f32 to vector<2x32xf32>
    %31 = arith.addf %30, %29 : vector<2x32xf32>
    %32 = arith.divf %30, %31 : vector<2x32xf32>
    %33 = vector.extract_strided_slice %20 {offsets = [0, 64], sizes = [2, 32], strides = [1, 1]} : vector<2x128xf32> to vector<2x32xf32>
    %34 = math.tanh %33 : vector<2x32xf32>
    %35 = vector.extract_strided_slice %20 {offsets = [0, 96], sizes = [2, 32], strides = [1, 1]} : vector<2x128xf32> to vector<2x32xf32>
    %36 = arith.negf %35 : vector<2x32xf32>
    %37 = math.exp %36 : vector<2x32xf32>
    %cst_21 = arith.constant 1.000000e+00 : f32
    %38 = vector.broadcast %cst_21 : f32 to vector<2x32xf32>
    %39 = arith.addf %38, %37 : vector<2x32xf32>
    %40 = arith.divf %38, %39 : vector<2x32xf32>
    %41 = arith.mulf %32, %15 : vector<2x32xf32>
    %42 = arith.mulf %26, %34 : vector<2x32xf32>
    %43 = arith.addf %41, %42 : vector<2x32xf32>
    %44 = math.tanh %43 : vector<2x32xf32>
    %45 = arith.mulf %40, %44 : vector<2x32xf32>
    %c0_22 = arith.constant 0 : index
    %c0_23 = arith.constant 0 : index
    %46 = vector.load %arg16[%c0_22, %c0_23] : memref<16x64xf32, #tpu.memory_space<vmem>>, vector<2x32xf32>
    tpu.vector_store %arg16[%c0_22, %c0_23], %45 {strides = array<i32>} : memref<16x64xf32, #tpu.memory_space<vmem>>, vector<2x32xf32>,
    %47 = vector.extract_strided_slice %11 {offsets = [14, 0], sizes = [2, 128], strides = [1, 1]} : vector<16x128xf32> to vector<2x128xf32>
    %48 = arith.truncf %14 : vector<2x32xf32> to vector<2x32xbf16>
    %cst_24 = arith.constant dense<0.000000e+00> : vector<2x128xf32>
    %49 = tpu.matmul %48, %12, %cst_24 {dimension_numbers = #tpu.dot_dimension_numbers<[1], [0], [0], [1], [0, 0, 1, 1], [], []>} : vector<2x32xbf16>, vector<32x128xbf16>, vector<2x128xf32> -> vector<2x128xf32>
    %50 = arith.addf %47, %49 : vector<2x128xf32>
    %51 = vector.extract_strided_slice %50 {offsets = [0, 0], sizes = [2, 32], strides = [1, 1]} : vector<2x128xf32> to vector<2x32xf32>
    %52 = arith.negf %51 : vector<2x32xf32>
    %53 = math.exp %52 : vector<2x32xf32>
    %cst_25 = arith.constant 1.000000e+00 : f32
    %54 = vector.broadcast %cst_25 : f32 to vector<2x32xf32>
    %55 = arith.addf %54, %53 : vector<2x32xf32>
    %56 = arith.divf %54, %55 : vector<2x32xf32>
    %57 = vector.extract_strided_slice %50 {offsets = [0, 32], sizes = [2, 32], strides = [1, 1]} : vector<2x128xf32> to vector<2x32xf32>
    %58 = arith.negf %57 : vector<2x32xf32>
    %59 = math.exp %58 : vector<2x32xf32>
    %cst_26 = arith.constant 1.000000e+00 : f32
    %60 = vector.broadcast %cst_26 : f32 to vector<2x32xf32>
    %61 = arith.addf %60, %59 : vector<2x32xf32>
    %62 = arith.divf %60, %61 : vector<2x32xf32>
    %63 = vector.extract_strided_slice %50 {offsets = [0, 64], sizes = [2, 32], strides = [1, 1]} : vector<2x128xf32> to vector<2x32xf32>
    %64 = math.tanh %63 : vector<2x32xf32>
    %65 = vector.extract_strided_slice %50 {offsets = [0, 96], sizes = [2, 32], strides = [1, 1]} : vector<2x128xf32> to vector<2x32xf32>
    %66 = arith.negf %65 : vector<2x32xf32>
    %67 = math.exp %66 : vector<2x32xf32>
    %cst_27 = arith.constant 1.000000e+00 : f32
    %68 = vector.broadcast %cst_27 : f32 to vector<2x32xf32>
    %69 = arith.addf %68, %67 : vector<2x32xf32>
    %70 = arith.divf %68, %69 : vector<2x32xf32>
    %71 = arith.mulf %62, %16 : vector<2x32xf32>
    %72 = arith.mulf %56, %64 : vector<2x32xf32>
    %73 = arith.addf %71, %72 : vector<2x32xf32>
    %74 = math.tanh %73 : vector<2x32xf32>
    %75 = arith.mulf %70, %74 : vector<2x32xf32>
    %c14 = arith.constant 14 : index
    %c32 = arith.constant 32 : index
    %76 = vector.load %arg16[%c14, %c32] : memref<16x64xf32, #tpu.memory_space<vmem>>, vector<2x32xf32>
    tpu.vector_store %arg16[%c14, %c32], %75 {strides = array<i32>} : memref<16x64xf32, #tpu.memory_space<vmem>>, vector<2x32xf32>,
    %77 = vector.extract_strided_slice %5 {offsets = [2, 0], sizes = [2, 128], strides = [1, 1]} : vector<16x128xf32> to vector<2x128xf32>
    %78 = arith.truncf %45 : vector<2x32xf32> to vector<2x32xbf16>
    %cst_28 = arith.constant dense<0.000000e+00> : vector<2x128xf32>
    %79 = tpu.matmul %78, %6, %cst_28 {dimension_numbers = #tpu.dot_dimension_numbers<[1], [0], [0], [1], [0, 0, 1, 1], [], []>} : vector<2x32xbf16>, vector<32x128xbf16>, vector<2x128xf32> -> vector<2x128xf32>
    %80 = arith.addf %77, %79 : vector<2x128xf32>
    %81 = vector.extract_strided_slice %80 {offsets = [0, 0], sizes = [2, 32], strides = [1, 1]} : vector<2x128xf32> to vector<2x32xf32>
    %82 = arith.negf %81 : vector<2x32xf32>
    %83 = math.exp %82 : vector<2x32xf32>
    %cst_29 = arith.constant 1.000000e+00 : f32
    %84 = vector.broadcast %cst_29 : f32 to vector<2x32xf32>
    %85 = arith.addf %84, %83 : vector<2x32xf32>
    %86 = arith.divf %84, %85 : vector<2x32xf32>
    %87 = vector.extract_strided_slice %80 {offsets = [0, 32], sizes = [2, 32], strides = [1, 1]} : vector<2x128xf32> to vector<2x32xf32>
    %88 = arith.negf %87 : vector<2x32xf32>
    %89 = math.exp %88 : vector<2x32xf32>
    %cst_30 = arith.constant 1.000000e+00 : f32
    %90 = vector.broadcast %cst_30 : f32 to vector<2x32xf32>
    %91 = arith.addf %90, %89 : vector<2x32xf32>
    %92 = arith.divf %90, %91 : vector<2x32xf32>
    %93 = vector.extract_strided_slice %80 {offsets = [0, 64], sizes = [2, 32], strides = [1, 1]} : vector<2x128xf32> to vector<2x32xf32>
    %94 = math.tanh %93 : vector<2x32xf32>
    %95 = vector.extract_strided_slice %80 {offsets = [0, 96], sizes = [2, 32], strides = [1, 1]} : vector<2x128xf32> to vector<2x32xf32>
    %96 = arith.negf %95 : vector<2x32xf32>
    %97 = math.exp %96 : vector<2x32xf32>
    %cst_31 = arith.constant 1.000000e+00 : f32
    %98 = vector.broadcast %cst_31 : f32 to vector<2x32xf32>
    %99 = arith.addf %98, %97 : vector<2x32xf32>
    %100 = arith.divf %98, %99 : vector<2x32xf32>
    %101 = arith.mulf %92, %43 : vector<2x32xf32>
    %102 = arith.mulf %86, %94 : vector<2x32xf32>
    %103 = arith.addf %101, %102 : vector<2x32xf32>
    %104 = math.tanh %103 : vector<2x32xf32>
    %105 = arith.mulf %100, %104 : vector<2x32xf32>
    %c2 = arith.constant 2 : index
    %c0_32 = arith.constant 0 : index
    %106 = vector.load %arg16[%c2, %c0_32] : memref<16x64xf32, #tpu.memory_space<vmem>>, vector<2x32xf32>
    tpu.vector_store %arg16[%c2, %c0_32], %105 {strides = array<i32>} : memref<16x64xf32, #tpu.memory_space<vmem>>, vector<2x32xf32>,
    %107 = vector.extract_strided_slice %11 {offsets = [12, 0], sizes = [2, 128], strides = [1, 1]} : vector<16x128xf32> to vector<2x128xf32>
    %108 = arith.truncf %75 : vector<2x32xf32> to vector<2x32xbf16>
    %cst_33 = arith.constant dense<0.000000e+00> : vector<2x128xf32>
    %109 = tpu.matmul %108, %12, %cst_33 {dimension_numbers = #tpu.dot_dimension_numbers<[1], [0], [0], [1], [0, 0, 1, 1], [], []>} : vector<2x32xbf16>, vector<32x128xbf16>, vector<2x128xf32> -> vector<2x128xf32>
    %110 = arith.addf %107, %109 : vector<2x128xf32>
    %111 = vector.extract_strided_slice %110 {offsets = [0, 0], sizes = [2, 32], strides = [1, 1]} : vector<2x128xf32> to vector<2x32xf32>
    %112 = arith.negf %111 : vector<2x32xf32>
    %113 = math.exp %112 : vector<2x32xf32>
    %cst_34 = arith.constant 1.000000e+00 : f32
    %114 = vector.broadcast %cst_34 : f32 to vector<2x32xf32>
    %115 = arith.addf %114, %113 : vector<2x32xf32>
    %116 = arith.divf %114, %115 : vector<2x32xf32>
    %117 = vector.extract_strided_slice %110 {offsets = [0, 32], sizes = [2, 32], strides = [1, 1]} : vector<2x128xf32> to vector<2x32xf32>
    %118 = arith.negf %117 : vector<2x32xf32>
    %119 = math.exp %118 : vector<2x32xf32>
    %cst_35 = arith.constant 1.000000e+00 : f32
    %120 = vector.broadcast %cst_35 : f32 to vector<2x32xf32>
    %121 = arith.addf %120, %119 : vector<2x32xf32>
    %122 = arith.divf %120, %121 : vector<2x32xf32>
    %123 = vector.extract_strided_slice %110 {offsets = [0, 64], sizes = [2, 32], strides = [1, 1]} : vector<2x128xf32> to vector<2x32xf32>
    %124 = math.tanh %123 : vector<2x32xf32>
    %125 = vector.extract_strided_slice %110 {offsets = [0, 96], sizes = [2, 32], strides = [1, 1]} : vector<2x128xf32> to vector<2x32xf32>
    %126 = arith.negf %125 : vector<2x32xf32>
    %127 = math.exp %126 : vector<2x32xf32>
    %cst_36 = arith.constant 1.000000e+00 : f32
    %128 = vector.broadcast %cst_36 : f32 to vector<2x32xf32>
    %129 = arith.addf %128, %127 : vector<2x32xf32>
    %130 = arith.divf %128, %129 : vector<2x32xf32>
    %131 = arith.mulf %122, %73 : vector<2x32xf32>
    %132 = arith.mulf %116, %124 : vector<2x32xf32>
    %133 = arith.addf %131, %132 : vector<2x32xf32>
    %134 = math.tanh %133 : vector<2x32xf32>
    %135 = arith.mulf %130, %134 : vector<2x32xf32>
    %c12 = arith.constant 12 : index
    %c32_37 = arith.constant 32 : index
    %136 = vector.load %arg16[%c12, %c32_37] : memref<16x64xf32, #tpu.memory_space<vmem>>, vector<2x32xf32>
    tpu.vector_store %arg16[%c12, %c32_37], %135 {strides = array<i32>} : memref<16x64xf32, #tpu.memory_space<vmem>>, vector<2x32xf32>,
    %137 = vector.extract_strided_slice %5 {offsets = [4, 0], sizes = [2, 128], strides = [1, 1]} : vector<16x128xf32> to vector<2x128xf32>
    %138 = arith.truncf %105 : vector<2x32xf32> to vector<2x32xbf16>
    %cst_38 = arith.constant dense<0.000000e+00> : vector<2x128xf32>
    %139 = tpu.matmul %138, %6, %cst_38 {dimension_numbers = #tpu.dot_dimension_numbers<[1], [0], [0], [1], [0, 0, 1, 1], [], []>} : vector<2x32xbf16>, vector<32x128xbf16>, vector<2x128xf32> -> vector<2x128xf32>
    %140 = arith.addf %137, %139 : vector<2x128xf32>
    %141 = vector.extract_strided_slice %140 {offsets = [0, 0], sizes = [2, 32], strides = [1, 1]} : vector<2x128xf32> to vector<2x32xf32>
    %142 = arith.negf %141 : vector<2x32xf32>
    %143 = math.exp %142 : vector<2x32xf32>
    %cst_39 = arith.constant 1.000000e+00 : f32
    %144 = vector.broadcast %cst_39 : f32 to vector<2x32xf32>
    %145 = arith.addf %144, %143 : vector<2x32xf32>
    %146 = arith.divf %144, %145 : vector<2x32xf32>
    %147 = vector.extract_strided_slice %140 {offsets = [0, 32], sizes = [2, 32], strides = [1, 1]} : vector<2x128xf32> to vector<2x32xf32>
    %148 = arith.negf %147 : vector<2x32xf32>
    %149 = math.exp %148 : vector<2x32xf32>
    %cst_40 = arith.constant 1.000000e+00 : f32
    %150 = vector.broadcast %cst_40 : f32 to vector<2x32xf32>
    %151 = arith.addf %150, %149 : vector<2x32xf32>
    %152 = arith.divf %150, %151 : vector<2x32xf32>
    %153 = vector.extract_strided_slice %140 {offsets = [0, 64], sizes = [2, 32], strides = [1, 1]} : vector<2x128xf32> to vector<2x32xf32>
    %154 = math.tanh %153 : vector<2x32xf32>
    %155 = vector.extract_strided_slice %140 {offsets = [0, 96], sizes = [2, 32], strides = [1, 1]} : vector<2x128xf32> to vector<2x32xf32>
    %156 = arith.negf %155 : vector<2x32xf32>
    %157 = math.exp %156 : vector<2x32xf32>
    %cst_41 = arith.constant 1.000000e+00 : f32
    %158 = vector.broadcast %cst_41 : f32 to vector<2x32xf32>
    %159 = arith.addf %158, %157 : vector<2x32xf32>
    %160 = arith.divf %158, %159 : vector<2x32xf32>
    %161 = arith.mulf %152, %103 : vector<2x32xf32>
    %162 = arith.mulf %146, %154 : vector<2x32xf32>
    %163 = arith.addf %161, %162 : vector<2x32xf32>
    %164 = math.tanh %163 : vector<2x32xf32>
    %165 = arith.mulf %160, %164 : vector<2x32xf32>
    %c4 = arith.constant 4 : index
    %c0_42 = arith.constant 0 : index
    %166 = vector.load %arg16[%c4, %c0_42] : memref<16x64xf32, #tpu.memory_space<vmem>>, vector<2x32xf32>
    tpu.vector_store %arg16[%c4, %c0_42], %165 {strides = array<i32>} : memref<16x64xf32, #tpu.memory_space<vmem>>, vector<2x32xf32>,
    %167 = vector.extract_strided_slice %11 {offsets = [10, 0], sizes = [2, 128], strides = [1, 1]} : vector<16x128xf32> to vector<2x128xf32>
    %168 = arith.truncf %135 : vector<2x32xf32> to vector<2x32xbf16>
    %cst_43 = arith.constant dense<0.000000e+00> : vector<2x128xf32>
    %169 = tpu.matmul %168, %12, %cst_43 {dimension_numbers = #tpu.dot_dimension_numbers<[1], [0], [0], [1], [0, 0, 1, 1], [], []>} : vector<2x32xbf16>, vector<32x128xbf16>, vector<2x128xf32> -> vector<2x128xf32>
    %170 = arith.addf %167, %169 : vector<2x128xf32>
    %171 = vector.extract_strided_slice %170 {offsets = [0, 0], sizes = [2, 32], strides = [1, 1]} : vector<2x128xf32> to vector<2x32xf32>
    %172 = arith.negf %171 : vector<2x32xf32>
    %173 = math.exp %172 : vector<2x32xf32>
    %cst_44 = arith.constant 1.000000e+00 : f32
    %174 = vector.broadcast %cst_44 : f32 to vector<2x32xf32>
    %175 = arith.addf %174, %173 : vector<2x32xf32>
    %176 = arith.divf %174, %175 : vector<2x32xf32>
    %177 = vector.extract_strided_slice %170 {offsets = [0, 32], sizes = [2, 32], strides = [1, 1]} : vector<2x128xf32> to vector<2x32xf32>
    %178 = arith.negf %177 : vector<2x32xf32>
    %179 = math.exp %178 : vector<2x32xf32>
    %cst_45 = arith.constant 1.000000e+00 : f32
    %180 = vector.broadcast %cst_45 : f32 to vector<2x32xf32>
    %181 = arith.addf %180, %179 : vector<2x32xf32>
    %182 = arith.divf %180, %181 : vector<2x32xf32>
    %183 = vector.extract_strided_slice %170 {offsets = [0, 64], sizes = [2, 32], strides = [1, 1]} : vector<2x128xf32> to vector<2x32xf32>
    %184 = math.tanh %183 : vector<2x32xf32>
    %185 = vector.extract_strided_slice %170 {offsets = [0, 96], sizes = [2, 32], strides = [1, 1]} : vector<2x128xf32> to vector<2x32xf32>
    %186 = arith.negf %185 : vector<2x32xf32>
    %187 = math.exp %186 : vector<2x32xf32>
    %cst_46 = arith.constant 1.000000e+00 : f32
    %188 = vector.broadcast %cst_46 : f32 to vector<2x32xf32>
    %189 = arith.addf %188, %187 : vector<2x32xf32>
    %190 = arith.divf %188, %189 : vector<2x32xf32>
    %191 = arith.mulf %182, %133 : vector<2x32xf32>
    %192 = arith.mulf %176, %184 : vector<2x32xf32>
    %193 = arith.addf %191, %192 : vector<2x32xf32>
    %194 = math.tanh %193 : vector<2x32xf32>
    %195 = arith.mulf %190, %194 : vector<2x32xf32>
    %c10 = arith.constant 10 : index
    %c32_47 = arith.constant 32 : index
    %196 = vector.load %arg16[%c10, %c32_47] : memref<16x64xf32, #tpu.memory_space<vmem>>, vector<2x32xf32>
    tpu.vector_store %arg16[%c10, %c32_47], %195 {strides = array<i32>} : memref<16x64xf32, #tpu.memory_space<vmem>>, vector<2x32xf32>,
    %197 = vector.extract_strided_slice %5 {offsets = [6, 0], sizes = [2, 128], strides = [1, 1]} : vector<16x128xf32> to vector<2x128xf32>
    %198 = arith.truncf %165 : vector<2x32xf32> to vector<2x32xbf16>
    %cst_48 = arith.constant dense<0.000000e+00> : vector<2x128xf32>
    %199 = tpu.matmul %198, %6, %cst_48 {dimension_numbers = #tpu.dot_dimension_numbers<[1], [0], [0], [1], [0, 0, 1, 1], [], []>} : vector<2x32xbf16>, vector<32x128xbf16>, vector<2x128xf32> -> vector<2x128xf32>
    %200 = arith.addf %197, %199 : vector<2x128xf32>
    %201 = vector.extract_strided_slice %200 {offsets = [0, 0], sizes = [2, 32], strides = [1, 1]} : vector<2x128xf32> to vector<2x32xf32>
    %202 = arith.negf %201 : vector<2x32xf32>
    %203 = math.exp %202 : vector<2x32xf32>
    %cst_49 = arith.constant 1.000000e+00 : f32
    %204 = vector.broadcast %cst_49 : f32 to vector<2x32xf32>
    %205 = arith.addf %204, %203 : vector<2x32xf32>
    %206 = arith.divf %204, %205 : vector<2x32xf32>
    %207 = vector.extract_strided_slice %200 {offsets = [0, 32], sizes = [2, 32], strides = [1, 1]} : vector<2x128xf32> to vector<2x32xf32>
    %208 = arith.negf %207 : vector<2x32xf32>
    %209 = math.exp %208 : vector<2x32xf32>
    %cst_50 = arith.constant 1.000000e+00 : f32
    %210 = vector.broadcast %cst_50 : f32 to vector<2x32xf32>
    %211 = arith.addf %210, %209 : vector<2x32xf32>
    %212 = arith.divf %210, %211 : vector<2x32xf32>
    %213 = vector.extract_strided_slice %200 {offsets = [0, 64], sizes = [2, 32], strides = [1, 1]} : vector<2x128xf32> to vector<2x32xf32>
    %214 = math.tanh %213 : vector<2x32xf32>
    %215 = vector.extract_strided_slice %200 {offsets = [0, 96], sizes = [2, 32], strides = [1, 1]} : vector<2x128xf32> to vector<2x32xf32>
    %216 = arith.negf %215 : vector<2x32xf32>
    %217 = math.exp %216 : vector<2x32xf32>
    %cst_51 = arith.constant 1.000000e+00 : f32
    %218 = vector.broadcast %cst_51 : f32 to vector<2x32xf32>
    %219 = arith.addf %218, %217 : vector<2x32xf32>
    %220 = arith.divf %218, %219 : vector<2x32xf32>
    %221 = arith.mulf %212, %163 : vector<2x32xf32>
    %222 = arith.mulf %206, %214 : vector<2x32xf32>
    %223 = arith.addf %221, %222 : vector<2x32xf32>
    %224 = math.tanh %223 : vector<2x32xf32>
    %225 = arith.mulf %220, %224 : vector<2x32xf32>
    %c6 = arith.constant 6 : index
    %c0_52 = arith.constant 0 : index
    %226 = vector.load %arg16[%c6, %c0_52] : memref<16x64xf32, #tpu.memory_space<vmem>>, vector<2x32xf32>
    tpu.vector_store %arg16[%c6, %c0_52], %225 {strides = array<i32>} : memref<16x64xf32, #tpu.memory_space<vmem>>, vector<2x32xf32>,
    %227 = vector.extract_strided_slice %11 {offsets = [8, 0], sizes = [2, 128], strides = [1, 1]} : vector<16x128xf32> to vector<2x128xf32>
    %228 = arith.truncf %195 : vector<2x32xf32> to vector<2x32xbf16>
    %cst_53 = arith.constant dense<0.000000e+00> : vector<2x128xf32>
    %229 = tpu.matmul %228, %12, %cst_53 {dimension_numbers = #tpu.dot_dimension_numbers<[1], [0], [0], [1], [0, 0, 1, 1], [], []>} : vector<2x32xbf16>, vector<32x128xbf16>, vector<2x128xf32> -> vector<2x128xf32>
    %230 = arith.addf %227, %229 : vector<2x128xf32>
    %231 = vector.extract_strided_slice %230 {offsets = [0, 0], sizes = [2, 32], strides = [1, 1]} : vector<2x128xf32> to vector<2x32xf32>
    %232 = arith.negf %231 : vector<2x32xf32>
    %233 = math.exp %232 : vector<2x32xf32>
    %cst_54 = arith.constant 1.000000e+00 : f32
    %234 = vector.broadcast %cst_54 : f32 to vector<2x32xf32>
    %235 = arith.addf %234, %233 : vector<2x32xf32>
    %236 = arith.divf %234, %235 : vector<2x32xf32>
    %237 = vector.extract_strided_slice %230 {offsets = [0, 32], sizes = [2, 32], strides = [1, 1]} : vector<2x128xf32> to vector<2x32xf32>
    %238 = arith.negf %237 : vector<2x32xf32>
    %239 = math.exp %238 : vector<2x32xf32>
    %cst_55 = arith.constant 1.000000e+00 : f32
    %240 = vector.broadcast %cst_55 : f32 to vector<2x32xf32>
    %241 = arith.addf %240, %239 : vector<2x32xf32>
    %242 = arith.divf %240, %241 : vector<2x32xf32>
    %243 = vector.extract_strided_slice %230 {offsets = [0, 64], sizes = [2, 32], strides = [1, 1]} : vector<2x128xf32> to vector<2x32xf32>
    %244 = math.tanh %243 : vector<2x32xf32>
    %245 = vector.extract_strided_slice %230 {offsets = [0, 96], sizes = [2, 32], strides = [1, 1]} : vector<2x128xf32> to vector<2x32xf32>
    %246 = arith.negf %245 : vector<2x32xf32>
    %247 = math.exp %246 : vector<2x32xf32>
    %cst_56 = arith.constant 1.000000e+00 : f32
    %248 = vector.broadcast %cst_56 : f32 to vector<2x32xf32>
    %249 = arith.addf %248, %247 : vector<2x32xf32>
    %250 = arith.divf %248, %249 : vector<2x32xf32>
    %251 = arith.mulf %242, %193 : vector<2x32xf32>
    %252 = arith.mulf %236, %244 : vector<2x32xf32>
    %253 = arith.addf %251, %252 : vector<2x32xf32>
    %254 = math.tanh %253 : vector<2x32xf32>
    %255 = arith.mulf %250, %254 : vector<2x32xf32>
    %c8 = arith.constant 8 : index
    %c32_57 = arith.constant 32 : index
    %256 = vector.load %arg16[%c8, %c32_57] : memref<16x64xf32, #tpu.memory_space<vmem>>, vector<2x32xf32>
    tpu.vector_store %arg16[%c8, %c32_57], %255 {strides = array<i32>} : memref<16x64xf32, #tpu.memory_space<vmem>>, vector<2x32xf32>,
    %257 = vector.extract_strided_slice %5 {offsets = [8, 0], sizes = [2, 128], strides = [1, 1]} : vector<16x128xf32> to vector<2x128xf32>
    %258 = arith.truncf %225 : vector<2x32xf32> to vector<2x32xbf16>
    %cst_58 = arith.constant dense<0.000000e+00> : vector<2x128xf32>
    %259 = tpu.matmul %258, %6, %cst_58 {dimension_numbers = #tpu.dot_dimension_numbers<[1], [0], [0], [1], [0, 0, 1, 1], [], []>} : vector<2x32xbf16>, vector<32x128xbf16>, vector<2x128xf32> -> vector<2x128xf32>
    %260 = arith.addf %257, %259 : vector<2x128xf32>
    %261 = vector.extract_strided_slice %260 {offsets = [0, 0], sizes = [2, 32], strides = [1, 1]} : vector<2x128xf32> to vector<2x32xf32>
    %262 = arith.negf %261 : vector<2x32xf32>
    %263 = math.exp %262 : vector<2x32xf32>
    %cst_59 = arith.constant 1.000000e+00 : f32
    %264 = vector.broadcast %cst_59 : f32 to vector<2x32xf32>
    %265 = arith.addf %264, %263 : vector<2x32xf32>
    %266 = arith.divf %264, %265 : vector<2x32xf32>
    %267 = vector.extract_strided_slice %260 {offsets = [0, 32], sizes = [2, 32], strides = [1, 1]} : vector<2x128xf32> to vector<2x32xf32>
    %268 = arith.negf %267 : vector<2x32xf32>
    %269 = math.exp %268 : vector<2x32xf32>
    %cst_60 = arith.constant 1.000000e+00 : f32
    %270 = vector.broadcast %cst_60 : f32 to vector<2x32xf32>
    %271 = arith.addf %270, %269 : vector<2x32xf32>
    %272 = arith.divf %270, %271 : vector<2x32xf32>
    %273 = vector.extract_strided_slice %260 {offsets = [0, 64], sizes = [2, 32], strides = [1, 1]} : vector<2x128xf32> to vector<2x32xf32>
    %274 = math.tanh %273 : vector<2x32xf32>
    %275 = vector.extract_strided_slice %260 {offsets = [0, 96], sizes = [2, 32], strides = [1, 1]} : vector<2x128xf32> to vector<2x32xf32>
    %276 = arith.negf %275 : vector<2x32xf32>
    %277 = math.exp %276 : vector<2x32xf32>
    %cst_61 = arith.constant 1.000000e+00 : f32
    %278 = vector.broadcast %cst_61 : f32 to vector<2x32xf32>
    %279 = arith.addf %278, %277 : vector<2x32xf32>
    %280 = arith.divf %278, %279 : vector<2x32xf32>
    %281 = arith.mulf %272, %223 : vector<2x32xf32>
    %282 = arith.mulf %266, %274 : vector<2x32xf32>
    %283 = arith.addf %281, %282 : vector<2x32xf32>
    %284 = math.tanh %283 : vector<2x32xf32>
    %285 = arith.mulf %280, %284 : vector<2x32xf32>
    %c8_62 = arith.constant 8 : index
    %c0_63 = arith.constant 0 : index
    %286 = vector.load %arg16[%c8_62, %c0_63] : memref<16x64xf32, #tpu.memory_space<vmem>>, vector<2x32xf32>
    tpu.vector_store %arg16[%c8_62, %c0_63], %285 {strides = array<i32>} : memref<16x64xf32, #tpu.memory_space<vmem>>, vector<2x32xf32>,
    %287 = vector.extract_strided_slice %11 {offsets = [6, 0], sizes = [2, 128], strides = [1, 1]} : vector<16x128xf32> to vector<2x128xf32>
    %288 = arith.truncf %255 : vector<2x32xf32> to vector<2x32xbf16>
    %cst_64 = arith.constant dense<0.000000e+00> : vector<2x128xf32>
    %289 = tpu.matmul %288, %12, %cst_64 {dimension_numbers = #tpu.dot_dimension_numbers<[1], [0], [0], [1], [0, 0, 1, 1], [], []>} : vector<2x32xbf16>, vector<32x128xbf16>, vector<2x128xf32> -> vector<2x128xf32>
    %290 = arith.addf %287, %289 : vector<2x128xf32>
    %291 = vector.extract_strided_slice %290 {offsets = [0, 0], sizes = [2, 32], strides = [1, 1]} : vector<2x128xf32> to vector<2x32xf32>
    %292 = arith.negf %291 : vector<2x32xf32>
    %293 = math.exp %292 : vector<2x32xf32>
    %cst_65 = arith.constant 1.000000e+00 : f32
    %294 = vector.broadcast %cst_65 : f32 to vector<2x32xf32>
    %295 = arith.addf %294, %293 : vector<2x32xf32>
    %296 = arith.divf %294, %295 : vector<2x32xf32>
    %297 = vector.extract_strided_slice %290 {offsets = [0, 32], sizes = [2, 32], strides = [1, 1]} : vector<2x128xf32> to vector<2x32xf32>
    %298 = arith.negf %297 : vector<2x32xf32>
    %299 = math.exp %298 : vector<2x32xf32>
    %cst_66 = arith.constant 1.000000e+00 : f32
    %300 = vector.broadcast %cst_66 : f32 to vector<2x32xf32>
    %301 = arith.addf %300, %299 : vector<2x32xf32>
    %302 = arith.divf %300, %301 : vector<2x32xf32>
    %303 = vector.extract_strided_slice %290 {offsets = [0, 64], sizes = [2, 32], strides = [1, 1]} : vector<2x128xf32> to vector<2x32xf32>
    %304 = math.tanh %303 : vector<2x32xf32>
    %305 = vector.extract_strided_slice %290 {offsets = [0, 96], sizes = [2, 32], strides = [1, 1]} : vector<2x128xf32> to vector<2x32xf32>
    %306 = arith.negf %305 : vector<2x32xf32>
    %307 = math.exp %306 : vector<2x32xf32>
    %cst_67 = arith.constant 1.000000e+00 : f32
    %308 = vector.broadcast %cst_67 : f32 to vector<2x32xf32>
    %309 = arith.addf %308, %307 : vector<2x32xf32>
    %310 = arith.divf %308, %309 : vector<2x32xf32>
    %311 = arith.mulf %302, %253 : vector<2x32xf32>
    %312 = arith.mulf %296, %304 : vector<2x32xf32>
    %313 = arith.addf %311, %312 : vector<2x32xf32>
    %314 = math.tanh %313 : vector<2x32xf32>
    %315 = arith.mulf %310, %314 : vector<2x32xf32>
    %c6_68 = arith.constant 6 : index
    %c32_69 = arith.constant 32 : index
    %316 = vector.load %arg16[%c6_68, %c32_69] : memref<16x64xf32, #tpu.memory_space<vmem>>, vector<2x32xf32>
    tpu.vector_store %arg16[%c6_68, %c32_69], %315 {strides = array<i32>} : memref<16x64xf32, #tpu.memory_space<vmem>>, vector<2x32xf32>,
    %317 = vector.extract_strided_slice %5 {offsets = [10, 0], sizes = [2, 128], strides = [1, 1]} : vector<16x128xf32> to vector<2x128xf32>
    %318 = arith.truncf %285 : vector<2x32xf32> to vector<2x32xbf16>
    %cst_70 = arith.constant dense<0.000000e+00> : vector<2x128xf32>
    %319 = tpu.matmul %318, %6, %cst_70 {dimension_numbers = #tpu.dot_dimension_numbers<[1], [0], [0], [1], [0, 0, 1, 1], [], []>} : vector<2x32xbf16>, vector<32x128xbf16>, vector<2x128xf32> -> vector<2x128xf32>
    %320 = arith.addf %317, %319 : vector<2x128xf32>
    %321 = vector.extract_strided_slice %320 {offsets = [0, 0], sizes = [2, 32], strides = [1, 1]} : vector<2x128xf32> to vector<2x32xf32>
    %322 = arith.negf %321 : vector<2x32xf32>
    %323 = math.exp %322 : vector<2x32xf32>
    %cst_71 = arith.constant 1.000000e+00 : f32
    %324 = vector.broadcast %cst_71 : f32 to vector<2x32xf32>
    %325 = arith.addf %324, %323 : vector<2x32xf32>
    %326 = arith.divf %324, %325 : vector<2x32xf32>
    %327 = vector.extract_strided_slice %320 {offsets = [0, 32], sizes = [2, 32], strides = [1, 1]} : vector<2x128xf32> to vector<2x32xf32>
    %328 = arith.negf %327 : vector<2x32xf32>
    %329 = math.exp %328 : vector<2x32xf32>
    %cst_72 = arith.constant 1.000000e+00 : f32
    %330 = vector.broadcast %cst_72 : f32 to vector<2x32xf32>
    %331 = arith.addf %330, %329 : vector<2x32xf32>
    %332 = arith.divf %330, %331 : vector<2x32xf32>
    %333 = vector.extract_strided_slice %320 {offsets = [0, 64], sizes = [2, 32], strides = [1, 1]} : vector<2x128xf32> to vector<2x32xf32>
    %334 = math.tanh %333 : vector<2x32xf32>
    %335 = vector.extract_strided_slice %320 {offsets = [0, 96], sizes = [2, 32], strides = [1, 1]} : vector<2x128xf32> to vector<2x32xf32>
    %336 = arith.negf %335 : vector<2x32xf32>
    %337 = math.exp %336 : vector<2x32xf32>
    %cst_73 = arith.constant 1.000000e+00 : f32
    %338 = vector.broadcast %cst_73 : f32 to vector<2x32xf32>
    %339 = arith.addf %338, %337 : vector<2x32xf32>
    %340 = arith.divf %338, %339 : vector<2x32xf32>
    %341 = arith.mulf %332, %283 : vector<2x32xf32>
    %342 = arith.mulf %326, %334 : vector<2x32xf32>
    %343 = arith.addf %341, %342 : vector<2x32xf32>
    %344 = math.tanh %343 : vector<2x32xf32>
    %345 = arith.mulf %340, %344 : vector<2x32xf32>
    %c10_74 = arith.constant 10 : index
    %c0_75 = arith.constant 0 : index
    %346 = vector.load %arg16[%c10_74, %c0_75] : memref<16x64xf32, #tpu.memory_space<vmem>>, vector<2x32xf32>
    tpu.vector_store %arg16[%c10_74, %c0_75], %345 {strides = array<i32>} : memref<16x64xf32, #tpu.memory_space<vmem>>, vector<2x32xf32>,
    %347 = vector.extract_strided_slice %11 {offsets = [4, 0], sizes = [2, 128], strides = [1, 1]} : vector<16x128xf32> to vector<2x128xf32>
    %348 = arith.truncf %315 : vector<2x32xf32> to vector<2x32xbf16>
    %cst_76 = arith.constant dense<0.000000e+00> : vector<2x128xf32>
    %349 = tpu.matmul %348, %12, %cst_76 {dimension_numbers = #tpu.dot_dimension_numbers<[1], [0], [0], [1], [0, 0, 1, 1], [], []>} : vector<2x32xbf16>, vector<32x128xbf16>, vector<2x128xf32> -> vector<2x128xf32>
    %350 = arith.addf %347, %349 : vector<2x128xf32>
    %351 = vector.extract_strided_slice %350 {offsets = [0, 0], sizes = [2, 32], strides = [1, 1]} : vector<2x128xf32> to vector<2x32xf32>
    %352 = arith.negf %351 : vector<2x32xf32>
    %353 = math.exp %352 : vector<2x32xf32>
    %cst_77 = arith.constant 1.000000e+00 : f32
    %354 = vector.broadcast %cst_77 : f32 to vector<2x32xf32>
    %355 = arith.addf %354, %353 : vector<2x32xf32>
    %356 = arith.divf %354, %355 : vector<2x32xf32>
    %357 = vector.extract_strided_slice %350 {offsets = [0, 32], sizes = [2, 32], strides = [1, 1]} : vector<2x128xf32> to vector<2x32xf32>
    %358 = arith.negf %357 : vector<2x32xf32>
    %359 = math.exp %358 : vector<2x32xf32>
    %cst_78 = arith.constant 1.000000e+00 : f32
    %360 = vector.broadcast %cst_78 : f32 to vector<2x32xf32>
    %361 = arith.addf %360, %359 : vector<2x32xf32>
    %362 = arith.divf %360, %361 : vector<2x32xf32>
    %363 = vector.extract_strided_slice %350 {offsets = [0, 64], sizes = [2, 32], strides = [1, 1]} : vector<2x128xf32> to vector<2x32xf32>
    %364 = math.tanh %363 : vector<2x32xf32>
    %365 = vector.extract_strided_slice %350 {offsets = [0, 96], sizes = [2, 32], strides = [1, 1]} : vector<2x128xf32> to vector<2x32xf32>
    %366 = arith.negf %365 : vector<2x32xf32>
    %367 = math.exp %366 : vector<2x32xf32>
    %cst_79 = arith.constant 1.000000e+00 : f32
    %368 = vector.broadcast %cst_79 : f32 to vector<2x32xf32>
    %369 = arith.addf %368, %367 : vector<2x32xf32>
    %370 = arith.divf %368, %369 : vector<2x32xf32>
    %371 = arith.mulf %362, %313 : vector<2x32xf32>
    %372 = arith.mulf %356, %364 : vector<2x32xf32>
    %373 = arith.addf %371, %372 : vector<2x32xf32>
    %374 = math.tanh %373 : vector<2x32xf32>
    %375 = arith.mulf %370, %374 : vector<2x32xf32>
    %c4_80 = arith.constant 4 : index
    %c32_81 = arith.constant 32 : index
    %376 = vector.load %arg16[%c4_80, %c32_81] : memref<16x64xf32, #tpu.memory_space<vmem>>, vector<2x32xf32>
    tpu.vector_store %arg16[%c4_80, %c32_81], %375 {strides = array<i32>} : memref<16x64xf32, #tpu.memory_space<vmem>>, vector<2x32xf32>,
    %377 = vector.extract_strided_slice %5 {offsets = [12, 0], sizes = [2, 128], strides = [1, 1]} : vector<16x128xf32> to vector<2x128xf32>
    %378 = arith.truncf %345 : vector<2x32xf32> to vector<2x32xbf16>
    %cst_82 = arith.constant dense<0.000000e+00> : vector<2x128xf32>
    %379 = tpu.matmul %378, %6, %cst_82 {dimension_numbers = #tpu.dot_dimension_numbers<[1], [0], [0], [1], [0, 0, 1, 1], [], []>} : vector<2x32xbf16>, vector<32x128xbf16>, vector<2x128xf32> -> vector<2x128xf32>
    %380 = arith.addf %377, %379 : vector<2x128xf32>
    %381 = vector.extract_strided_slice %380 {offsets = [0, 0], sizes = [2, 32], strides = [1, 1]} : vector<2x128xf32> to vector<2x32xf32>
    %382 = arith.negf %381 : vector<2x32xf32>
    %383 = math.exp %382 : vector<2x32xf32>
    %cst_83 = arith.constant 1.000000e+00 : f32
    %384 = vector.broadcast %cst_83 : f32 to vector<2x32xf32>
    %385 = arith.addf %384, %383 : vector<2x32xf32>
    %386 = arith.divf %384, %385 : vector<2x32xf32>
    %387 = vector.extract_strided_slice %380 {offsets = [0, 32], sizes = [2, 32], strides = [1, 1]} : vector<2x128xf32> to vector<2x32xf32>
    %388 = arith.negf %387 : vector<2x32xf32>
    %389 = math.exp %388 : vector<2x32xf32>
    %cst_84 = arith.constant 1.000000e+00 : f32
    %390 = vector.broadcast %cst_84 : f32 to vector<2x32xf32>
    %391 = arith.addf %390, %389 : vector<2x32xf32>
    %392 = arith.divf %390, %391 : vector<2x32xf32>
    %393 = vector.extract_strided_slice %380 {offsets = [0, 64], sizes = [2, 32], strides = [1, 1]} : vector<2x128xf32> to vector<2x32xf32>
    %394 = math.tanh %393 : vector<2x32xf32>
    %395 = vector.extract_strided_slice %380 {offsets = [0, 96], sizes = [2, 32], strides = [1, 1]} : vector<2x128xf32> to vector<2x32xf32>
    %396 = arith.negf %395 : vector<2x32xf32>
    %397 = math.exp %396 : vector<2x32xf32>
    %cst_85 = arith.constant 1.000000e+00 : f32
    %398 = vector.broadcast %cst_85 : f32 to vector<2x32xf32>
    %399 = arith.addf %398, %397 : vector<2x32xf32>
    %400 = arith.divf %398, %399 : vector<2x32xf32>
    %401 = arith.mulf %392, %343 : vector<2x32xf32>
    %402 = arith.mulf %386, %394 : vector<2x32xf32>
    %403 = arith.addf %401, %402 : vector<2x32xf32>
    %404 = math.tanh %403 : vector<2x32xf32>
    %405 = arith.mulf %400, %404 : vector<2x32xf32>
    %c12_86 = arith.constant 12 : index
    %c0_87 = arith.constant 0 : index
    %406 = vector.load %arg16[%c12_86, %c0_87] : memref<16x64xf32, #tpu.memory_space<vmem>>, vector<2x32xf32>
    tpu.vector_store %arg16[%c12_86, %c0_87], %405 {strides = array<i32>} : memref<16x64xf32, #tpu.memory_space<vmem>>, vector<2x32xf32>,
    %407 = vector.extract_strided_slice %11 {offsets = [2, 0], sizes = [2, 128], strides = [1, 1]} : vector<16x128xf32> to vector<2x128xf32>
    %408 = arith.truncf %375 : vector<2x32xf32> to vector<2x32xbf16>
    %cst_88 = arith.constant dense<0.000000e+00> : vector<2x128xf32>
    %409 = tpu.matmul %408, %12, %cst_88 {dimension_numbers = #tpu.dot_dimension_numbers<[1], [0], [0], [1], [0, 0, 1, 1], [], []>} : vector<2x32xbf16>, vector<32x128xbf16>, vector<2x128xf32> -> vector<2x128xf32>
    %410 = arith.addf %407, %409 : vector<2x128xf32>
    %411 = vector.extract_strided_slice %410 {offsets = [0, 0], sizes = [2, 32], strides = [1, 1]} : vector<2x128xf32> to vector<2x32xf32>
    %412 = arith.negf %411 : vector<2x32xf32>
    %413 = math.exp %412 : vector<2x32xf32>
    %cst_89 = arith.constant 1.000000e+00 : f32
    %414 = vector.broadcast %cst_89 : f32 to vector<2x32xf32>
    %415 = arith.addf %414, %413 : vector<2x32xf32>
    %416 = arith.divf %414, %415 : vector<2x32xf32>
    %417 = vector.extract_strided_slice %410 {offsets = [0, 32], sizes = [2, 32], strides = [1, 1]} : vector<2x128xf32> to vector<2x32xf32>
    %418 = arith.negf %417 : vector<2x32xf32>
    %419 = math.exp %418 : vector<2x32xf32>
    %cst_90 = arith.constant 1.000000e+00 : f32
    %420 = vector.broadcast %cst_90 : f32 to vector<2x32xf32>
    %421 = arith.addf %420, %419 : vector<2x32xf32>
    %422 = arith.divf %420, %421 : vector<2x32xf32>
    %423 = vector.extract_strided_slice %410 {offsets = [0, 64], sizes = [2, 32], strides = [1, 1]} : vector<2x128xf32> to vector<2x32xf32>
    %424 = math.tanh %423 : vector<2x32xf32>
    %425 = vector.extract_strided_slice %410 {offsets = [0, 96], sizes = [2, 32], strides = [1, 1]} : vector<2x128xf32> to vector<2x32xf32>
    %426 = arith.negf %425 : vector<2x32xf32>
    %427 = math.exp %426 : vector<2x32xf32>
    %cst_91 = arith.constant 1.000000e+00 : f32
    %428 = vector.broadcast %cst_91 : f32 to vector<2x32xf32>
    %429 = arith.addf %428, %427 : vector<2x32xf32>
    %430 = arith.divf %428, %429 : vector<2x32xf32>
    %431 = arith.mulf %422, %373 : vector<2x32xf32>
    %432 = arith.mulf %416, %424 : vector<2x32xf32>
    %433 = arith.addf %431, %432 : vector<2x32xf32>
    %434 = math.tanh %433 : vector<2x32xf32>
    %435 = arith.mulf %430, %434 : vector<2x32xf32>
    %c2_92 = arith.constant 2 : index
    %c32_93 = arith.constant 32 : index
    %436 = vector.load %arg16[%c2_92, %c32_93] : memref<16x64xf32, #tpu.memory_space<vmem>>, vector<2x32xf32>
    tpu.vector_store %arg16[%c2_92, %c32_93], %435 {strides = array<i32>} : memref<16x64xf32, #tpu.memory_space<vmem>>, vector<2x32xf32>,
    %437 = vector.extract_strided_slice %5 {offsets = [14, 0], sizes = [2, 128], strides = [1, 1]} : vector<16x128xf32> to vector<2x128xf32>
    %438 = arith.truncf %405 : vector<2x32xf32> to vector<2x32xbf16>
    %cst_94 = arith.constant dense<0.000000e+00> : vector<2x128xf32>
    %439 = tpu.matmul %438, %6, %cst_94 {dimension_numbers = #tpu.dot_dimension_numbers<[1], [0], [0], [1], [0, 0, 1, 1], [], []>} : vector<2x32xbf16>, vector<32x128xbf16>, vector<2x128xf32> -> vector<2x128xf32>
    %440 = arith.addf %437, %439 : vector<2x128xf32>
    %441 = vector.extract_strided_slice %440 {offsets = [0, 0], sizes = [2, 32], strides = [1, 1]} : vector<2x128xf32> to vector<2x32xf32>
    %442 = arith.negf %441 : vector<2x32xf32>
    %443 = math.exp %442 : vector<2x32xf32>
    %cst_95 = arith.constant 1.000000e+00 : f32
    %444 = vector.broadcast %cst_95 : f32 to vector<2x32xf32>
    %445 = arith.addf %444, %443 : vector<2x32xf32>
    %446 = arith.divf %444, %445 : vector<2x32xf32>
    %447 = vector.extract_strided_slice %440 {offsets = [0, 32], sizes = [2, 32], strides = [1, 1]} : vector<2x128xf32> to vector<2x32xf32>
    %448 = arith.negf %447 : vector<2x32xf32>
    %449 = math.exp %448 : vector<2x32xf32>
    %cst_96 = arith.constant 1.000000e+00 : f32
    %450 = vector.broadcast %cst_96 : f32 to vector<2x32xf32>
    %451 = arith.addf %450, %449 : vector<2x32xf32>
    %452 = arith.divf %450, %451 : vector<2x32xf32>
    %453 = vector.extract_strided_slice %440 {offsets = [0, 64], sizes = [2, 32], strides = [1, 1]} : vector<2x128xf32> to vector<2x32xf32>
    %454 = math.tanh %453 : vector<2x32xf32>
    %455 = vector.extract_strided_slice %440 {offsets = [0, 96], sizes = [2, 32], strides = [1, 1]} : vector<2x128xf32> to vector<2x32xf32>
    %456 = arith.negf %455 : vector<2x32xf32>
    %457 = math.exp %456 : vector<2x32xf32>
    %cst_97 = arith.constant 1.000000e+00 : f32
    %458 = vector.broadcast %cst_97 : f32 to vector<2x32xf32>
    %459 = arith.addf %458, %457 : vector<2x32xf32>
    %460 = arith.divf %458, %459 : vector<2x32xf32>
    %461 = arith.mulf %452, %403 : vector<2x32xf32>
    %462 = arith.mulf %446, %454 : vector<2x32xf32>
    %463 = arith.addf %461, %462 : vector<2x32xf32>
    %464 = math.tanh %463 : vector<2x32xf32>
    %465 = arith.mulf %460, %464 : vector<2x32xf32>
    %c14_98 = arith.constant 14 : index
    %c0_99 = arith.constant 0 : index
    %466 = vector.load %arg16[%c14_98, %c0_99] : memref<16x64xf32, #tpu.memory_space<vmem>>, vector<2x32xf32>
    tpu.vector_store %arg16[%c14_98, %c0_99], %465 {strides = array<i32>} : memref<16x64xf32, #tpu.memory_space<vmem>>, vector<2x32xf32>,
    %467 = vector.extract_strided_slice %11 {offsets = [0, 0], sizes = [2, 128], strides = [1, 1]} : vector<16x128xf32> to vector<2x128xf32>
    %468 = arith.truncf %435 : vector<2x32xf32> to vector<2x32xbf16>
    %cst_100 = arith.constant dense<0.000000e+00> : vector<2x128xf32>
    %469 = tpu.matmul %468, %12, %cst_100 {dimension_numbers = #tpu.dot_dimension_numbers<[1], [0], [0], [1], [0, 0, 1, 1], [], []>} : vector<2x32xbf16>, vector<32x128xbf16>, vector<2x128xf32> -> vector<2x128xf32>
    %470 = arith.addf %467, %469 : vector<2x128xf32>
    %471 = vector.extract_strided_slice %470 {offsets = [0, 0], sizes = [2, 32], strides = [1, 1]} : vector<2x128xf32> to vector<2x32xf32>
    %472 = arith.negf %471 : vector<2x32xf32>
    %473 = math.exp %472 : vector<2x32xf32>
    %cst_101 = arith.constant 1.000000e+00 : f32
    %474 = vector.broadcast %cst_101 : f32 to vector<2x32xf32>
    %475 = arith.addf %474, %473 : vector<2x32xf32>
    %476 = arith.divf %474, %475 : vector<2x32xf32>
    %477 = vector.extract_strided_slice %470 {offsets = [0, 32], sizes = [2, 32], strides = [1, 1]} : vector<2x128xf32> to vector<2x32xf32>
    %478 = arith.negf %477 : vector<2x32xf32>
    %479 = math.exp %478 : vector<2x32xf32>
    %cst_102 = arith.constant 1.000000e+00 : f32
    %480 = vector.broadcast %cst_102 : f32 to vector<2x32xf32>
    %481 = arith.addf %480, %479 : vector<2x32xf32>
    %482 = arith.divf %480, %481 : vector<2x32xf32>
    %483 = vector.extract_strided_slice %470 {offsets = [0, 64], sizes = [2, 32], strides = [1, 1]} : vector<2x128xf32> to vector<2x32xf32>
    %484 = math.tanh %483 : vector<2x32xf32>
    %485 = vector.extract_strided_slice %470 {offsets = [0, 96], sizes = [2, 32], strides = [1, 1]} : vector<2x128xf32> to vector<2x32xf32>
    %486 = arith.negf %485 : vector<2x32xf32>
    %487 = math.exp %486 : vector<2x32xf32>
    %cst_103 = arith.constant 1.000000e+00 : f32
    %488 = vector.broadcast %cst_103 : f32 to vector<2x32xf32>
    %489 = arith.addf %488, %487 : vector<2x32xf32>
    %490 = arith.divf %488, %489 : vector<2x32xf32>
    %491 = arith.mulf %482, %433 : vector<2x32xf32>
    %492 = arith.mulf %476, %484 : vector<2x32xf32>
    %493 = arith.addf %491, %492 : vector<2x32xf32>
    %494 = math.tanh %493 : vector<2x32xf32>
    %495 = arith.mulf %490, %494 : vector<2x32xf32>
    %c0_104 = arith.constant 0 : index
    %c32_105 = arith.constant 32 : index
    %496 = vector.load %arg16[%c0_104, %c32_105] : memref<16x64xf32, #tpu.memory_space<vmem>>, vector<2x32xf32>
    tpu.vector_store %arg16[%c0_104, %c32_105], %495 {strides = array<i32>} : memref<16x64xf32, #tpu.memory_space<vmem>>, vector<2x32xf32>,
    %c0_106 = arith.constant 0 : index
    %c0_107 = arith.constant 0 : index
    %497 = vector.load %arg16[%c0_106, %c0_107] : memref<16x64xf32, #tpu.memory_space<vmem>>, vector<16x64xf32>
    %498 = arith.truncf %497 : vector<16x64xf32> to vector<16x64xbf16>
    %c0_108 = arith.constant 0 : index
    %c0_109 = arith.constant 0 : index
    %499 = vector.load %arg7[%c0_108, %c0_109] : memref<64x128xbf16, #tpu.memory_space<vmem>>, vector<64x128xbf16>
    %cst_110 = arith.constant dense<0.000000e+00> : vector<16x128xf32>
    %500 = tpu.matmul %498, %499, %cst_110 {dimension_numbers = #tpu.dot_dimension_numbers<[1], [0], [0], [1], [0, 0, 1, 1], [], []>} : vector<16x64xbf16>, vector<64x128xbf16>, vector<16x128xf32> -> vector<16x128xf32>
    %c0_111 = arith.constant 0 : index
    %c0_112 = arith.constant 0 : index
    %501 = vector.load %arg9[%c0_111, %c0_112] : memref<1x128xf32, #tpu.memory_space<vmem>>, vector<1x128xf32>
    %502 = vector.broadcast %501 : vector<1x128xf32> to vector<16x128xf32>
    %503 = arith.addf %500, %502 : vector<16x128xf32>
    %c0_113 = arith.constant 0 : index
    %c0_114 = arith.constant 0 : index
    %504 = vector.load %arg8[%c0_113, %c0_114] : memref<32x128xbf16, #tpu.memory_space<vmem>>, vector<32x128xbf16>
    %c0_115 = arith.constant 0 : index
    %c0_116 = arith.constant 0 : index
    %505 = vector.load %arg10[%c0_115, %c0_116] : memref<64x128xbf16, #tpu.memory_space<vmem>>, vector<64x128xbf16>
    %cst_117 = arith.constant dense<0.000000e+00> : vector<16x128xf32>
    %506 = tpu.matmul %498, %505, %cst_117 {dimension_numbers = #tpu.dot_dimension_numbers<[1], [0], [0], [1], [0, 0, 1, 1], [], []>} : vector<16x64xbf16>, vector<64x128xbf16>, vector<16x128xf32> -> vector<16x128xf32>
    %c0_118 = arith.constant 0 : index
    %c0_119 = arith.constant 0 : index
    %507 = vector.load %arg12[%c0_118, %c0_119] : memref<1x128xf32, #tpu.memory_space<vmem>>, vector<1x128xf32>
    %508 = vector.broadcast %507 : vector<1x128xf32> to vector<16x128xf32>
    %509 = arith.addf %506, %508 : vector<16x128xf32>
    %c0_120 = arith.constant 0 : index
    %c0_121 = arith.constant 0 : index
    %510 = vector.load %arg11[%c0_120, %c0_121] : memref<32x128xbf16, #tpu.memory_space<vmem>>, vector<32x128xbf16>
    %cst_122 = arith.constant 0.000000e+00 : f32
    %511 = vector.broadcast %cst_122 : f32 to vector<2x32xf32>
    %cst_123 = arith.constant 0.000000e+00 : f32
    %512 = vector.broadcast %cst_123 : f32 to vector<2x32xf32>
    %cst_124 = arith.constant 0.000000e+00 : f32
    %513 = vector.broadcast %cst_124 : f32 to vector<2x32xf32>
    %cst_125 = arith.constant 0.000000e+00 : f32
    %514 = vector.broadcast %cst_125 : f32 to vector<2x32xf32>
    %515 = vector.extract_strided_slice %503 {offsets = [0, 0], sizes = [2, 128], strides = [1, 1]} : vector<16x128xf32> to vector<2x128xf32>
    %516 = arith.truncf %511 : vector<2x32xf32> to vector<2x32xbf16>
    %cst_126 = arith.constant dense<0.000000e+00> : vector<2x128xf32>
    %517 = tpu.matmul %516, %504, %cst_126 {dimension_numbers = #tpu.dot_dimension_numbers<[1], [0], [0], [1], [0, 0, 1, 1], [], []>} : vector<2x32xbf16>, vector<32x128xbf16>, vector<2x128xf32> -> vector<2x128xf32>
    %518 = arith.addf %515, %517 : vector<2x128xf32>
    %519 = vector.extract_strided_slice %518 {offsets = [0, 0], sizes = [2, 32], strides = [1, 1]} : vector<2x128xf32> to vector<2x32xf32>
    %520 = arith.negf %519 : vector<2x32xf32>
    %521 = math.exp %520 : vector<2x32xf32>
    %cst_127 = arith.constant 1.000000e+00 : f32
    %522 = vector.broadcast %cst_127 : f32 to vector<2x32xf32>
    %523 = arith.addf %522, %521 : vector<2x32xf32>
    %524 = arith.divf %522, %523 : vector<2x32xf32>
    %525 = vector.extract_strided_slice %518 {offsets = [0, 32], sizes = [2, 32], strides = [1, 1]} : vector<2x128xf32> to vector<2x32xf32>
    %526 = arith.negf %525 : vector<2x32xf32>
    %527 = math.exp %526 : vector<2x32xf32>
    %cst_128 = arith.constant 1.000000e+00 : f32
    %528 = vector.broadcast %cst_128 : f32 to vector<2x32xf32>
    %529 = arith.addf %528, %527 : vector<2x32xf32>
    %530 = arith.divf %528, %529 : vector<2x32xf32>
    %531 = vector.extract_strided_slice %518 {offsets = [0, 64], sizes = [2, 32], strides = [1, 1]} : vector<2x128xf32> to vector<2x32xf32>
    %532 = math.tanh %531 : vector<2x32xf32>
    %533 = vector.extract_strided_slice %518 {offsets = [0, 96], sizes = [2, 32], strides = [1, 1]} : vector<2x128xf32> to vector<2x32xf32>
    %534 = arith.negf %533 : vector<2x32xf32>
    %535 = math.exp %534 : vector<2x32xf32>
    %cst_129 = arith.constant 1.000000e+00 : f32
    %536 = vector.broadcast %cst_129 : f32 to vector<2x32xf32>
    %537 = arith.addf %536, %535 : vector<2x32xf32>
    %538 = arith.divf %536, %537 : vector<2x32xf32>
    %539 = arith.mulf %530, %513 : vector<2x32xf32>
    %540 = arith.mulf %524, %532 : vector<2x32xf32>
    %541 = arith.addf %539, %540 : vector<2x32xf32>
    %542 = math.tanh %541 : vector<2x32xf32>
    %543 = arith.mulf %538, %542 : vector<2x32xf32>
    %544 = vector.extract_strided_slice %509 {offsets = [14, 0], sizes = [2, 128], strides = [1, 1]} : vector<16x128xf32> to vector<2x128xf32>
    %545 = arith.truncf %512 : vector<2x32xf32> to vector<2x32xbf16>
    %cst_130 = arith.constant dense<0.000000e+00> : vector<2x128xf32>
    %546 = tpu.matmul %545, %510, %cst_130 {dimension_numbers = #tpu.dot_dimension_numbers<[1], [0], [0], [1], [0, 0, 1, 1], [], []>} : vector<2x32xbf16>, vector<32x128xbf16>, vector<2x128xf32> -> vector<2x128xf32>
    %547 = arith.addf %544, %546 : vector<2x128xf32>
    %548 = vector.extract_strided_slice %547 {offsets = [0, 0], sizes = [2, 32], strides = [1, 1]} : vector<2x128xf32> to vector<2x32xf32>
    %549 = arith.negf %548 : vector<2x32xf32>
    %550 = math.exp %549 : vector<2x32xf32>
    %cst_131 = arith.constant 1.000000e+00 : f32
    %551 = vector.broadcast %cst_131 : f32 to vector<2x32xf32>
    %552 = arith.addf %551, %550 : vector<2x32xf32>
    %553 = arith.divf %551, %552 : vector<2x32xf32>
    %554 = vector.extract_strided_slice %547 {offsets = [0, 32], sizes = [2, 32], strides = [1, 1]} : vector<2x128xf32> to vector<2x32xf32>
    %555 = arith.negf %554 : vector<2x32xf32>
    %556 = math.exp %555 : vector<2x32xf32>
    %cst_132 = arith.constant 1.000000e+00 : f32
    %557 = vector.broadcast %cst_132 : f32 to vector<2x32xf32>
    %558 = arith.addf %557, %556 : vector<2x32xf32>
    %559 = arith.divf %557, %558 : vector<2x32xf32>
    %560 = vector.extract_strided_slice %547 {offsets = [0, 64], sizes = [2, 32], strides = [1, 1]} : vector<2x128xf32> to vector<2x32xf32>
    %561 = math.tanh %560 : vector<2x32xf32>
    %562 = vector.extract_strided_slice %547 {offsets = [0, 96], sizes = [2, 32], strides = [1, 1]} : vector<2x128xf32> to vector<2x32xf32>
    %563 = arith.negf %562 : vector<2x32xf32>
    %564 = math.exp %563 : vector<2x32xf32>
    %cst_133 = arith.constant 1.000000e+00 : f32
    %565 = vector.broadcast %cst_133 : f32 to vector<2x32xf32>
    %566 = arith.addf %565, %564 : vector<2x32xf32>
    %567 = arith.divf %565, %566 : vector<2x32xf32>
    %568 = arith.mulf %559, %514 : vector<2x32xf32>
    %569 = arith.mulf %553, %561 : vector<2x32xf32>
    %570 = arith.addf %568, %569 : vector<2x32xf32>
    %571 = math.tanh %570 : vector<2x32xf32>
    %572 = arith.mulf %567, %571 : vector<2x32xf32>
    %573 = vector.extract_strided_slice %503 {offsets = [2, 0], sizes = [2, 128], strides = [1, 1]} : vector<16x128xf32> to vector<2x128xf32>
    %574 = arith.truncf %543 : vector<2x32xf32> to vector<2x32xbf16>
    %cst_134 = arith.constant dense<0.000000e+00> : vector<2x128xf32>
    %575 = tpu.matmul %574, %504, %cst_134 {dimension_numbers = #tpu.dot_dimension_numbers<[1], [0], [0], [1], [0, 0, 1, 1], [], []>} : vector<2x32xbf16>, vector<32x128xbf16>, vector<2x128xf32> -> vector<2x128xf32>
    %576 = arith.addf %573, %575 : vector<2x128xf32>
    %577 = vector.extract_strided_slice %576 {offsets = [0, 0], sizes = [2, 32], strides = [1, 1]} : vector<2x128xf32> to vector<2x32xf32>
    %578 = arith.negf %577 : vector<2x32xf32>
    %579 = math.exp %578 : vector<2x32xf32>
    %cst_135 = arith.constant 1.000000e+00 : f32
    %580 = vector.broadcast %cst_135 : f32 to vector<2x32xf32>
    %581 = arith.addf %580, %579 : vector<2x32xf32>
    %582 = arith.divf %580, %581 : vector<2x32xf32>
    %583 = vector.extract_strided_slice %576 {offsets = [0, 32], sizes = [2, 32], strides = [1, 1]} : vector<2x128xf32> to vector<2x32xf32>
    %584 = arith.negf %583 : vector<2x32xf32>
    %585 = math.exp %584 : vector<2x32xf32>
    %cst_136 = arith.constant 1.000000e+00 : f32
    %586 = vector.broadcast %cst_136 : f32 to vector<2x32xf32>
    %587 = arith.addf %586, %585 : vector<2x32xf32>
    %588 = arith.divf %586, %587 : vector<2x32xf32>
    %589 = vector.extract_strided_slice %576 {offsets = [0, 64], sizes = [2, 32], strides = [1, 1]} : vector<2x128xf32> to vector<2x32xf32>
    %590 = math.tanh %589 : vector<2x32xf32>
    %591 = vector.extract_strided_slice %576 {offsets = [0, 96], sizes = [2, 32], strides = [1, 1]} : vector<2x128xf32> to vector<2x32xf32>
    %592 = arith.negf %591 : vector<2x32xf32>
    %593 = math.exp %592 : vector<2x32xf32>
    %cst_137 = arith.constant 1.000000e+00 : f32
    %594 = vector.broadcast %cst_137 : f32 to vector<2x32xf32>
    %595 = arith.addf %594, %593 : vector<2x32xf32>
    %596 = arith.divf %594, %595 : vector<2x32xf32>
    %597 = arith.mulf %588, %541 : vector<2x32xf32>
    %598 = arith.mulf %582, %590 : vector<2x32xf32>
    %599 = arith.addf %597, %598 : vector<2x32xf32>
    %600 = math.tanh %599 : vector<2x32xf32>
    %601 = arith.mulf %596, %600 : vector<2x32xf32>
    %602 = vector.extract_strided_slice %509 {offsets = [12, 0], sizes = [2, 128], strides = [1, 1]} : vector<16x128xf32> to vector<2x128xf32>
    %603 = arith.truncf %572 : vector<2x32xf32> to vector<2x32xbf16>
    %cst_138 = arith.constant dense<0.000000e+00> : vector<2x128xf32>
    %604 = tpu.matmul %603, %510, %cst_138 {dimension_numbers = #tpu.dot_dimension_numbers<[1], [0], [0], [1], [0, 0, 1, 1], [], []>} : vector<2x32xbf16>, vector<32x128xbf16>, vector<2x128xf32> -> vector<2x128xf32>
    %605 = arith.addf %602, %604 : vector<2x128xf32>
    %606 = vector.extract_strided_slice %605 {offsets = [0, 0], sizes = [2, 32], strides = [1, 1]} : vector<2x128xf32> to vector<2x32xf32>
    %607 = arith.negf %606 : vector<2x32xf32>
    %608 = math.exp %607 : vector<2x32xf32>
    %cst_139 = arith.constant 1.000000e+00 : f32
    %609 = vector.broadcast %cst_139 : f32 to vector<2x32xf32>
    %610 = arith.addf %609, %608 : vector<2x32xf32>
    %611 = arith.divf %609, %610 : vector<2x32xf32>
    %612 = vector.extract_strided_slice %605 {offsets = [0, 32], sizes = [2, 32], strides = [1, 1]} : vector<2x128xf32> to vector<2x32xf32>
    %613 = arith.negf %612 : vector<2x32xf32>
    %614 = math.exp %613 : vector<2x32xf32>
    %cst_140 = arith.constant 1.000000e+00 : f32
    %615 = vector.broadcast %cst_140 : f32 to vector<2x32xf32>
    %616 = arith.addf %615, %614 : vector<2x32xf32>
    %617 = arith.divf %615, %616 : vector<2x32xf32>
    %618 = vector.extract_strided_slice %605 {offsets = [0, 64], sizes = [2, 32], strides = [1, 1]} : vector<2x128xf32> to vector<2x32xf32>
    %619 = math.tanh %618 : vector<2x32xf32>
    %620 = vector.extract_strided_slice %605 {offsets = [0, 96], sizes = [2, 32], strides = [1, 1]} : vector<2x128xf32> to vector<2x32xf32>
    %621 = arith.negf %620 : vector<2x32xf32>
    %622 = math.exp %621 : vector<2x32xf32>
    %cst_141 = arith.constant 1.000000e+00 : f32
    %623 = vector.broadcast %cst_141 : f32 to vector<2x32xf32>
    %624 = arith.addf %623, %622 : vector<2x32xf32>
    %625 = arith.divf %623, %624 : vector<2x32xf32>
    %626 = arith.mulf %617, %570 : vector<2x32xf32>
    %627 = arith.mulf %611, %619 : vector<2x32xf32>
    %628 = arith.addf %626, %627 : vector<2x32xf32>
    %629 = math.tanh %628 : vector<2x32xf32>
    %630 = arith.mulf %625, %629 : vector<2x32xf32>
    %631 = vector.extract_strided_slice %503 {offsets = [4, 0], sizes = [2, 128], strides = [1, 1]} : vector<16x128xf32> to vector<2x128xf32>
    %632 = arith.truncf %601 : vector<2x32xf32> to vector<2x32xbf16>
    %cst_142 = arith.constant dense<0.000000e+00> : vector<2x128xf32>
    %633 = tpu.matmul %632, %504, %cst_142 {dimension_numbers = #tpu.dot_dimension_numbers<[1], [0], [0], [1], [0, 0, 1, 1], [], []>} : vector<2x32xbf16>, vector<32x128xbf16>, vector<2x128xf32> -> vector<2x128xf32>
    %634 = arith.addf %631, %633 : vector<2x128xf32>
    %635 = vector.extract_strided_slice %634 {offsets = [0, 0], sizes = [2, 32], strides = [1, 1]} : vector<2x128xf32> to vector<2x32xf32>
    %636 = arith.negf %635 : vector<2x32xf32>
    %637 = math.exp %636 : vector<2x32xf32>
    %cst_143 = arith.constant 1.000000e+00 : f32
    %638 = vector.broadcast %cst_143 : f32 to vector<2x32xf32>
    %639 = arith.addf %638, %637 : vector<2x32xf32>
    %640 = arith.divf %638, %639 : vector<2x32xf32>
    %641 = vector.extract_strided_slice %634 {offsets = [0, 32], sizes = [2, 32], strides = [1, 1]} : vector<2x128xf32> to vector<2x32xf32>
    %642 = arith.negf %641 : vector<2x32xf32>
    %643 = math.exp %642 : vector<2x32xf32>
    %cst_144 = arith.constant 1.000000e+00 : f32
    %644 = vector.broadcast %cst_144 : f32 to vector<2x32xf32>
    %645 = arith.addf %644, %643 : vector<2x32xf32>
    %646 = arith.divf %644, %645 : vector<2x32xf32>
    %647 = vector.extract_strided_slice %634 {offsets = [0, 64], sizes = [2, 32], strides = [1, 1]} : vector<2x128xf32> to vector<2x32xf32>
    %648 = math.tanh %647 : vector<2x32xf32>
    %649 = vector.extract_strided_slice %634 {offsets = [0, 96], sizes = [2, 32], strides = [1, 1]} : vector<2x128xf32> to vector<2x32xf32>
    %650 = arith.negf %649 : vector<2x32xf32>
    %651 = math.exp %650 : vector<2x32xf32>
    %cst_145 = arith.constant 1.000000e+00 : f32
    %652 = vector.broadcast %cst_145 : f32 to vector<2x32xf32>
    %653 = arith.addf %652, %651 : vector<2x32xf32>
    %654 = arith.divf %652, %653 : vector<2x32xf32>
    %655 = arith.mulf %646, %599 : vector<2x32xf32>
    %656 = arith.mulf %640, %648 : vector<2x32xf32>
    %657 = arith.addf %655, %656 : vector<2x32xf32>
    %658 = math.tanh %657 : vector<2x32xf32>
    %659 = arith.mulf %654, %658 : vector<2x32xf32>
    %660 = vector.extract_strided_slice %509 {offsets = [10, 0], sizes = [2, 128], strides = [1, 1]} : vector<16x128xf32> to vector<2x128xf32>
    %661 = arith.truncf %630 : vector<2x32xf32> to vector<2x32xbf16>
    %cst_146 = arith.constant dense<0.000000e+00> : vector<2x128xf32>
    %662 = tpu.matmul %661, %510, %cst_146 {dimension_numbers = #tpu.dot_dimension_numbers<[1], [0], [0], [1], [0, 0, 1, 1], [], []>} : vector<2x32xbf16>, vector<32x128xbf16>, vector<2x128xf32> -> vector<2x128xf32>
    %663 = arith.addf %660, %662 : vector<2x128xf32>
    %664 = vector.extract_strided_slice %663 {offsets = [0, 0], sizes = [2, 32], strides = [1, 1]} : vector<2x128xf32> to vector<2x32xf32>
    %665 = arith.negf %664 : vector<2x32xf32>
    %666 = math.exp %665 : vector<2x32xf32>
    %cst_147 = arith.constant 1.000000e+00 : f32
    %667 = vector.broadcast %cst_147 : f32 to vector<2x32xf32>
    %668 = arith.addf %667, %666 : vector<2x32xf32>
    %669 = arith.divf %667, %668 : vector<2x32xf32>
    %670 = vector.extract_strided_slice %663 {offsets = [0, 32], sizes = [2, 32], strides = [1, 1]} : vector<2x128xf32> to vector<2x32xf32>
    %671 = arith.negf %670 : vector<2x32xf32>
    %672 = math.exp %671 : vector<2x32xf32>
    %cst_148 = arith.constant 1.000000e+00 : f32
    %673 = vector.broadcast %cst_148 : f32 to vector<2x32xf32>
    %674 = arith.addf %673, %672 : vector<2x32xf32>
    %675 = arith.divf %673, %674 : vector<2x32xf32>
    %676 = vector.extract_strided_slice %663 {offsets = [0, 64], sizes = [2, 32], strides = [1, 1]} : vector<2x128xf32> to vector<2x32xf32>
    %677 = math.tanh %676 : vector<2x32xf32>
    %678 = vector.extract_strided_slice %663 {offsets = [0, 96], sizes = [2, 32], strides = [1, 1]} : vector<2x128xf32> to vector<2x32xf32>
    %679 = arith.negf %678 : vector<2x32xf32>
    %680 = math.exp %679 : vector<2x32xf32>
    %cst_149 = arith.constant 1.000000e+00 : f32
    %681 = vector.broadcast %cst_149 : f32 to vector<2x32xf32>
    %682 = arith.addf %681, %680 : vector<2x32xf32>
    %683 = arith.divf %681, %682 : vector<2x32xf32>
    %684 = arith.mulf %675, %628 : vector<2x32xf32>
    %685 = arith.mulf %669, %677 : vector<2x32xf32>
    %686 = arith.addf %684, %685 : vector<2x32xf32>
    %687 = math.tanh %686 : vector<2x32xf32>
    %688 = arith.mulf %683, %687 : vector<2x32xf32>
    %689 = vector.extract_strided_slice %503 {offsets = [6, 0], sizes = [2, 128], strides = [1, 1]} : vector<16x128xf32> to vector<2x128xf32>
    %690 = arith.truncf %659 : vector<2x32xf32> to vector<2x32xbf16>
    %cst_150 = arith.constant dense<0.000000e+00> : vector<2x128xf32>
    %691 = tpu.matmul %690, %504, %cst_150 {dimension_numbers = #tpu.dot_dimension_numbers<[1], [0], [0], [1], [0, 0, 1, 1], [], []>} : vector<2x32xbf16>, vector<32x128xbf16>, vector<2x128xf32> -> vector<2x128xf32>
    %692 = arith.addf %689, %691 : vector<2x128xf32>
    %693 = vector.extract_strided_slice %692 {offsets = [0, 0], sizes = [2, 32], strides = [1, 1]} : vector<2x128xf32> to vector<2x32xf32>
    %694 = arith.negf %693 : vector<2x32xf32>
    %695 = math.exp %694 : vector<2x32xf32>
    %cst_151 = arith.constant 1.000000e+00 : f32
    %696 = vector.broadcast %cst_151 : f32 to vector<2x32xf32>
    %697 = arith.addf %696, %695 : vector<2x32xf32>
    %698 = arith.divf %696, %697 : vector<2x32xf32>
    %699 = vector.extract_strided_slice %692 {offsets = [0, 32], sizes = [2, 32], strides = [1, 1]} : vector<2x128xf32> to vector<2x32xf32>
    %700 = arith.negf %699 : vector<2x32xf32>
    %701 = math.exp %700 : vector<2x32xf32>
    %cst_152 = arith.constant 1.000000e+00 : f32
    %702 = vector.broadcast %cst_152 : f32 to vector<2x32xf32>
    %703 = arith.addf %702, %701 : vector<2x32xf32>
    %704 = arith.divf %702, %703 : vector<2x32xf32>
    %705 = vector.extract_strided_slice %692 {offsets = [0, 64], sizes = [2, 32], strides = [1, 1]} : vector<2x128xf32> to vector<2x32xf32>
    %706 = math.tanh %705 : vector<2x32xf32>
    %707 = vector.extract_strided_slice %692 {offsets = [0, 96], sizes = [2, 32], strides = [1, 1]} : vector<2x128xf32> to vector<2x32xf32>
    %708 = arith.negf %707 : vector<2x32xf32>
    %709 = math.exp %708 : vector<2x32xf32>
    %cst_153 = arith.constant 1.000000e+00 : f32
    %710 = vector.broadcast %cst_153 : f32 to vector<2x32xf32>
    %711 = arith.addf %710, %709 : vector<2x32xf32>
    %712 = arith.divf %710, %711 : vector<2x32xf32>
    %713 = arith.mulf %704, %657 : vector<2x32xf32>
    %714 = arith.mulf %698, %706 : vector<2x32xf32>
    %715 = arith.addf %713, %714 : vector<2x32xf32>
    %716 = math.tanh %715 : vector<2x32xf32>
    %717 = arith.mulf %712, %716 : vector<2x32xf32>
    %718 = vector.extract_strided_slice %509 {offsets = [8, 0], sizes = [2, 128], strides = [1, 1]} : vector<16x128xf32> to vector<2x128xf32>
    %719 = arith.truncf %688 : vector<2x32xf32> to vector<2x32xbf16>
    %cst_154 = arith.constant dense<0.000000e+00> : vector<2x128xf32>
    %720 = tpu.matmul %719, %510, %cst_154 {dimension_numbers = #tpu.dot_dimension_numbers<[1], [0], [0], [1], [0, 0, 1, 1], [], []>} : vector<2x32xbf16>, vector<32x128xbf16>, vector<2x128xf32> -> vector<2x128xf32>
    %721 = arith.addf %718, %720 : vector<2x128xf32>
    %722 = vector.extract_strided_slice %721 {offsets = [0, 0], sizes = [2, 32], strides = [1, 1]} : vector<2x128xf32> to vector<2x32xf32>
    %723 = arith.negf %722 : vector<2x32xf32>
    %724 = math.exp %723 : vector<2x32xf32>
    %cst_155 = arith.constant 1.000000e+00 : f32
    %725 = vector.broadcast %cst_155 : f32 to vector<2x32xf32>
    %726 = arith.addf %725, %724 : vector<2x32xf32>
    %727 = arith.divf %725, %726 : vector<2x32xf32>
    %728 = vector.extract_strided_slice %721 {offsets = [0, 32], sizes = [2, 32], strides = [1, 1]} : vector<2x128xf32> to vector<2x32xf32>
    %729 = arith.negf %728 : vector<2x32xf32>
    %730 = math.exp %729 : vector<2x32xf32>
    %cst_156 = arith.constant 1.000000e+00 : f32
    %731 = vector.broadcast %cst_156 : f32 to vector<2x32xf32>
    %732 = arith.addf %731, %730 : vector<2x32xf32>
    %733 = arith.divf %731, %732 : vector<2x32xf32>
    %734 = vector.extract_strided_slice %721 {offsets = [0, 64], sizes = [2, 32], strides = [1, 1]} : vector<2x128xf32> to vector<2x32xf32>
    %735 = math.tanh %734 : vector<2x32xf32>
    %736 = vector.extract_strided_slice %721 {offsets = [0, 96], sizes = [2, 32], strides = [1, 1]} : vector<2x128xf32> to vector<2x32xf32>
    %737 = arith.negf %736 : vector<2x32xf32>
    %738 = math.exp %737 : vector<2x32xf32>
    %cst_157 = arith.constant 1.000000e+00 : f32
    %739 = vector.broadcast %cst_157 : f32 to vector<2x32xf32>
    %740 = arith.addf %739, %738 : vector<2x32xf32>
    %741 = arith.divf %739, %740 : vector<2x32xf32>
    %742 = arith.mulf %733, %686 : vector<2x32xf32>
    %743 = arith.mulf %727, %735 : vector<2x32xf32>
    %744 = arith.addf %742, %743 : vector<2x32xf32>
    %745 = math.tanh %744 : vector<2x32xf32>
    %746 = arith.mulf %741, %745 : vector<2x32xf32>
    %747 = vector.extract_strided_slice %503 {offsets = [8, 0], sizes = [2, 128], strides = [1, 1]} : vector<16x128xf32> to vector<2x128xf32>
    %748 = arith.truncf %717 : vector<2x32xf32> to vector<2x32xbf16>
    %cst_158 = arith.constant dense<0.000000e+00> : vector<2x128xf32>
    %749 = tpu.matmul %748, %504, %cst_158 {dimension_numbers = #tpu.dot_dimension_numbers<[1], [0], [0], [1], [0, 0, 1, 1], [], []>} : vector<2x32xbf16>, vector<32x128xbf16>, vector<2x128xf32> -> vector<2x128xf32>
    %750 = arith.addf %747, %749 : vector<2x128xf32>
    %751 = vector.extract_strided_slice %750 {offsets = [0, 0], sizes = [2, 32], strides = [1, 1]} : vector<2x128xf32> to vector<2x32xf32>
    %752 = arith.negf %751 : vector<2x32xf32>
    %753 = math.exp %752 : vector<2x32xf32>
    %cst_159 = arith.constant 1.000000e+00 : f32
    %754 = vector.broadcast %cst_159 : f32 to vector<2x32xf32>
    %755 = arith.addf %754, %753 : vector<2x32xf32>
    %756 = arith.divf %754, %755 : vector<2x32xf32>
    %757 = vector.extract_strided_slice %750 {offsets = [0, 32], sizes = [2, 32], strides = [1, 1]} : vector<2x128xf32> to vector<2x32xf32>
    %758 = arith.negf %757 : vector<2x32xf32>
    %759 = math.exp %758 : vector<2x32xf32>
    %cst_160 = arith.constant 1.000000e+00 : f32
    %760 = vector.broadcast %cst_160 : f32 to vector<2x32xf32>
    %761 = arith.addf %760, %759 : vector<2x32xf32>
    %762 = arith.divf %760, %761 : vector<2x32xf32>
    %763 = vector.extract_strided_slice %750 {offsets = [0, 64], sizes = [2, 32], strides = [1, 1]} : vector<2x128xf32> to vector<2x32xf32>
    %764 = math.tanh %763 : vector<2x32xf32>
    %765 = vector.extract_strided_slice %750 {offsets = [0, 96], sizes = [2, 32], strides = [1, 1]} : vector<2x128xf32> to vector<2x32xf32>
    %766 = arith.negf %765 : vector<2x32xf32>
    %767 = math.exp %766 : vector<2x32xf32>
    %cst_161 = arith.constant 1.000000e+00 : f32
    %768 = vector.broadcast %cst_161 : f32 to vector<2x32xf32>
    %769 = arith.addf %768, %767 : vector<2x32xf32>
    %770 = arith.divf %768, %769 : vector<2x32xf32>
    %771 = arith.mulf %762, %715 : vector<2x32xf32>
    %772 = arith.mulf %756, %764 : vector<2x32xf32>
    %773 = arith.addf %771, %772 : vector<2x32xf32>
    %774 = math.tanh %773 : vector<2x32xf32>
    %775 = arith.mulf %770, %774 : vector<2x32xf32>
    %776 = vector.extract_strided_slice %509 {offsets = [6, 0], sizes = [2, 128], strides = [1, 1]} : vector<16x128xf32> to vector<2x128xf32>
    %777 = arith.truncf %746 : vector<2x32xf32> to vector<2x32xbf16>
    %cst_162 = arith.constant dense<0.000000e+00> : vector<2x128xf32>
    %778 = tpu.matmul %777, %510, %cst_162 {dimension_numbers = #tpu.dot_dimension_numbers<[1], [0], [0], [1], [0, 0, 1, 1], [], []>} : vector<2x32xbf16>, vector<32x128xbf16>, vector<2x128xf32> -> vector<2x128xf32>
    %779 = arith.addf %776, %778 : vector<2x128xf32>
    %780 = vector.extract_strided_slice %779 {offsets = [0, 0], sizes = [2, 32], strides = [1, 1]} : vector<2x128xf32> to vector<2x32xf32>
    %781 = arith.negf %780 : vector<2x32xf32>
    %782 = math.exp %781 : vector<2x32xf32>
    %cst_163 = arith.constant 1.000000e+00 : f32
    %783 = vector.broadcast %cst_163 : f32 to vector<2x32xf32>
    %784 = arith.addf %783, %782 : vector<2x32xf32>
    %785 = arith.divf %783, %784 : vector<2x32xf32>
    %786 = vector.extract_strided_slice %779 {offsets = [0, 32], sizes = [2, 32], strides = [1, 1]} : vector<2x128xf32> to vector<2x32xf32>
    %787 = arith.negf %786 : vector<2x32xf32>
    %788 = math.exp %787 : vector<2x32xf32>
    %cst_164 = arith.constant 1.000000e+00 : f32
    %789 = vector.broadcast %cst_164 : f32 to vector<2x32xf32>
    %790 = arith.addf %789, %788 : vector<2x32xf32>
    %791 = arith.divf %789, %790 : vector<2x32xf32>
    %792 = vector.extract_strided_slice %779 {offsets = [0, 64], sizes = [2, 32], strides = [1, 1]} : vector<2x128xf32> to vector<2x32xf32>
    %793 = math.tanh %792 : vector<2x32xf32>
    %794 = vector.extract_strided_slice %779 {offsets = [0, 96], sizes = [2, 32], strides = [1, 1]} : vector<2x128xf32> to vector<2x32xf32>
    %795 = arith.negf %794 : vector<2x32xf32>
    %796 = math.exp %795 : vector<2x32xf32>
    %cst_165 = arith.constant 1.000000e+00 : f32
    %797 = vector.broadcast %cst_165 : f32 to vector<2x32xf32>
    %798 = arith.addf %797, %796 : vector<2x32xf32>
    %799 = arith.divf %797, %798 : vector<2x32xf32>
    %800 = arith.mulf %791, %744 : vector<2x32xf32>
    %801 = arith.mulf %785, %793 : vector<2x32xf32>
    %802 = arith.addf %800, %801 : vector<2x32xf32>
    %803 = math.tanh %802 : vector<2x32xf32>
    %804 = arith.mulf %799, %803 : vector<2x32xf32>
    %805 = vector.extract_strided_slice %503 {offsets = [10, 0], sizes = [2, 128], strides = [1, 1]} : vector<16x128xf32> to vector<2x128xf32>
    %806 = arith.truncf %775 : vector<2x32xf32> to vector<2x32xbf16>
    %cst_166 = arith.constant dense<0.000000e+00> : vector<2x128xf32>
    %807 = tpu.matmul %806, %504, %cst_166 {dimension_numbers = #tpu.dot_dimension_numbers<[1], [0], [0], [1], [0, 0, 1, 1], [], []>} : vector<2x32xbf16>, vector<32x128xbf16>, vector<2x128xf32> -> vector<2x128xf32>
    %808 = arith.addf %805, %807 : vector<2x128xf32>
    %809 = vector.extract_strided_slice %808 {offsets = [0, 0], sizes = [2, 32], strides = [1, 1]} : vector<2x128xf32> to vector<2x32xf32>
    %810 = arith.negf %809 : vector<2x32xf32>
    %811 = math.exp %810 : vector<2x32xf32>
    %cst_167 = arith.constant 1.000000e+00 : f32
    %812 = vector.broadcast %cst_167 : f32 to vector<2x32xf32>
    %813 = arith.addf %812, %811 : vector<2x32xf32>
    %814 = arith.divf %812, %813 : vector<2x32xf32>
    %815 = vector.extract_strided_slice %808 {offsets = [0, 32], sizes = [2, 32], strides = [1, 1]} : vector<2x128xf32> to vector<2x32xf32>
    %816 = arith.negf %815 : vector<2x32xf32>
    %817 = math.exp %816 : vector<2x32xf32>
    %cst_168 = arith.constant 1.000000e+00 : f32
    %818 = vector.broadcast %cst_168 : f32 to vector<2x32xf32>
    %819 = arith.addf %818, %817 : vector<2x32xf32>
    %820 = arith.divf %818, %819 : vector<2x32xf32>
    %821 = vector.extract_strided_slice %808 {offsets = [0, 64], sizes = [2, 32], strides = [1, 1]} : vector<2x128xf32> to vector<2x32xf32>
    %822 = math.tanh %821 : vector<2x32xf32>
    %823 = vector.extract_strided_slice %808 {offsets = [0, 96], sizes = [2, 32], strides = [1, 1]} : vector<2x128xf32> to vector<2x32xf32>
    %824 = arith.negf %823 : vector<2x32xf32>
    %825 = math.exp %824 : vector<2x32xf32>
    %cst_169 = arith.constant 1.000000e+00 : f32
    %826 = vector.broadcast %cst_169 : f32 to vector<2x32xf32>
    %827 = arith.addf %826, %825 : vector<2x32xf32>
    %828 = arith.divf %826, %827 : vector<2x32xf32>
    %829 = arith.mulf %820, %773 : vector<2x32xf32>
    %830 = arith.mulf %814, %822 : vector<2x32xf32>
    %831 = arith.addf %829, %830 : vector<2x32xf32>
    %832 = math.tanh %831 : vector<2x32xf32>
    %833 = arith.mulf %828, %832 : vector<2x32xf32>
    %834 = vector.extract_strided_slice %509 {offsets = [4, 0], sizes = [2, 128], strides = [1, 1]} : vector<16x128xf32> to vector<2x128xf32>
    %835 = arith.truncf %804 : vector<2x32xf32> to vector<2x32xbf16>
    %cst_170 = arith.constant dense<0.000000e+00> : vector<2x128xf32>
    %836 = tpu.matmul %835, %510, %cst_170 {dimension_numbers = #tpu.dot_dimension_numbers<[1], [0], [0], [1], [0, 0, 1, 1], [], []>} : vector<2x32xbf16>, vector<32x128xbf16>, vector<2x128xf32> -> vector<2x128xf32>
    %837 = arith.addf %834, %836 : vector<2x128xf32>
    %838 = vector.extract_strided_slice %837 {offsets = [0, 0], sizes = [2, 32], strides = [1, 1]} : vector<2x128xf32> to vector<2x32xf32>
    %839 = arith.negf %838 : vector<2x32xf32>
    %840 = math.exp %839 : vector<2x32xf32>
    %cst_171 = arith.constant 1.000000e+00 : f32
    %841 = vector.broadcast %cst_171 : f32 to vector<2x32xf32>
    %842 = arith.addf %841, %840 : vector<2x32xf32>
    %843 = arith.divf %841, %842 : vector<2x32xf32>
    %844 = vector.extract_strided_slice %837 {offsets = [0, 32], sizes = [2, 32], strides = [1, 1]} : vector<2x128xf32> to vector<2x32xf32>
    %845 = arith.negf %844 : vector<2x32xf32>
    %846 = math.exp %845 : vector<2x32xf32>
    %cst_172 = arith.constant 1.000000e+00 : f32
    %847 = vector.broadcast %cst_172 : f32 to vector<2x32xf32>
    %848 = arith.addf %847, %846 : vector<2x32xf32>
    %849 = arith.divf %847, %848 : vector<2x32xf32>
    %850 = vector.extract_strided_slice %837 {offsets = [0, 64], sizes = [2, 32], strides = [1, 1]} : vector<2x128xf32> to vector<2x32xf32>
    %851 = math.tanh %850 : vector<2x32xf32>
    %852 = vector.extract_strided_slice %837 {offsets = [0, 96], sizes = [2, 32], strides = [1, 1]} : vector<2x128xf32> to vector<2x32xf32>
    %853 = arith.negf %852 : vector<2x32xf32>
    %854 = math.exp %853 : vector<2x32xf32>
    %cst_173 = arith.constant 1.000000e+00 : f32
    %855 = vector.broadcast %cst_173 : f32 to vector<2x32xf32>
    %856 = arith.addf %855, %854 : vector<2x32xf32>
    %857 = arith.divf %855, %856 : vector<2x32xf32>
    %858 = arith.mulf %849, %802 : vector<2x32xf32>
    %859 = arith.mulf %843, %851 : vector<2x32xf32>
    %860 = arith.addf %858, %859 : vector<2x32xf32>
    %861 = math.tanh %860 : vector<2x32xf32>
    %862 = arith.mulf %857, %861 : vector<2x32xf32>
    %863 = vector.extract_strided_slice %503 {offsets = [12, 0], sizes = [2, 128], strides = [1, 1]} : vector<16x128xf32> to vector<2x128xf32>
    %864 = arith.truncf %833 : vector<2x32xf32> to vector<2x32xbf16>
    %cst_174 = arith.constant dense<0.000000e+00> : vector<2x128xf32>
    %865 = tpu.matmul %864, %504, %cst_174 {dimension_numbers = #tpu.dot_dimension_numbers<[1], [0], [0], [1], [0, 0, 1, 1], [], []>} : vector<2x32xbf16>, vector<32x128xbf16>, vector<2x128xf32> -> vector<2x128xf32>
    %866 = arith.addf %863, %865 : vector<2x128xf32>
    %867 = vector.extract_strided_slice %866 {offsets = [0, 0], sizes = [2, 32], strides = [1, 1]} : vector<2x128xf32> to vector<2x32xf32>
    %868 = arith.negf %867 : vector<2x32xf32>
    %869 = math.exp %868 : vector<2x32xf32>
    %cst_175 = arith.constant 1.000000e+00 : f32
    %870 = vector.broadcast %cst_175 : f32 to vector<2x32xf32>
    %871 = arith.addf %870, %869 : vector<2x32xf32>
    %872 = arith.divf %870, %871 : vector<2x32xf32>
    %873 = vector.extract_strided_slice %866 {offsets = [0, 32], sizes = [2, 32], strides = [1, 1]} : vector<2x128xf32> to vector<2x32xf32>
    %874 = arith.negf %873 : vector<2x32xf32>
    %875 = math.exp %874 : vector<2x32xf32>
    %cst_176 = arith.constant 1.000000e+00 : f32
    %876 = vector.broadcast %cst_176 : f32 to vector<2x32xf32>
    %877 = arith.addf %876, %875 : vector<2x32xf32>
    %878 = arith.divf %876, %877 : vector<2x32xf32>
    %879 = vector.extract_strided_slice %866 {offsets = [0, 64], sizes = [2, 32], strides = [1, 1]} : vector<2x128xf32> to vector<2x32xf32>
    %880 = math.tanh %879 : vector<2x32xf32>
    %881 = vector.extract_strided_slice %866 {offsets = [0, 96], sizes = [2, 32], strides = [1, 1]} : vector<2x128xf32> to vector<2x32xf32>
    %882 = arith.negf %881 : vector<2x32xf32>
    %883 = math.exp %882 : vector<2x32xf32>
    %cst_177 = arith.constant 1.000000e+00 : f32
    %884 = vector.broadcast %cst_177 : f32 to vector<2x32xf32>
    %885 = arith.addf %884, %883 : vector<2x32xf32>
    %886 = arith.divf %884, %885 : vector<2x32xf32>
    %887 = arith.mulf %878, %831 : vector<2x32xf32>
    %888 = arith.mulf %872, %880 : vector<2x32xf32>
    %889 = arith.addf %887, %888 : vector<2x32xf32>
    %890 = math.tanh %889 : vector<2x32xf32>
    %891 = arith.mulf %886, %890 : vector<2x32xf32>
    %892 = vector.extract_strided_slice %509 {offsets = [2, 0], sizes = [2, 128], strides = [1, 1]} : vector<16x128xf32> to vector<2x128xf32>
    %893 = arith.truncf %862 : vector<2x32xf32> to vector<2x32xbf16>
    %cst_178 = arith.constant dense<0.000000e+00> : vector<2x128xf32>
    %894 = tpu.matmul %893, %510, %cst_178 {dimension_numbers = #tpu.dot_dimension_numbers<[1], [0], [0], [1], [0, 0, 1, 1], [], []>} : vector<2x32xbf16>, vector<32x128xbf16>, vector<2x128xf32> -> vector<2x128xf32>
    %895 = arith.addf %892, %894 : vector<2x128xf32>
    %896 = vector.extract_strided_slice %895 {offsets = [0, 0], sizes = [2, 32], strides = [1, 1]} : vector<2x128xf32> to vector<2x32xf32>
    %897 = arith.negf %896 : vector<2x32xf32>
    %898 = math.exp %897 : vector<2x32xf32>
    %cst_179 = arith.constant 1.000000e+00 : f32
    %899 = vector.broadcast %cst_179 : f32 to vector<2x32xf32>
    %900 = arith.addf %899, %898 : vector<2x32xf32>
    %901 = arith.divf %899, %900 : vector<2x32xf32>
    %902 = vector.extract_strided_slice %895 {offsets = [0, 32], sizes = [2, 32], strides = [1, 1]} : vector<2x128xf32> to vector<2x32xf32>
    %903 = arith.negf %902 : vector<2x32xf32>
    %904 = math.exp %903 : vector<2x32xf32>
    %cst_180 = arith.constant 1.000000e+00 : f32
    %905 = vector.broadcast %cst_180 : f32 to vector<2x32xf32>
    %906 = arith.addf %905, %904 : vector<2x32xf32>
    %907 = arith.divf %905, %906 : vector<2x32xf32>
    %908 = vector.extract_strided_slice %895 {offsets = [0, 64], sizes = [2, 32], strides = [1, 1]} : vector<2x128xf32> to vector<2x32xf32>
    %909 = math.tanh %908 : vector<2x32xf32>
    %910 = vector.extract_strided_slice %895 {offsets = [0, 96], sizes = [2, 32], strides = [1, 1]} : vector<2x128xf32> to vector<2x32xf32>
    %911 = arith.negf %910 : vector<2x32xf32>
    %912 = math.exp %911 : vector<2x32xf32>
    %cst_181 = arith.constant 1.000000e+00 : f32
    %913 = vector.broadcast %cst_181 : f32 to vector<2x32xf32>
    %914 = arith.addf %913, %912 : vector<2x32xf32>
    %915 = arith.divf %913, %914 : vector<2x32xf32>
    %916 = arith.mulf %907, %860 : vector<2x32xf32>
    %917 = arith.mulf %901, %909 : vector<2x32xf32>
    %918 = arith.addf %916, %917 : vector<2x32xf32>
    %919 = math.tanh %918 : vector<2x32xf32>
    %920 = arith.mulf %915, %919 : vector<2x32xf32>
    %921 = vector.extract_strided_slice %503 {offsets = [14, 0], sizes = [2, 128], strides = [1, 1]} : vector<16x128xf32> to vector<2x128xf32>
    %922 = arith.truncf %891 : vector<2x32xf32> to vector<2x32xbf16>
    %cst_182 = arith.constant dense<0.000000e+00> : vector<2x128xf32>
    %923 = tpu.matmul %922, %504, %cst_182 {dimension_numbers = #tpu.dot_dimension_numbers<[1], [0], [0], [1], [0, 0, 1, 1], [], []>} : vector<2x32xbf16>, vector<32x128xbf16>, vector<2x128xf32> -> vector<2x128xf32>
    %924 = arith.addf %921, %923 : vector<2x128xf32>
    %925 = vector.extract_strided_slice %924 {offsets = [0, 0], sizes = [2, 32], strides = [1, 1]} : vector<2x128xf32> to vector<2x32xf32>
    %926 = arith.negf %925 : vector<2x32xf32>
    %927 = math.exp %926 : vector<2x32xf32>
    %cst_183 = arith.constant 1.000000e+00 : f32
    %928 = vector.broadcast %cst_183 : f32 to vector<2x32xf32>
    %929 = arith.addf %928, %927 : vector<2x32xf32>
    %930 = arith.divf %928, %929 : vector<2x32xf32>
    %931 = vector.extract_strided_slice %924 {offsets = [0, 32], sizes = [2, 32], strides = [1, 1]} : vector<2x128xf32> to vector<2x32xf32>
    %932 = arith.negf %931 : vector<2x32xf32>
    %933 = math.exp %932 : vector<2x32xf32>
    %cst_184 = arith.constant 1.000000e+00 : f32
    %934 = vector.broadcast %cst_184 : f32 to vector<2x32xf32>
    %935 = arith.addf %934, %933 : vector<2x32xf32>
    %936 = arith.divf %934, %935 : vector<2x32xf32>
    %937 = vector.extract_strided_slice %924 {offsets = [0, 64], sizes = [2, 32], strides = [1, 1]} : vector<2x128xf32> to vector<2x32xf32>
    %938 = math.tanh %937 : vector<2x32xf32>
    %939 = vector.extract_strided_slice %924 {offsets = [0, 96], sizes = [2, 32], strides = [1, 1]} : vector<2x128xf32> to vector<2x32xf32>
    %940 = arith.negf %939 : vector<2x32xf32>
    %941 = math.exp %940 : vector<2x32xf32>
    %cst_185 = arith.constant 1.000000e+00 : f32
    %942 = vector.broadcast %cst_185 : f32 to vector<2x32xf32>
    %943 = arith.addf %942, %941 : vector<2x32xf32>
    %944 = arith.divf %942, %943 : vector<2x32xf32>
    %945 = arith.mulf %936, %889 : vector<2x32xf32>
    %946 = arith.mulf %930, %938 : vector<2x32xf32>
    %947 = arith.addf %945, %946 : vector<2x32xf32>
    %948 = math.tanh %947 : vector<2x32xf32>
    %949 = arith.mulf %944, %948 : vector<2x32xf32>
    %950 = vector.extract_strided_slice %509 {offsets = [0, 0], sizes = [2, 128], strides = [1, 1]} : vector<16x128xf32> to vector<2x128xf32>
    %951 = arith.truncf %920 : vector<2x32xf32> to vector<2x32xbf16>
    %cst_186 = arith.constant dense<0.000000e+00> : vector<2x128xf32>
    %952 = tpu.matmul %951, %510, %cst_186 {dimension_numbers = #tpu.dot_dimension_numbers<[1], [0], [0], [1], [0, 0, 1, 1], [], []>} : vector<2x32xbf16>, vector<32x128xbf16>, vector<2x128xf32> -> vector<2x128xf32>
    %953 = arith.addf %950, %952 : vector<2x128xf32>
    %954 = vector.extract_strided_slice %953 {offsets = [0, 0], sizes = [2, 32], strides = [1, 1]} : vector<2x128xf32> to vector<2x32xf32>
    %955 = arith.negf %954 : vector<2x32xf32>
    %956 = math.exp %955 : vector<2x32xf32>
    %cst_187 = arith.constant 1.000000e+00 : f32
    %957 = vector.broadcast %cst_187 : f32 to vector<2x32xf32>
    %958 = arith.addf %957, %956 : vector<2x32xf32>
    %959 = arith.divf %957, %958 : vector<2x32xf32>
    %960 = vector.extract_strided_slice %953 {offsets = [0, 32], sizes = [2, 32], strides = [1, 1]} : vector<2x128xf32> to vector<2x32xf32>
    %961 = arith.negf %960 : vector<2x32xf32>
    %962 = math.exp %961 : vector<2x32xf32>
    %cst_188 = arith.constant 1.000000e+00 : f32
    %963 = vector.broadcast %cst_188 : f32 to vector<2x32xf32>
    %964 = arith.addf %963, %962 : vector<2x32xf32>
    %965 = arith.divf %963, %964 : vector<2x32xf32>
    %966 = vector.extract_strided_slice %953 {offsets = [0, 64], sizes = [2, 32], strides = [1, 1]} : vector<2x128xf32> to vector<2x32xf32>
    %967 = math.tanh %966 : vector<2x32xf32>
    %968 = vector.extract_strided_slice %953 {offsets = [0, 96], sizes = [2, 32], strides = [1, 1]} : vector<2x128xf32> to vector<2x32xf32>
    %969 = arith.negf %968 : vector<2x32xf32>
    %970 = math.exp %969 : vector<2x32xf32>
    %cst_189 = arith.constant 1.000000e+00 : f32
    %971 = vector.broadcast %cst_189 : f32 to vector<2x32xf32>
    %972 = arith.addf %971, %970 : vector<2x32xf32>
    %973 = arith.divf %971, %972 : vector<2x32xf32>
    %974 = arith.mulf %965, %918 : vector<2x32xf32>
    %975 = arith.mulf %959, %967 : vector<2x32xf32>
    %976 = arith.addf %974, %975 : vector<2x32xf32>
    %977 = math.tanh %976 : vector<2x32xf32>
    %978 = arith.mulf %973, %977 : vector<2x32xf32>
    %979 = tpu.concatenate %949, %978 in 1 : vector<2x32xf32>, vector<2x32xf32> -> vector<2x64xf32>
    %980 = arith.truncf %979 : vector<2x64xf32> to vector<2x64xbf16>
    %c0_190 = arith.constant 0 : index
    %c0_191 = arith.constant 0 : index
    %981 = vector.load %arg13[%c0_190, %c0_191] : memref<64x4xbf16, #tpu.memory_space<vmem>>, vector<64x4xbf16>
    %cst_192 = arith.constant dense<0.000000e+00> : vector<2x4xf32>
    %982 = tpu.matmul %980, %981, %cst_192 {dimension_numbers = #tpu.dot_dimension_numbers<[1], [0], [0], [1], [0, 0, 1, 1], [], []>} : vector<2x64xbf16>, vector<64x4xbf16>, vector<2x4xf32> -> vector<2x4xf32>
    %c0_193 = arith.constant 0 : index
    %c0_194 = arith.constant 0 : index
    %983 = vector.load %arg14[%c0_193, %c0_194] : memref<1x4xf32, #tpu.memory_space<vmem>>, vector<1x4xf32>
    %984 = vector.broadcast %983 : vector<1x4xf32> to vector<2x4xf32>
    %985 = arith.addf %982, %984 : vector<2x4xf32>
    %c0_195 = arith.constant 0 : index
    %c0_196 = arith.constant 0 : index
    %986 = vector.load %arg15[%c0_195, %c0_196] : memref<2x4xf32, #tpu.memory_space<vmem>>, vector<2x4xf32>
    tpu.vector_store %arg15[%c0_195, %c0_196], %985 {strides = array<i32>} : memref<2x4xf32, #tpu.memory_space<vmem>>, vector<2x4xf32>,
    return
  }
}

</mosaic_0001>

<bundles_post_ra>
// kernel: tpu_custom_call.1
= control target key start
LH: loop header
LB: loop body
LE: loop exit
PB: predicated region body
PF: predicated region fallthrough
CT: control target
= control target key end

     0   :  { %20 = vsyncpa [#allocation5], 0  ;;  %s5226_s0 = inlined_call_operand.hbm [shape: bf16[16,82], index: 0, kind: input, shape index: {}]   ;;  %s5227_s1 = inlined_call_operand.hbm [shape: bf16[82,128], index: 1, kind: input, shape index: {}]   ;;  %s5228_s2 = inlined_call_operand.hbm [shape: bf16[32,128], index: 2, kind: input, shape index: {}]   ;;  %s5229_s3 = inlined_call_operand.hbm [shape: f32[1,128], index: 3, kind: input, shape index: {}]   ;;  %s5230_s4 = inlined_call_operand.hbm [shape: bf16[82,128], index: 4, kind: input, shape index: {}]   ;;  %s5231_s5 = inlined_call_operand.hbm [shape: bf16[32,128], index: 5, kind: input, shape index: {}]   ;;  %s5232_s6 = inlined_call_operand.hbm [shape: f32[1,128], index: 6, kind: input, shape index: {}]   ;;  %s5233_s7 = inlined_call_operand.vmem [shape: bf16[64,128], index: 7, kind: input, shape index: {}]   ;;  %s5234_s8 = inlined_call_operand.vmem [shape: bf16[32,128], index: 8, kind: input, shape index: {}]   ;;  %s5235_s9 = inlined_call_operand.hbm [shape: f32[1,128], index: 9, kind: input, shape index: {}]   ;;  %s5236_s10 = inlined_call_operand.hbm [shape: bf16[64,128], index: 10, kind: input, shape index: {}]   ;;  %s5237_s11 = inlined_call_operand.hbm [shape: bf16[32,128], index: 11, kind: input, shape index: {}]   ;;  %s5238_s12 = inlined_call_operand.vmem [shape: f32[1,128], index: 12, kind: input, shape index: {}]   ;;  %s5239_s13 = inlined_call_operand.vmem [shape: bf16[64,4], index: 13, kind: input, shape index: {}]   ;;  %s5240_s14 = inlined_call_operand.vmem [shape: f32[1,4], index: 14, kind: input, shape index: {}]   ;;  %s5241_s15 = inlined_call_operand.hbm [shape: f32[2,4], index: 15, kind: output, shape index: {}]  }
   0x1   :  { %21 = vsyncpa [#allocation8], 0 }
   0x2   :  { %22 = vsyncpa [#allocation11], 0 }
   0x3   :  { %23 = vsyncpa [#allocation14], 0 }
   0x4   :  { %24 = vsyncpa [#allocation17], 0 }
   0x5   :  { %25 = vsyncpa [#allocation20], 0 }
   0x6   :  { %26 = vsyncpa [#allocation6], 0  ;;  %s4370_s18 = smov [#allocation7]   ;;  %s4371_s20 = smov [#allocation10]  }
   0x7   :  { %s44_s19 = sshll.u32 %s4370_s18, 4  ;;  %s69_s21 = sshll.u32 %s4371_s20, 4  ;;  %s45_s19 = int_to_ptr.vmem [resolvable:$true] %s44_s19  ;;  %s70_s21 = int_to_ptr.vmem [resolvable:$true] %s69_s21 }
   0x8   :  { %s4144_s22 = scalar_lea.vmem %s45_s19, 704  ;;  %p4149_p1 = scmp.lt.s32.totalorder %s45_s19, %s45_s19 }
   0x9   :  { %p4145_p0 = scmp.ne.s32.totalorder %s45_s19, %s4144_s22  ;;  %p4150_p2 = scmp.lt.s32.totalorder %s4144_s22, %s4144_s22 }
   0xb   :  { %p4151_p3 = por %p4150_p2, %p4149_p1 }
   0xd   :  { %p4152_p4 = pnand %p4151_p3, %p4145_p0 }
   0xf   :  { %4155 = shalt.err (!%p4152_p4)
}
  0x10   :  { %s4372_s23 = smov 64   ;;  %s4373_s24 = smov 4  }
  0x11   :  { %50 = dma.hbm_to_vmem [thread:$0]  %s5227_s1, 704, %s45_s19, [#allocation8], %s4372_s23, %s4372_s23, %s4373_s24  }
  0x12   :  { %s4164_s27 = scalar_lea.vmem %s70_s21, 16  ;;  %s4168_s28 = scalar_lea.vmem %s70_s21, 32 }
  0x13   :  { %p4165_p5 = scmp.ne.s32.totalorder %s70_s21, %s4164_s27  ;;  %p4169_p6 = scmp.lt.s32.totalorder %s70_s21, %s70_s21 }
  0x14   :  { %p4170_p7 = scmp.lt.s32.totalorder %s4168_s28, %s4164_s27 }
  0x16   :  { %p4171_p8 = por %p4170_p7, %p4169_p6 }
  0x18   :  { %p4172_p9 = pnand %p4171_p8, %p4165_p5 }
  0x1a   :  { %4175 = shalt.err (!%p4172_p9)
}
  0x1b   :  { %72 = dma.hbm_to_vmem [thread:$0]  %s5229_s3, 16, %s70_s21, [#allocation11]  }
  0x1c   :  { %s4374_s16 = smov [#allocation13]   ;;  %s4375_s18 = smov [#allocation16]  }
  0x1d   :  { %s90_s17 = sshll.u32 %s4374_s16, 4  ;;  %s117_s20 = sshll.u32 %s4375_s18, 4  ;;  %s91_s17 = int_to_ptr.vmem [resolvable:$true] %s90_s17  ;;  %s118_s20 = int_to_ptr.vmem [resolvable:$true] %s117_s20 }
  0x1e   :  { %s4184_s22 = scalar_lea.vmem %s91_s17, 256  ;;  %p4189_p11 = scmp.lt.s32.totalorder %s91_s17, %s91_s17 }
  0x1f   :  { %p4185_p10 = scmp.ne.s32.totalorder %s91_s17, %s4184_s22  ;;  %p4190_p12 = scmp.lt.s32.totalorder %s4184_s22, %s4184_s22 }
  0x21   :  { %p4191_p13 = por %p4190_p12, %p4189_p11 }
  0x23   :  { %p4192_p0 = pnand %p4191_p13, %p4185_p10 }
  0x25   :  { %4195 = shalt.err (!%p4192_p0)
}
  0x26   :  { %96 = dma.hbm_to_vmem [thread:$0]  %s5231_s5, 256, %s91_s17, [#allocation14], %s4372_s23, %s4372_s23, %s4373_s24  }
  0x27   :  { %s4204_s3 = scalar_lea.vmem %s118_s20, 16  ;;  %s4208_s21 = scalar_lea.vmem %s118_s20, 32 }
  0x28   :  { %p4205_p1 = scmp.ne.s32.totalorder %s118_s20, %s4204_s3  ;;  %p4209_p2 = scmp.lt.s32.totalorder %s118_s20, %s118_s20 }
  0x29   :  { %p4210_p3 = scmp.lt.s32.totalorder %s4208_s21, %s4204_s3 }
  0x2b   :  { %p4211_p4 = por %p4210_p3, %p4209_p2 }
  0x2d   :  { %p4212_p5 = pnand %p4211_p4, %p4205_p1 }
  0x2f   :  { %4215 = shalt.err (!%p4212_p5)
}
  0x30   :  { %120 = dma.hbm_to_vmem [thread:$0]  %s5235_s9, 16, %s118_s20, [#allocation17]  }
  0x31   :  { %s4376_s27 = smov [#allocation4]   ;;  %s4377_s29 = smov [#allocation9]  }
  0x32   :  { %s32_s28 = sshll.u32 %s4376_s27, 4  ;;  %s56_s30 = sshll.u32 %s4377_s29, 4  ;;  %s33_s28 = int_to_ptr.vmem [resolvable:$true] %s32_s28  ;;  %s57_s30 = int_to_ptr.vmem [resolvable:$true] %s56_s30 }
  0x33   :  { %s4224_s16 = scalar_lea.vmem %s33_s28, 128  ;;  %p4229_p7 = scmp.lt.s32.totalorder %s33_s28, %s33_s28 }
  0x34   :  { %p4225_p6 = scmp.ne.s32.totalorder %s33_s28, %s4224_s16  ;;  %p4230_p8 = scmp.lt.s32.totalorder %s4224_s16, %s4224_s16 }
  0x36   :  { %p4231_p9 = por %p4230_p8, %p4229_p7 }
  0x38   :  { %p4232_p10 = pnand %p4231_p9, %p4225_p6 }
  0x3a   :  { %4235 = shalt.err (!%p4232_p10)
}
  0x3b   :  { %38 = dma.hbm_to_vmem [thread:$0]  %s5226_s0, 128, %s33_s28, [#allocation5], %s4372_s23, %s4372_s23, %s4373_s24  }
  0x3c   :  { %s4244_s9 = scalar_lea.vmem %s57_s30, 256  ;;  %p4249_p12 = scmp.lt.s32.totalorder %s57_s30, %s57_s30 }
  0x3d   :  { %p4245_p11 = scmp.ne.s32.totalorder %s57_s30, %s4244_s9  ;;  %p4250_p13 = scmp.lt.s32.totalorder %s4244_s9, %s4244_s9 }
  0x3f   :  { %p4251_p0 = por %p4250_p13, %p4249_p12 }
  0x41   :  { %p4252_p1 = pnand %p4251_p0, %p4245_p11 }
  0x43   :  { %4255 = shalt.err (!%p4252_p1)
}
  0x44   :  { %62 = dma.hbm_to_vmem [thread:$0]  %s5228_s2, 256, %s57_s30, [#allocation8], %s4372_s23, %s4372_s23, %s4373_s24  }
  0x45   :  { %s4378_s22 = smov [#allocation12]   ;;  %s4379_s19 = smov [#allocation15]  }
  0x46   :  { %s78_s1 = sshll.u32 %s4378_s22, 4  ;;  %s103_s3 = sshll.u32 %s4379_s19, 4  ;;  %s79_s1 = int_to_ptr.vmem [resolvable:$true] %s78_s1  ;;  %s104_s3 = int_to_ptr.vmem [resolvable:$true] %s103_s3 }
  0x47   :  { %s4264_s0 = scalar_lea.vmem %s79_s1, 704  ;;  %p4269_p3 = scmp.lt.s32.totalorder %s79_s1, %s79_s1 }
  0x48   :  { %p4265_p2 = scmp.ne.s32.totalorder %s79_s1, %s4264_s0  ;;  %p4270_p4 = scmp.lt.s32.totalorder %s4264_s0, %s4264_s0 }
  0x4a   :  { %p4271_p5 = por %p4270_p4, %p4269_p3 }
  0x4c   :  { %p4272_p6 = pnand %p4271_p5, %p4265_p2 }
  0x4e   :  { %4275 = shalt.err (!%p4272_p6)
}
  0x4f   :  { %84 = dma.hbm_to_vmem [thread:$0]  %s5230_s4, 704, %s79_s1, [#allocation11], %s4372_s23, %s4372_s23, %s4373_s24  }
  0x50   :  { %s4284_s2 = scalar_lea.vmem %s104_s3, 16  ;;  %s4288_s26 = scalar_lea.vmem %s104_s3, 32 }
  0x51   :  { %p4285_p7 = scmp.ne.s32.totalorder %s104_s3, %s4284_s2  ;;  %p4289_p8 = scmp.lt.s32.totalorder %s104_s3, %s104_s3 }
  0x52   :  { %p4290_p9 = scmp.lt.s32.totalorder %s4288_s26, %s4284_s2 }
  0x54   :  { %p4291_p10 = por %p4290_p9, %p4289_p8 }
  0x56   :  { %p4292_p11 = pnand %p4291_p10, %p4285_p7 }
  0x58   :  { %4295 = shalt.err (!%p4292_p11)
}
  0x59   :  { %106 = dma.hbm_to_vmem [thread:$0]  %s5232_s6, 16, %s104_s3, [#allocation14]  }
  0x5a   :  { %s4380_s29 = smov [#allocation18]   ;;  %s4381_s16 = smov [#allocation19]  }
  0x5b   :  { %s126_s30 = sshll.u32 %s4380_s29, 4  ;;  %s138_s5 = sshll.u32 %s4381_s16, 4  ;;  %s127_s30 = int_to_ptr.vmem [resolvable:$true] %s126_s30  ;;  %s139_s5 = int_to_ptr.vmem [resolvable:$true] %s138_s5 }
  0x5c   :  { %s4304_s17 = scalar_lea.vmem %s127_s30, 512  ;;  %p4309_p13 = scmp.lt.s32.totalorder %s127_s30, %s127_s30 }
  0x5d   :  { %p4305_p12 = scmp.ne.s32.totalorder %s127_s30, %s4304_s17  ;;  %p4310_p0 = scmp.lt.s32.totalorder %s4304_s17, %s4304_s17 }
  0x5f   :  { %p4311_p1 = por %p4310_p0, %p4309_p13 }
  0x61   :  { %p4312_p2 = pnand %p4311_p1, %p4305_p12 }
  0x63   :  { %4315 = shalt.err (!%p4312_p2)
}
  0x64   :  { %132 = dma.hbm_to_vmem [thread:$0]  %s5236_s10, 512, %s127_s30, [#allocation17], %s4372_s23, %s4372_s23, %s4373_s24  }
  0x65   :  { %s4324_s6 = scalar_lea.vmem %s139_s5, 256  ;;  %p4329_p4 = scmp.lt.s32.totalorder %s139_s5, %s139_s5 }
  0x66   :  { %p4325_p3 = scmp.ne.s32.totalorder %s139_s5, %s4324_s6  ;;  %p4330_p5 = scmp.lt.s32.totalorder %s4324_s6, %s4324_s6 }
  0x68   :  { %p4331_p6 = por %p4330_p5, %p4329_p4 }
  0x6a   :  { %p4332_p7 = pnand %p4331_p6, %p4325_p3 }
  0x6c   :  { %4335 = shalt.err (!%p4332_p7)
}
  0x6d   :  { %144 = dma.hbm_to_vmem [thread:$0]  %s5237_s11, 256, %s139_s5, [#allocation20], %s4372_s23, %s4372_s23, %s4373_s24  }
  0x6e   :  { %4356 = dma.done.wait [#allocation5], 128  }
  0x6f   :  { %4357 = vsyncadd [#allocation5], 4294967168 }
  0x70   :  { %4358 = dma.done.wait [#allocation8], 960  }
  0x71   :  { %4359 = vsyncadd [#allocation8], 4294966336 }
  0x72   :  { %4360 = dma.done.wait [#allocation11], 720  }
  0x73   :  { %4361 = vsyncadd [#allocation11], 4294966576 }
  0x74   :  { %4362 = dma.done.wait [#allocation14], 272  }
  0x75   :  { %4363 = vsyncadd [#allocation14], 4294967024 }
  0x76   :  { %4364 = dma.done.wait [#allocation17], 528  }
  0x77   :  { %4365 = vsyncadd [#allocation17], 4294966768 }
  0x78   :  { %4366 = dma.done.wait [#allocation20], 256  }
  0x79   :  { %4367 = vsyncadd [#allocation20], 4294967040  ;;  %v4382_v0 = vmov 0.0   ;;  %vm4383_vm0 = vmmov 0   ;;  %vm244_vm1 = vcmask 1040384   ;;  %v3848_v4 = vld [vmem:[#allocation12 + $0x20] sm:$0xff]  }
  0x7a   :  { %3522 = vmatprep.subr.bf16.mxu1 %v4382_v0  ;;  %3506 = vmatprep.subr.bf16.mxu0 %v4382_v0  ;;  %v3847_v1 = vld [vmem:[#allocation12 + $0x28] ss:$0 sps:$4 sm:$0x11]   ;;  %v3849_v3 = vld [vmem:[#allocation7 + $0x28] ss:$0 sps:$4 sm:$0x11]  }
  0x7b   :  { %3534 = vmatprep.mubr.msk.bf16.mxu1 %vm4383_vm0, %v4382_v0  ;;  %3518 = vmatprep.mubr.msk.bf16.mxu0 %vm4383_vm0, %v4382_v0  ;;  %v345_v2 = vsel %vm244_vm1, %v3847_v1, 0  ;;  %v246_v5 = vsel %vm244_vm1, %v3849_v3, 0  ;;  %v3851_v6 = vld [vmem:[#allocation7 + $0x20] sm:$0xff]   ;;  %v3850_v7 = vld [vmem:[#allocation12 + $0x18] sm:$0xff]   ;;  %v3852_v9 = vld [vmem:[#allocation12 + $0x10] sm:$0xff]   ;;  %vm240_vm2 = vcmask 670720  }
  0x7c   :  { %3523 = vmatpush3.bf16.msra.mxu1 %v345_v2  ;;  %3507 = vmatpush3.bf16.msra.mxu0 %v246_v5  ;;  %v3853_v8 = vld [vmem:[#allocation7 + $0x18] sm:$0xff]   ;;  %v3855_v10 = vld [vmem:[#allocation7 + $0x10] sm:$0xff]   ;;  %v3854_v11 = vld [vmem:[#allocation12 + $0x8] sm:$0xff]   ;;  %v4384_v19 = vmov 0   ;;  %s4385_s10 = smov 32   ;;  %vm404_vm3 = vcmask 261120  }
  0x7d   :  { %3524 = vmatprep.subr.bf16.mxu1 %v4382_v0  ;;  %3508 = vmatprep.subr.bf16.mxu0 %v4382_v0  ;;  %v3857_v12 = vld [vmem:[#allocation7 + $0x8] sm:$0xff]   ;;  %v3856_v13 = vld [vmem:[#allocation12] sm:$0xff]   ;;  %v4533_v16 = vld [vmem:[#allocation9 + $0x8] sm:$0xff]   ;;  %vm477_vm4 = vcmask 254976   ;;  %vm647_vm5 = vcmask 257026   ;;  %vm817_vm6 = vcmask 259076  }
  0x7e   :  { %v3860_v14 = vld [vmem:[#allocation7] sm:$0xff]   ;;  %v3858_v15 = vld [vmem:[#allocation4] sm:$0xff]   ;;  %v4540_v17 = vld [vmem:[#allocation9] sm:$0xff]   ;;  %vm563_vm7 = vcmask 523526   ;;  %vm987_vm8 = vcmask 261126   ;;  %vm732_vm9 = vcmask 521476  }
  0x7f   :  { %v4551_v18 = vld [vmem:[#allocation13 + $0x8] sm:$0xff]   ;;  %v4558_v20 = vld [vmem:[#allocation13] sm:$0xff]   ;;  %v3287_v21 = vld [vmem:[#allocation15] ss:$0 sm:$0xff]  ;;  %vm902_vm10 = vcmask 519426   ;;  %vm1069_vm11 = vcmask 517376  }
  0x80   :  { %3525 = vmatpush3.bf16.msra.mxu1 %v3848_v4  ;;  %3509 = vmatpush3.bf16.msra.mxu0 %v3851_v6  ;;  %v3278_v25 = vld [vmem:[#allocation10] ss:$0 sm:$0xff]  ;;  %vm1777_vm12 = vcmask 523264   ;;  %s4386_s6 = smov [#allocation21]   ;;  %vm3256_vm13 = vcmask 25600  }
  0x81   :  { %3526 = vmatprep.subr.bf16.mxu1 %v4382_v0  ;;  %3510 = vmatprep.subr.bf16.mxu0 %v4382_v0  ;;  %s3264_s18 = sshll.u32 %s4386_s6, 4  ;;  %s3265_s18 = int_to_ptr.vmem [resolvable:$true] %s3264_s18 }
  0x82   :  { %p4341_p9 = scmp.lt.s32.totalorder %s3265_s18, %s3265_s18 }
  0x84   :  { %3527 = vmatpush3.bf16.msra.mxu1 %v3850_v7  ;;  %3511 = vmatpush3.bf16.msra.mxu0 %v3853_v8 }
  0x85   :  { %3528 = vmatprep.subr.bf16.mxu1 %v4382_v0  ;;  %3512 = vmatprep.subr.bf16.mxu0 %v4382_v0 }
  0x88   :  { %3529 = vmatpush3.bf16.msra.mxu1 %v3852_v9  ;;  %3513 = vmatpush3.bf16.msra.mxu0 %v3855_v10 }
  0x89   :  { %3530 = vmatprep.subr.bf16.mxu1 %v4382_v0  ;;  %3514 = vmatprep.subr.bf16.mxu0 %v4382_v0 }
  0x8c   :  { %3531 = vmatpush3.bf16.msra.mxu1 %v3854_v11  ;;  %3515 = vmatpush3.bf16.msra.mxu0 %v3857_v12 }
  0x8d   :  { %3532 = vmatprep.subr.bf16.mxu1 %v4382_v0  ;;  %3516 = vmatprep.subr.bf16.mxu0 %v4382_v0 }
  0x90   :  { %3533 = vmatpush3.bf16.msra.mxu1 %v3856_v13  ;;  %3517 = vmatpush3.bf16.msra.mxu0 %v3860_v14 }
  0x91   :  { %3538 = vmatprep.subr.bf16.mxu1 %v4382_v0  ;;  %3554 = vmatprep.subr.bf16.mxu0 %v4382_v0 }
  0x93   :  { %3535 = vmatmul.mubr.msk.bf16.vlgmr.msra.gmra.mxu1 %vm240_vm2, %v3858_v15  ;;  %3519 = vmatmul.mubr.msk.bf16.vlgmr.msra.gmra.mxu0 %vm240_vm2, %v3858_v15 }
  0x94   :  { %3539 = vmatpush3.bf16.msra.mxu1 %v4533_v16  ;;  %3542 = vmatprep.mubr.msk.bf16.mxu1 %vm4383_vm0, %v4382_v0 }
  0x95   :  { %3540 = vmatprep.subr.bf16.mxu1 %v4382_v0  ;;  %3555 = vmatpush3.bf16.msra.mxu0 %v4533_v16 }
  0x96   :  { %3558 = vmatprep.mubr.msk.bf16.mxu0 %vm4383_vm0, %v4382_v0  ;;  %3556 = vmatprep.subr.bf16.mxu0 %v4382_v0 }
  0x98   :  { %3541 = vmatpush3.bf16.msra.mxu1 %v4540_v17 }
  0x99   :  { %3546 = vmatprep.subr.bf16.mxu1 %v4382_v0  ;;  %3557 = vmatpush3.bf16.msra.mxu0 %v4540_v17 }
  0x9a   :  { %3570 = vmatprep.subr.bf16.mxu0 %v4382_v0 }
  0x9b   :  { %3543 = vmatmul.mubr.bf16.vlgmr.msra.gmra.mxu1 %v4384_v19 }
  0x9c   :  { %3547 = vmatpush3.bf16.msra.mxu1 %v4551_v18  ;;  %3550 = vmatprep.mubr.msk.bf16.mxu1 %vm4383_vm0, %v4382_v0 }
  0x9d   :  { %3548 = vmatprep.subr.bf16.mxu1 %v4382_v0 }
  0xa0   :  { %3549 = vmatpush3.bf16.msra.mxu1 %v4558_v20 }
  0xa1   :  { %3562 = vmatprep.subr.bf16.mxu1 %v4382_v0 }
  0xa3   :  { %3551 = vmatmul.mubr.bf16.vlgmr.msra.gmra.mxu1 %v4384_v19 }
  0xa4   :  { %3563 = vmatpush3.bf16.msra.mxu1 %v4551_v18  ;;  %3566 = vmatprep.mubr.msk.bf16.mxu1 %vm4383_vm0, %v4382_v0 }
  0xa5   :  { %3564 = vmatprep.subr.bf16.mxu1 %v4382_v0 }
  0xa8   :  { %3565 = vmatpush3.bf16.msra.mxu1 %v4558_v20 }
  0xa9   :  { %3578 = vmatprep.subr.bf16.mxu1 %v4382_v0 }
 0x153   :  { %v381_v22 = vpop.f32.mrf.mxu1  ;;  %v282_v26 = vpop.f32.mrf.mxu0 }
 0x154   :  { %v4572_v23 = vadd.f32 %v3287_v21, %v381_v22  ;;  %v4574_v29 = vadd.f32 %v3278_v25, %v282_v26 }
 0x155   :  { %v3536_v24 = vpop.f32.mrf.mxu1  ;;  %v3520_v28 = vpop.f32.mrf.mxu0 }
 0x157   :  { %v384_v27 = vpop.f32.mrf.mxu1  ;;  %v285_v31 = vpop.f32.mrf.mxu0 }
 0x158   :  { %v4576_v32 = vadd.f32 %v3278_v25, %v285_v31  ;;  %v4579_v40 = vadd.f32 %v3287_v21, %v384_v27 }
 0x159   :  { %v3537_v30 = vpop.f32.mrf.mxu1  ;;  %v3521_v34 = vpop.f32.mrf.mxu0 }
 0x15b   :  { %v442_v33 = vpop.f32.mrf.mxu1 }
 0x15c   :  { %v448_v35 = vadd.f32 %v442_v33, %v4574_v29 }
 0x15d   :  { %v3544_v36 = vpop.f32.mrf.mxu1 }
 0x15e   :  { %3880 = vtanh.f32 %v448_v35  ;;  %v3297_v48 = vmul.f32 -1.442695, %v448_v35 }
 0x15f   :  { %v445_v37 = vpop.f32.mrf.mxu1 }
 0x161   :  { %v3545_v38 = vpop.f32.mrf.mxu1 }
 0x163   :  { %v525_v39 = vpop.f32.mrf.mxu1 }
 0x164   :  { %v532_v41 = vrot.slane %v525_v39, 2 }
 0x165   :  { %v3552_v42 = vpop.f32.mrf.mxu1 }
 0x166   :  { %v534_v43 = vadd.f32 %v532_v41, %v4579_v40 }
 0x167   :  { %v528_v44 = vpop.f32.mrf.mxu1 }
 0x168   :  { %3882 = vtanh.f32 %v534_v43  ;;  %v3300_v49 = vmul.f32 -1.442695, %v534_v43 }
 0x169   :  { %v3553_v45 = vpop.f32.mrf.mxu1  ;;  %3884 = vpow2.f32 %v3297_v48 }
 0x16a   :  { %3886 = vpow2.f32 %v3300_v49 }
 0x16b   :  { %v3881_v46 = vpop.eup %3880 }
 0x16c   :  { %458 = vrot.lane.b32.xlu0 %v3881_v46, %s4372_s23 }
 0x175   :  { %v3883_v47 = vpop.eup %3882 }
 0x176   :  { %544 = vrot.lane.b32.xlu0 %v3883_v47, %s4372_s23  ;;  %v3885_v50 = vpop.eup %3884 }
 0x177   :  { %v452_v51 = vadd.f32 1.0, %v3885_v50  ;;  %v3887_v52 = vpop.eup %3886 }
 0x178   :  { %v538_v53 = vadd.f32 1.0, %v3887_v52 }
 0x179   :  { %3888 = vrcp.f32 %v452_v51 }
 0x17a   :  { %3890 = vrcp.f32 %v538_v53 }
 0x186   :  { %v3889_v54 = vpop.eup %3888 }
 0x187   :  { %v3891_v57 = vpop.eup %3890  ;;  %v456_v60 = vmul.f32 0.0, %v3889_v54 }
 0x188   :  { %v542_v63 = vmul.f32 0.0, %v3891_v57 }
 0x1de   :  { %v459_v55 = vpop.permute.xlu0 %458 }
 0x1df   :  { %v461_v56 = vmul.f32 %v3889_v54, %v459_v55 }
 0x1e1   :  { %463 = vrot.lane.b32.xlu1 %v461_v56, %s4385_s10 }
 0x1e8   :  { %v545_v58 = vpop.permute.xlu0 %544 }
 0x1e9   :  { %v547_v59 = vmul.f32 %v3891_v57, %v545_v58 }
 0x1eb   :  { %549 = vrot.lane.b32.xlu1 %v547_v59, %s4385_s10 }
 0x253   :  { %v464_v61 = vpop.permute.xlu1 %463 }
 0x254   :  { %v4586_v62 = vadd.f32 %v464_v61, %v456_v60 }
 0x256   :  { %3892 = vtanh.f32 %v4586_v62  ;;  %v624_v49 = vrot.slane %v4586_v62, 6 }
 0x25d   :  { %v550_v1 = vpop.permute.xlu1 %549 }
 0x25e   :  { %v4589_v2 = vadd.f32 %v550_v1, %v542_v63 }
 0x260   :  { %3894 = vtanh.f32 %v4589_v2  ;;  %v709_v53 = vrot.slane %v4589_v2, 2 }
 0x263   :  { %v3893_v3 = vpop.eup %3892 }
 0x264   :  { %469 = vrot.lane.b32.xlu0 %v3893_v3, %s4372_s23 }
 0x26d   :  { %v3895_v4 = vpop.eup %3894 }
 0x26e   :  { %555 = vrot.lane.b32.xlu1 %v3895_v4, %s4372_s23 }
 0x2d6   :  { %v470_v5 = vpop.permute.xlu0 %469 }
 0x2d7   :  { %v4594_v6 = vmul.f32 %v3889_v54, %v470_v5 }
 0x2d9   :  { %v565_v7 = vpack.c.bf16 %v4594_v6, %v4594_v6 }
 0x2db   :  { %567 = vrot.lane.b32.xlu0 %v565_v7, %s4385_s10 }
 0x2e0   :  { %v556_v8 = vpop.permute.xlu1 %555 }
 0x2e1   :  { %v4599_v9 = vmul.f32 %v3891_v57, %v556_v8 }
 0x2e3   :  { %v649_v10 = vpack.c.bf16 %v4599_v9, %v4599_v9 }
 0x2e5   :  { %v651_v11 = vrot.slane %v649_v10, 3 }
 0x2e7   :  { %652 = vrot.lane.b32.xlu1 %v651_v11, %s4385_s10 }
 0x34d   :  { %v568_v12 = vpop.permute.xlu0 %567 }
 0x34e   :  { %3559 = vmatmul.mubr.msk.bf16.vlgmr.msra.gmra.mxu0 %vm404_vm3, %v568_v12 }
 0x34f   :  { %3571 = vmatpush3.bf16.msra.mxu0 %v4533_v16  ;;  %3574 = vmatprep.mubr.msk.bf16.mxu0 %vm4383_vm0, %v4382_v0 }
 0x350   :  { %3572 = vmatprep.subr.bf16.mxu0 %v4382_v0 }
 0x353   :  { %3573 = vmatpush3.bf16.msra.mxu0 %v4540_v17 }
 0x354   :  { %3586 = vmatprep.subr.bf16.mxu0 %v4382_v0 }
 0x359   :  { %v653_v13 = vpop.permute.xlu1 %652 }
 0x35a   :  { %3567 = vmatmul.mubr.msk.bf16.vlgmr.msra.gmra.mxu1 %vm404_vm3, %v653_v13 }
 0x35b   :  { %3579 = vmatpush3.bf16.msra.mxu1 %v4551_v18  ;;  %3582 = vmatprep.mubr.msk.bf16.mxu1 %vm4383_vm0, %v4382_v0 }
 0x35c   :  { %3580 = vmatprep.subr.bf16.mxu1 %v4382_v0 }
 0x35f   :  { %3581 = vmatpush3.bf16.msra.mxu1 %v4558_v20 }
 0x360   :  { %3594 = vmatprep.subr.bf16.mxu1 %v4382_v0 }
 0x40e   :  { %v606_v14 = vpop.f32.mrf.mxu0 }
 0x40f   :  { %v613_v15 = vrot.slane %v606_v14, 6 }
 0x410   :  { %v3560_v21 = vpop.f32.mrf.mxu0 }
 0x411   :  { %v615_v22 = vadd.f32 %v613_v15, %v4574_v29 }
 0x412   :  { %v609_v24 = vpop.f32.mrf.mxu0 }
 0x413   :  { %3896 = vtanh.f32 %v615_v22  ;;  %v3302_v36 = vmul.f32 -1.442695, %v615_v22 }
 0x414   :  { %v3561_v25 = vpop.f32.mrf.mxu0 }
 0x41a   :  { %v691_v26 = vpop.f32.mrf.mxu1 }
 0x41b   :  { %v698_v27 = vrot.slane %v691_v26, 4 }
 0x41c   :  { %v3568_v28 = vpop.f32.mrf.mxu1 }
 0x41d   :  { %v700_v30 = vadd.f32 %v698_v27, %v4579_v40 }
 0x41e   :  { %v694_v31 = vpop.f32.mrf.mxu1 }
 0x41f   :  { %3898 = vtanh.f32 %v700_v30  ;;  %v3304_v37 = vmul.f32 -1.442695, %v700_v30 }
 0x420   :  { %v3897_v33 = vpop.eup %3896  ;;  %v3569_v34 = vpop.f32.mrf.mxu1  ;;  %3900 = vpow2.f32 %v3302_v36 }
 0x421   :  { %628 = vrot.lane.b32.xlu0 %v3897_v33, %s4372_s23  ;;  %3902 = vpow2.f32 %v3304_v37 }
 0x42c   :  { %v3899_v35 = vpop.eup %3898 }
 0x42d   :  { %713 = vrot.lane.b32.xlu1 %v3899_v35, %s4372_s23  ;;  %v3901_v38 = vpop.eup %3900 }
 0x42e   :  { %v619_v39 = vadd.f32 1.0, %v3901_v38  ;;  %v3903_v41 = vpop.eup %3902 }
 0x42f   :  { %v704_v42 = vadd.f32 1.0, %v3903_v41 }
 0x430   :  { %3904 = vrcp.f32 %v619_v39 }
 0x431   :  { %3906 = vrcp.f32 %v704_v42 }
 0x43d   :  { %v3905_v43 = vpop.eup %3904 }
 0x43e   :  { %v3907_v46 = vpop.eup %3906  ;;  %v626_v50 = vmul.f32 %v3905_v43, %v624_v49 }
 0x43f   :  { %v711_v54 = vmul.f32 %v3907_v46, %v709_v53 }
 0x493   :  { %v629_v44 = vpop.permute.xlu0 %628 }
 0x494   :  { %v631_v45 = vmul.f32 %v3905_v43, %v629_v44 }
 0x496   :  { %633 = vrot.lane.b32.xlu0 %v631_v45, %s4385_s10 }
 0x49f   :  { %v714_v47 = vpop.permute.xlu1 %713 }
 0x4a0   :  { %v716_v48 = vmul.f32 %v3907_v46, %v714_v47 }
 0x4a2   :  { %718 = vrot.lane.b32.xlu1 %v716_v48, %s4385_s10 }
 0x508   :  { %v634_v51 = vpop.permute.xlu0 %633 }
 0x509   :  { %v4625_v52 = vadd.f32 %v634_v51, %v626_v50 }
 0x50b   :  { %3908 = vtanh.f32 %v4625_v52 }
 0x514   :  { %v719_v55 = vpop.permute.xlu1 %718 }
 0x515   :  { %v4629_v56 = vadd.f32 %v719_v55, %v711_v54 }
 0x517   :  { %3910 = vtanh.f32 %v4629_v56  ;;  %v879_v47 = vrot.slane %v4629_v56, 2 }
 0x518   :  { %v3909_v57 = vpop.eup %3908 }
 0x519   :  { %639 = vrot.lane.b32.xlu0 %v3909_v57, %s4372_s23 }
 0x524   :  { %v3911_v58 = vpop.eup %3910 }
 0x525   :  { %724 = vrot.lane.b32.xlu1 %v3911_v58, %s4372_s23 }
 0x58b   :  { %v640_v59 = vpop.permute.xlu0 %639 }
 0x58c   :  { %v4634_v60 = vmul.f32 %v3905_v43, %v640_v59  ;;  %v794_v43 = vrot.slane %v4625_v52, 6 }
 0x58e   :  { %v734_v61 = vpack.c.bf16 %v4634_v60, %v4634_v60 }
 0x590   :  { %v736_v62 = vrot.slane %v734_v61, 1 }
 0x592   :  { %737 = vrot.lane.b32.xlu0 %v736_v62, %s4385_s10 }
 0x597   :  { %v725_v63 = vpop.permute.xlu1 %724 }
 0x598   :  { %v4639_v1 = vmul.f32 %v3907_v46, %v725_v63 }
 0x59a   :  { %v819_v2 = vpack.c.bf16 %v4639_v1, %v4639_v1 }
 0x59c   :  { %v821_v3 = vrot.slane %v819_v2, 2 }
 0x59e   :  { %822 = vrot.lane.b32.xlu1 %v821_v3, %s4385_s10 }
 0x604   :  { %v738_v4 = vpop.permute.xlu0 %737 }
 0x605   :  { %3575 = vmatmul.mubr.msk.bf16.vlgmr.msra.gmra.mxu0 %vm404_vm3, %v738_v4 }
 0x606   :  { %3587 = vmatpush3.bf16.msra.mxu0 %v4533_v16  ;;  %3590 = vmatprep.mubr.msk.bf16.mxu0 %vm4383_vm0, %v4382_v0 }
 0x607   :  { %3588 = vmatprep.subr.bf16.mxu0 %v4382_v0 }
 0x60a   :  { %3589 = vmatpush3.bf16.msra.mxu0 %v4540_v17 }
 0x60b   :  { %3602 = vmatprep.subr.bf16.mxu0 %v4382_v0 }
 0x610   :  { %v823_v5 = vpop.permute.xlu1 %822 }
 0x611   :  { %3583 = vmatmul.mubr.msk.bf16.vlgmr.msra.gmra.mxu1 %vm404_vm3, %v823_v5 }
 0x612   :  { %3595 = vmatpush3.bf16.msra.mxu1 %v4551_v18  ;;  %3598 = vmatprep.mubr.msk.bf16.mxu1 %vm4383_vm0, %v4382_v0 }
 0x613   :  { %3596 = vmatprep.subr.bf16.mxu1 %v4382_v0 }
 0x616   :  { %3597 = vmatpush3.bf16.msra.mxu1 %v4558_v20 }
 0x617   :  { %3610 = vmatprep.subr.bf16.mxu1 %v4382_v0 }
 0x6c5   :  { %v776_v7 = vpop.f32.mrf.mxu0 }
 0x6c6   :  { %v783_v8 = vrot.slane %v776_v7, 4 }
 0x6c7   :  { %v3576_v10 = vpop.f32.mrf.mxu0 }
 0x6c8   :  { %v785_v11 = vadd.f32 %v783_v8, %v4574_v29 }
 0x6c9   :  { %v779_v12 = vpop.f32.mrf.mxu0 }
 0x6ca   :  { %3912 = vtanh.f32 %v785_v11  ;;  %v3306_v28 = vmul.f32 -1.442695, %v785_v11 }
 0x6cb   :  { %v3577_v13 = vpop.f32.mrf.mxu0 }
 0x6d1   :  { %v861_v14 = vpop.f32.mrf.mxu1 }
 0x6d2   :  { %v868_v15 = vrot.slane %v861_v14, 6 }
 0x6d3   :  { %v3584_v21 = vpop.f32.mrf.mxu1 }
 0x6d4   :  { %v870_v22 = vadd.f32 %v868_v15, %v4579_v40 }
 0x6d5   :  { %v864_v24 = vpop.f32.mrf.mxu1 }
 0x6d6   :  { %3914 = vtanh.f32 %v870_v22  ;;  %v3308_v30 = vmul.f32 -1.442695, %v870_v22 }
 0x6d7   :  { %v3913_v25 = vpop.eup %3912  ;;  %v3585_v26 = vpop.f32.mrf.mxu1  ;;  %3916 = vpow2.f32 %v3306_v28 }
 0x6d8   :  { %798 = vrot.lane.b32.xlu0 %v3913_v25, %s4372_s23  ;;  %3918 = vpow2.f32 %v3308_v30 }
 0x6e3   :  { %v3915_v27 = vpop.eup %3914 }
 0x6e4   :  { %883 = vrot.lane.b32.xlu1 %v3915_v27, %s4372_s23  ;;  %v3917_v31 = vpop.eup %3916 }
 0x6e5   :  { %v789_v33 = vadd.f32 1.0, %v3917_v31  ;;  %v3919_v34 = vpop.eup %3918 }
 0x6e6   :  { %v874_v35 = vadd.f32 1.0, %v3919_v34 }
 0x6e7   :  { %3920 = vrcp.f32 %v789_v33 }
 0x6e8   :  { %3922 = vrcp.f32 %v874_v35 }
 0x6f4   :  { %v3921_v36 = vpop.eup %3920 }
 0x6f5   :  { %v3923_v39 = vpop.eup %3922  ;;  %v796_v44 = vmul.f32 %v3921_v36, %v794_v43 }
 0x6f6   :  { %v881_v48 = vmul.f32 %v3923_v39, %v879_v47 }
 0x74a   :  { %v799_v37 = vpop.permute.xlu0 %798 }
 0x74b   :  { %v801_v38 = vmul.f32 %v3921_v36, %v799_v37 }
 0x74d   :  { %803 = vrot.lane.b32.xlu0 %v801_v38, %s4385_s10 }
 0x756   :  { %v884_v41 = vpop.permute.xlu1 %883 }
 0x757   :  { %v886_v42 = vmul.f32 %v3923_v39, %v884_v41 }
 0x759   :  { %888 = vrot.lane.b32.xlu1 %v886_v42, %s4385_s10 }
 0x7bf   :  { %v804_v45 = vpop.permute.xlu0 %803 }
 0x7c0   :  { %v4665_v46 = vadd.f32 %v804_v45, %v796_v44 }
 0x7c2   :  { %3924 = vtanh.f32 %v4665_v46  ;;  %v964_v35 = vrot.slane %v4665_v46, 6 }
 0x7cb   :  { %v889_v49 = vpop.permute.xlu1 %888 }
 0x7cc   :  { %v4669_v50 = vadd.f32 %v889_v49, %v881_v48 }
 0x7ce   :  { %3926 = vtanh.f32 %v4669_v50 }
 0x7cf   :  { %v3925_v51 = vpop.eup %3924 }
 0x7d0   :  { %809 = vrot.lane.b32.xlu0 %v3925_v51, %s4372_s23 }
 0x7db   :  { %v3927_v53 = vpop.eup %3926 }
 0x7dc   :  { %894 = vrot.lane.b32.xlu1 %v3927_v53, %s4372_s23 }
 0x842   :  { %v810_v52 = vpop.permute.xlu0 %809 }
 0x843   :  { %v4674_v54 = vmul.f32 %v3921_v36, %v810_v52 }
 0x845   :  { %v904_v55 = vpack.c.bf16 %v4674_v54, %v4674_v54 }
 0x847   :  { %v906_v57 = vrot.slane %v904_v55, 2 }
 0x849   :  { %907 = vrot.lane.b32.xlu0 %v906_v57, %s4385_s10 }
 0x84e   :  { %v895_v56 = vpop.permute.xlu1 %894 }
 0x84f   :  { %v4679_v58 = vmul.f32 %v3923_v39, %v895_v56  ;;  %v1046_v39 = vrot.slane %v4669_v50, 2 }
 0x851   :  { %v989_v59 = vpack.c.bf16 %v4679_v58, %v4679_v58 }
 0x853   :  { %v991_v61 = vrot.slane %v989_v59, 1 }
 0x855   :  { %992 = vrot.lane.b32.xlu1 %v991_v61, %s4385_s10 }
 0x8bb   :  { %v908_v62 = vpop.permute.xlu0 %907 }
 0x8bc   :  { %3591 = vmatmul.mubr.msk.bf16.vlgmr.msra.gmra.mxu0 %vm404_vm3, %v908_v62 }
 0x8bd   :  { %3603 = vmatpush3.bf16.msra.mxu0 %v4533_v16  ;;  %3606 = vmatprep.mubr.msk.bf16.mxu0 %vm4383_vm0, %v4382_v0 }
 0x8be   :  { %3604 = vmatprep.subr.bf16.mxu0 %v4382_v0 }
 0x8c1   :  { %3605 = vmatpush3.bf16.msra.mxu0 %v4540_v17 }
 0x8c2   :  { %3618 = vmatprep.subr.bf16.mxu0 %v4382_v0 }
 0x8c7   :  { %v993_v63 = vpop.permute.xlu1 %992 }
 0x8c8   :  { %3599 = vmatmul.mubr.msk.bf16.vlgmr.msra.gmra.mxu1 %vm404_vm3, %v993_v63 }
 0x8c9   :  { %3611 = vmatpush3.bf16.msra.mxu1 %v4551_v18  ;;  %3614 = vmatprep.mubr.msk.bf16.mxu1 %vm4383_vm0, %v4382_v0 }
 0x8ca   :  { %3612 = vmatprep.subr.bf16.mxu1 %v4382_v0 }
 0x8cd   :  { %3613 = vmatpush3.bf16.msra.mxu1 %v4558_v20 }
 0x8ce   :  { %3626 = vmatprep.subr.bf16.mxu1 %v4382_v0 }
 0x97c   :  { %v946_v2 = vpop.f32.mrf.mxu0 }
 0x97d   :  { %v953_v3 = vrot.slane %v946_v2, 2 }
 0x97e   :  { %v3592_v4 = vpop.f32.mrf.mxu0 }
 0x97f   :  { %v955_v5 = vadd.f32 %v953_v3, %v4574_v29 }
 0x980   :  { %v949_v7 = vpop.f32.mrf.mxu0 }
 0x981   :  { %3928 = vtanh.f32 %v955_v5  ;;  %v3310_v22 = vmul.f32 -1.442695, %v955_v5 }
 0x982   :  { %v3593_v8 = vpop.f32.mrf.mxu0 }
 0x988   :  { %v1031_v10 = vpop.f32.mrf.mxu1 }
 0x989   :  { %v1037_v11 = vadd.f32 %v1031_v10, %v4579_v40 }
 0x98a   :  { %v3600_v12 = vpop.f32.mrf.mxu1 }
 0x98b   :  { %3930 = vtanh.f32 %v1037_v11  ;;  %v3312_v24 = vmul.f32 -1.442695, %v1037_v11 }
 0x98c   :  { %v1034_v13 = vpop.f32.mrf.mxu1  ;;  %3932 = vpow2.f32 %v3310_v22 }
 0x98d   :  { %3934 = vpow2.f32 %v3312_v24 }
 0x98e   :  { %v3929_v14 = vpop.eup %3928  ;;  %v3601_v15 = vpop.f32.mrf.mxu1 }
 0x98f   :  { %968 = vrot.lane.b32.xlu0 %v3929_v14, %s4372_s23 }
 0x998   :  { %v3931_v21 = vpop.eup %3930 }
 0x999   :  { %1050 = vrot.lane.b32.xlu1 %v3931_v21, %s4372_s23  ;;  %v3933_v29 = vpop.eup %3932 }
 0x99a   :  { %v959_v25 = vadd.f32 1.0, %v3933_v29  ;;  %v3935_v26 = vpop.eup %3934 }
 0x99b   :  { %v1041_v27 = vadd.f32 1.0, %v3935_v26 }
 0x99c   :  { %3936 = vrcp.f32 %v959_v25 }
 0x99d   :  { %3938 = vrcp.f32 %v1041_v27 }
 0x9a9   :  { %v3937_v40 = vpop.eup %3936 }
 0x9aa   :  { %v3939_v31 = vpop.eup %3938  ;;  %v966_v36 = vmul.f32 %v3937_v40, %v964_v35 }
 0x9ab   :  { %v1048_v41 = vmul.f32 %v3939_v31, %v1046_v39 }
 0xa01   :  { %v969_v28 = vpop.permute.xlu0 %968 }
 0xa02   :  { %v971_v30 = vmul.f32 %v3937_v40, %v969_v28 }
 0xa04   :  { %973 = vrot.lane.b32.xlu0 %v971_v30, %s4385_s10 }
 0xa0b   :  { %v1051_v33 = vpop.permute.xlu1 %1050 }
 0xa0c   :  { %v1053_v34 = vmul.f32 %v3939_v31, %v1051_v33 }
 0xa0e   :  { %1055 = vrot.lane.b32.xlu1 %v1053_v34, %s4385_s10 }
 0xa76   :  { %v974_v37 = vpop.permute.xlu0 %973 }
 0xa77   :  { %v4705_v38 = vadd.f32 %v974_v37, %v966_v36 }
 0xa79   :  { %3940 = vtanh.f32 %v4705_v38 }
 0xa80   :  { %v1056_v42 = vpop.permute.xlu1 %1055 }
 0xa81   :  { %v4709_v43 = vadd.f32 %v1056_v42, %v1048_v41 }
 0xa83   :  { %3942 = vtanh.f32 %v4709_v43  ;;  %v1211_v33 = vrot.slane %v4709_v43, 2 }
 0xa86   :  { %v3941_v44 = vpop.eup %3940 }
 0xa87   :  { %979 = vrot.lane.b32.xlu0 %v3941_v44, %s4372_s23 }
 0xa90   :  { %v3943_v45 = vpop.eup %3942 }
 0xa91   :  { %1061 = vrot.lane.b32.xlu1 %v3943_v45, %s4372_s23 }
 0xaf9   :  { %v980_v46 = vpop.permute.xlu0 %979 }
 0xafa   :  { %v4714_v47 = vmul.f32 %v3937_v40, %v980_v46  ;;  %v1128_v40 = vrot.slane %v4705_v38, 6 }
 0xafc   :  { %v1071_v48 = vpack.c.bf16 %v4714_v47, %v4714_v47 }
 0xafe   :  { %v1073_v49 = vrot.slane %v1071_v48, 3 }
 0xb00   :  { %1074 = vrot.lane.b32.xlu1 %v1073_v49, %s4385_s10 }
 0xb03   :  { %v1062_v50 = vpop.permute.xlu1 %1061 }
 0xb04   :  { %v4719_v51 = vmul.f32 %v3939_v31, %v1062_v50 }
 0xb06   :  { %v1152_v53 = vpack.c.bf16 %v4719_v51, %v4719_v51 }
 0xb08   :  { %1154 = vrot.lane.b32.xlu0 %v1152_v53, %s4385_s10 }
 0xb72   :  { %v1075_v52 = vpop.permute.xlu1 %1074 }
 0xb73   :  { %3607 = vmatmul.mubr.msk.bf16.vlgmr.msra.gmra.mxu0 %vm404_vm3, %v1075_v52 }
 0xb74   :  { %3619 = vmatpush3.bf16.msra.mxu0 %v4533_v16  ;;  %3622 = vmatprep.mubr.msk.bf16.mxu0 %vm4383_vm0, %v4382_v0 }
 0xb75   :  { %3620 = vmatprep.subr.bf16.mxu0 %v4382_v0 }
 0xb78   :  { %3621 = vmatpush3.bf16.msra.mxu0 %v4540_v17 }
 0xb79   :  { %3634 = vmatprep.subr.bf16.mxu0 %v4382_v0 }
 0xb7a   :  { %v1155_v55 = vpop.permute.xlu0 %1154 }
 0xb7b   :  { %3615 = vmatmul.mubr.msk.bf16.vlgmr.msra.gmra.mxu1 %vm404_vm3, %v1155_v55 }
 0xb7c   :  { %3627 = vmatpush3.bf16.msra.mxu1 %v4551_v18  ;;  %3630 = vmatprep.mubr.msk.bf16.mxu1 %vm4383_vm0, %v4382_v0 }
 0xb7d   :  { %3628 = vmatprep.subr.bf16.mxu1 %v4382_v0 }
 0xb80   :  { %3629 = vmatpush3.bf16.msra.mxu1 %v4558_v20 }
 0xb81   :  { %3642 = vmatprep.subr.bf16.mxu1 %v4382_v0 }
 0xc33   :  { %v1113_v57 = vpop.f32.mrf.mxu0 }
 0xc34   :  { %v1119_v56 = vadd.f32 %v1113_v57, %v4576_v32 }
 0xc35   :  { %v3608_v59 = vpop.f32.mrf.mxu0 }
 0xc36   :  { %3944 = vtanh.f32 %v1119_v56  ;;  %v3314_v11 = vmul.f32 -1.442695, %v1119_v56 }
 0xc37   :  { %v1116_v61 = vpop.f32.mrf.mxu0 }
 0xc39   :  { %v3609_v62 = vpop.f32.mrf.mxu0 }
 0xc3b   :  { %v1193_v63 = vpop.f32.mrf.mxu1 }
 0xc3c   :  { %v1200_v2 = vrot.slane %v1193_v63, 2 }
 0xc3d   :  { %v3616_v3 = vpop.f32.mrf.mxu1 }
 0xc3e   :  { %v1202_v4 = vadd.f32 %v1200_v2, %v4572_v23 }
 0xc3f   :  { %v1196_v5 = vpop.f32.mrf.mxu1 }
 0xc40   :  { %3946 = vtanh.f32 %v1202_v4  ;;  %v3316_v12 = vmul.f32 -1.442695, %v1202_v4 }
 0xc41   :  { %v3617_v7 = vpop.f32.mrf.mxu1  ;;  %3948 = vpow2.f32 %v3314_v11 }
 0xc42   :  { %3950 = vpow2.f32 %v3316_v12 }
 0xc43   :  { %v3945_v8 = vpop.eup %3944 }
 0xc44   :  { %1132 = vrot.lane.b32.xlu0 %v3945_v8, %s4372_s23 }
 0xc4d   :  { %v3947_v10 = vpop.eup %3946 }
 0xc4e   :  { %1215 = vrot.lane.b32.xlu1 %v3947_v10, %s4372_s23  ;;  %v3949_v13 = vpop.eup %3948 }
 0xc4f   :  { %v1123_v14 = vadd.f32 1.0, %v3949_v13  ;;  %v3951_v15 = vpop.eup %3950 }
 0xc50   :  { %v1206_v21 = vadd.f32 1.0, %v3951_v15 }
 0xc51   :  { %3952 = vrcp.f32 %v1123_v14 }
 0xc52   :  { %3954 = vrcp.f32 %v1206_v21 }
 0xc5e   :  { %v3953_v22 = vpop.eup %3952 }
 0xc5f   :  { %v3955_v25 = vpop.eup %3954  ;;  %v1130_v28 = vmul.f32 %v3953_v22, %v1128_v40 }
 0xc60   :  { %v1213_v34 = vmul.f32 %v3955_v25, %v1211_v33 }
 0xcb6   :  { %v1133_v24 = vpop.permute.xlu0 %1132 }
 0xcb7   :  { %v1135_v29 = vmul.f32 %v3953_v22, %v1133_v24 }
 0xcb9   :  { %1137 = vrot.lane.b32.xlu0 %v1135_v29, %s4385_s10 }
 0xcc0   :  { %v1216_v26 = vpop.permute.xlu1 %1215 }
 0xcc1   :  { %v1218_v27 = vmul.f32 %v3955_v25, %v1216_v26 }
 0xcc3   :  { %1220 = vrot.lane.b32.xlu1 %v1218_v27, %s4385_s10 }
 0xd2b   :  { %v1138_v30 = vpop.permute.xlu0 %1137 }
 0xd2c   :  { %v4745_v31 = vadd.f32 %v1138_v30, %v1130_v28 }
 0xd2e   :  { %3956 = vtanh.f32 %v4745_v31 }
 0xd35   :  { %v1221_v35 = vpop.permute.xlu1 %1220 }
 0xd36   :  { %v4749_v36 = vadd.f32 %v1221_v35, %v1213_v34 }
 0xd38   :  { %3958 = vtanh.f32 %v4749_v36  ;;  %v1378_v28 = vrot.slane %v4749_v36, 2 }
 0xd3b   :  { %v3957_v37 = vpop.eup %3956 }
 0xd3c   :  { %1143 = vrot.lane.b32.xlu0 %v3957_v37, %s4372_s23 }
 0xd45   :  { %v3959_v39 = vpop.eup %3958 }
 0xd46   :  { %1226 = vrot.lane.b32.xlu1 %v3959_v39, %s4372_s23 }
 0xdae   :  { %v1144_v38 = vpop.permute.xlu0 %1143 }
 0xdaf   :  { %v4754_v41 = vmul.f32 %v3953_v22, %v1144_v38 }
 0xdb1   :  { %v1235_v42 = vpack.c.bf16 %v4754_v41, %v4754_v41 }
 0xdb3   :  { %1237 = vrot.lane.b32.xlu0 %v1235_v42, %s4385_s10 }
 0xdb8   :  { %v1227_v43 = vpop.permute.xlu1 %1226 }
 0xdb9   :  { %v4759_v44 = vmul.f32 %v3955_v25, %v1227_v43  ;;  %v1294_v25 = vrot.slane %v4745_v31, 6 }
 0xdbb   :  { %v1318_v45 = vpack.c.bf16 %v4759_v44, %v4759_v44 }
 0xdbd   :  { %v1320_v46 = vrot.slane %v1318_v45, 3 }
 0xdbf   :  { %1321 = vrot.lane.b32.xlu1 %v1320_v46, %s4385_s10 }
 0xe25   :  { %v1238_v48 = vpop.permute.xlu0 %1237 }
 0xe26   :  { %3623 = vmatmul.mubr.msk.bf16.vlgmr.msra.gmra.mxu0 %vm404_vm3, %v1238_v48 }
 0xe27   :  { %3635 = vmatpush3.bf16.msra.mxu0 %v4533_v16  ;;  %3638 = vmatprep.mubr.msk.bf16.mxu0 %vm4383_vm0, %v4382_v0 }
 0xe28   :  { %3636 = vmatprep.subr.bf16.mxu0 %v4382_v0 }
 0xe2b   :  { %3637 = vmatpush3.bf16.msra.mxu0 %v4540_v17 }
 0xe2c   :  { %3650 = vmatprep.subr.bf16.mxu0 %v4382_v0 }
 0xe31   :  { %v1322_v49 = vpop.permute.xlu1 %1321 }
 0xe32   :  { %3631 = vmatmul.mubr.msk.bf16.vlgmr.msra.gmra.mxu1 %vm404_vm3, %v1322_v49 }
 0xe33   :  { %3643 = vmatpush3.bf16.msra.mxu1 %v4551_v18  ;;  %3646 = vmatprep.mubr.msk.bf16.mxu1 %vm4383_vm0, %v4382_v0 }
 0xe34   :  { %3644 = vmatprep.subr.bf16.mxu1 %v4382_v0 }
 0xe37   :  { %3645 = vmatpush3.bf16.msra.mxu1 %v4558_v20 }
 0xe38   :  { %3658 = vmatprep.subr.bf16.mxu1 %v4382_v0 }
 0xee6   :  { %v1276_v50 = vpop.f32.mrf.mxu0 }
 0xee7   :  { %v1283_v53 = vrot.slane %v1276_v50, 6 }
 0xee8   :  { %v3624_v52 = vpop.f32.mrf.mxu0 }
 0xee9   :  { %v1285_v55 = vadd.f32 %v1283_v53, %v4576_v32 }
 0xeea   :  { %v1279_v57 = vpop.f32.mrf.mxu0 }
 0xeeb   :  { %3960 = vtanh.f32 %v1285_v55  ;;  %v3318_v7 = vmul.f32 -1.442695, %v1285_v55 }
 0xeec   :  { %v3625_v56 = vpop.f32.mrf.mxu0 }
 0xef2   :  { %v1360_v59 = vpop.f32.mrf.mxu1 }
 0xef3   :  { %v1367_v61 = vrot.slane %v1360_v59, 4 }
 0xef4   :  { %v3632_v62 = vpop.f32.mrf.mxu1 }
 0xef5   :  { %v1369_v63 = vadd.f32 %v1367_v61, %v4572_v23 }
 0xef6   :  { %v1363_v2 = vpop.f32.mrf.mxu1 }
 0xef7   :  { %3962 = vtanh.f32 %v1369_v63  ;;  %v3320_v8 = vmul.f32 -1.442695, %v1369_v63 }
 0xef8   :  { %v3961_v3 = vpop.eup %3960  ;;  %v3633_v4 = vpop.f32.mrf.mxu1  ;;  %3964 = vpow2.f32 %v3318_v7 }
 0xef9   :  { %1298 = vrot.lane.b32.xlu0 %v3961_v3, %s4372_s23  ;;  %3966 = vpow2.f32 %v3320_v8 }
 0xf04   :  { %v3963_v5 = vpop.eup %3962 }
 0xf05   :  { %1382 = vrot.lane.b32.xlu1 %v3963_v5, %s4372_s23  ;;  %v3965_v10 = vpop.eup %3964 }
 0xf06   :  { %v1289_v11 = vadd.f32 1.0, %v3965_v10  ;;  %v3967_v12 = vpop.eup %3966 }
 0xf07   :  { %v1373_v13 = vadd.f32 1.0, %v3967_v12 }
 0xf08   :  { %3968 = vrcp.f32 %v1289_v11 }
 0xf09   :  { %3970 = vrcp.f32 %v1373_v13 }
 0xf15   :  { %v3969_v14 = vpop.eup %3968 }
 0xf16   :  { %v3971_v22 = vpop.eup %3970  ;;  %v1296_v26 = vmul.f32 %v3969_v14, %v1294_v25 }
 0xf17   :  { %v1380_v30 = vmul.f32 %v3971_v22, %v1378_v28 }
 0xf6b   :  { %v1299_v15 = vpop.permute.xlu0 %1298 }
 0xf6c   :  { %v1301_v21 = vmul.f32 %v3969_v14, %v1299_v15 }
 0xf6e   :  { %1303 = vrot.lane.b32.xlu0 %v1301_v21, %s4385_s10 }
 0xf77   :  { %v1383_v24 = vpop.permute.xlu1 %1382 }
 0xf78   :  { %v1385_v29 = vmul.f32 %v3971_v22, %v1383_v24 }
 0xf7a   :  { %1387 = vrot.lane.b32.xlu1 %v1385_v29, %s4385_s10 }
 0xfe0   :  { %v1304_v27 = vpop.permute.xlu0 %1303 }
 0xfe1   :  { %v4785_v40 = vadd.f32 %v1304_v27, %v1296_v26 }
 0xfe3   :  { %3972 = vtanh.f32 %v4785_v40  ;;  %v1462_v21 = vrot.slane %v4785_v40, 6 }
 0xfec   :  { %v1388_v33 = vpop.permute.xlu1 %1387 }
 0xfed   :  { %v4789_v34 = vadd.f32 %v1388_v33, %v1380_v30 }
 0xfef   :  { %3974 = vtanh.f32 %v4789_v34  ;;  %v1546_v25 = vrot.slane %v4789_v34, 2 }
 0xff0   :  { %v3973_v35 = vpop.eup %3972 }
 0xff1   :  { %1309 = vrot.lane.b32.xlu0 %v3973_v35, %s4372_s23 }
 0xffc   :  { %v3975_v37 = vpop.eup %3974 }
 0xffd   :  { %1393 = vrot.lane.b32.xlu1 %v3975_v37, %s4372_s23 }
0x1063   :  { %v1310_v31 = vpop.permute.xlu0 %1309 }
0x1064   :  { %v4794_v39 = vmul.f32 %v3969_v14, %v1310_v31 }
0x1066   :  { %v1402_v38 = vpack.c.bf16 %v4794_v39, %v4794_v39 }
0x1068   :  { %v1404_v42 = vrot.slane %v1402_v38, 1 }
0x106a   :  { %1405 = vrot.lane.b32.xlu0 %v1404_v42, %s4385_s10 }
0x106f   :  { %v1394_v36 = vpop.permute.xlu1 %1393 }
0x1070   :  { %v4799_v43 = vmul.f32 %v3971_v22, %v1394_v36 }
0x1072   :  { %v1486_v45 = vpack.c.bf16 %v4799_v43, %v4799_v43 }
0x1074   :  { %v1488_v46 = vrot.slane %v1486_v45, 2 }
0x1076   :  { %1489 = vrot.lane.b32.xlu1 %v1488_v46, %s4385_s10 }
0x10dc   :  { %v1406_v48 = vpop.permute.xlu0 %1405 }
0x10dd   :  { %3639 = vmatmul.mubr.msk.bf16.vlgmr.msra.gmra.mxu0 %vm404_vm3, %v1406_v48 }
0x10de   :  { %3651 = vmatpush3.bf16.msra.mxu0 %v4533_v16  ;;  %3654 = vmatprep.mubr.msk.bf16.mxu0 %vm4383_vm0, %v4382_v0 }
0x10df   :  { %3652 = vmatprep.subr.bf16.mxu0 %v4382_v0 }
0x10e2   :  { %3653 = vmatpush3.bf16.msra.mxu0 %v4540_v17 }
0x10e3   :  { %3666 = vmatprep.subr.bf16.mxu0 %v4382_v0 }
0x10e8   :  { %v1490_v49 = vpop.permute.xlu1 %1489 }
0x10e9   :  { %3647 = vmatmul.mubr.msk.bf16.vlgmr.msra.gmra.mxu1 %vm404_vm3, %v1490_v49 }
0x10ea   :  { %3659 = vmatpush3.bf16.msra.mxu1 %v4551_v18  ;;  %3662 = vmatprep.mubr.msk.bf16.mxu1 %vm4383_vm0, %v4382_v0 }
0x10eb   :  { %3660 = vmatprep.subr.bf16.mxu1 %v4382_v0 }
0x10ee   :  { %3661 = vmatpush3.bf16.msra.mxu1 %v4558_v20 }
0x10ef   :  { %3678 = vmatprep.subr.bf16.mxu1 %v4382_v0 }
0x119d   :  { %v1444_v16 = vpop.f32.mrf.mxu0 }
0x119e   :  { %v1451_v50 = vrot.slane %v1444_v16, 4 }
0x119f   :  { %v3640_v53 = vpop.f32.mrf.mxu0 }
0x11a0   :  { %v1453_v17 = vadd.f32 %v1451_v50, %v4576_v32 }
0x11a1   :  { %v1447_v52 = vpop.f32.mrf.mxu0 }
0x11a2   :  { %3976 = vtanh.f32 %v1453_v17  ;;  %v3322_v2 = vmul.f32 -1.442695, %v1453_v17 }
0x11a3   :  { %v3641_v55 = vpop.f32.mrf.mxu0 }
0x11a9   :  { %v1528_v57 = vpop.f32.mrf.mxu1 }
0x11aa   :  { %v1535_v56 = vrot.slane %v1528_v57, 6 }
0x11ab   :  { %v3648_v18 = vpop.f32.mrf.mxu1 }
0x11ac   :  { %v1537_v59 = vadd.f32 %v1535_v56, %v4572_v23 }
0x11ad   :  { %v1531_v61 = vpop.f32.mrf.mxu1 }
0x11ae   :  { %3978 = vtanh.f32 %v1537_v59  ;;  %v3324_v3 = vmul.f32 -1.442695, %v1537_v59 }
0x11af   :  { %v3977_v62 = vpop.eup %3976  ;;  %v3649_v63 = vpop.f32.mrf.mxu1  ;;  %3980 = vpow2.f32 %v3322_v2 }
0x11b0   :  { %1466 = vrot.lane.b32.xlu0 %v3977_v62, %s4372_s23  ;;  %3982 = vpow2.f32 %v3324_v3 }
0x11bb   :  { %v3979_v20 = vpop.eup %3978 }
0x11bc   :  { %1550 = vrot.lane.b32.xlu1 %v3979_v20, %s4372_s23  ;;  %v3981_v4 = vpop.eup %3980 }
0x11bd   :  { %v1457_v5 = vadd.f32 1.0, %v3981_v4  ;;  %v3983_v7 = vpop.eup %3982 }
0x11be   :  { %v1541_v8 = vadd.f32 1.0, %v3983_v7 }
0x11bf   :  { %3984 = vrcp.f32 %v1457_v5 }
0x11c0   :  { %3986 = vrcp.f32 %v1541_v8 }
0x11cc   :  { %v3985_v10 = vpop.eup %3984 }
0x11cd   :  { %v3987_v13 = vpop.eup %3986  ;;  %v1464_v22 = vmul.f32 %v3985_v10, %v1462_v21 }
0x11ce   :  { %v1548_v26 = vmul.f32 %v3987_v13, %v1546_v25 }
0x1222   :  { %v1467_v11 = vpop.permute.xlu0 %1466 }
0x1223   :  { %v1469_v12 = vmul.f32 %v3985_v10, %v1467_v11 }
0x1225   :  { %1471 = vrot.lane.b32.xlu0 %v1469_v12, %s4385_s10 }
0x122e   :  { %v1551_v14 = vpop.permute.xlu1 %1550 }
0x122f   :  { %v1553_v15 = vmul.f32 %v3987_v13, %v1551_v14 }
0x1231   :  { %1555 = vrot.lane.b32.xlu1 %v1553_v15, %s4385_s10 }
0x1297   :  { %v1472_v24 = vpop.permute.xlu0 %1471 }
0x1298   :  { %v4825_v29 = vadd.f32 %v1472_v24, %v1464_v22 }
0x129a   :  { %3988 = vtanh.f32 %v4825_v29  ;;  %v1630_v11 = vrot.slane %v4825_v29, 6 }
0x12a3   :  { %v1556_v27 = vpop.permute.xlu1 %1555 }
0x12a4   :  { %v4829_v28 = vadd.f32 %v1556_v27, %v1548_v26 }
0x12a6   :  { %3990 = vtanh.f32 %v4829_v28  ;;  %v1711_v15 = vrot.slane %v4829_v28, 2 }
0x12a7   :  { %v3989_v30 = vpop.eup %3988 }
0x12a8   :  { %1477 = vrot.lane.b32.xlu0 %v3989_v30, %s4372_s23 }
0x12b3   :  { %v3991_v33 = vpop.eup %3990 }
0x12b4   :  { %1561 = vrot.lane.b32.xlu1 %v3991_v33, %s4372_s23 }
0x131a   :  { %v1478_v40 = vpop.permute.xlu0 %1477 }
0x131b   :  { %v4834_v35 = vmul.f32 %v3985_v10, %v1478_v40 }
0x131d   :  { %v1570_v37 = vpack.c.bf16 %v4834_v35, %v4834_v35 }
0x131f   :  { %v1572_v31 = vrot.slane %v1570_v37, 2 }
0x1321   :  { %1573 = vrot.lane.b32.xlu0 %v1572_v31, %s4385_s10 }
0x1326   :  { %v1562_v34 = vpop.permute.xlu1 %1561 }
0x1327   :  { %v4839_v38 = vmul.f32 %v3987_v13, %v1562_v34 }
0x1329   :  { %v1654_v42 = vpack.c.bf16 %v4839_v38, %v4839_v38 }
0x132b   :  { %v1656_v36 = vrot.slane %v1654_v42, 1 }
0x132d   :  { %1657 = vrot.lane.b32.xlu1 %v1656_v36, %s4385_s10 }
0x1393   :  { %v1574_v45 = vpop.permute.xlu0 %1573 }
0x1394   :  { %3655 = vmatmul.mubr.msk.bf16.vlgmr.msra.gmra.mxu0 %vm404_vm3, %v1574_v45 }
0x1395   :  { %3674 = vmatprep.mubr.msk.bf16.mxu0 %vm4383_vm0, %v4382_v0 }
0x139f   :  { %v1658_v46 = vpop.permute.xlu1 %1657 }
0x13a0   :  { %3663 = vmatmul.mubr.msk.bf16.vlgmr.msra.gmra.mxu1 %vm404_vm3, %v1658_v46 }
0x13a1   :  { %3686 = vmatprep.mubr.msk.bf16.mxu1 %vm4383_vm0, %v4382_v0 }
0x1454   :  { %v1612_v48 = vpop.f32.mrf.mxu0 }
0x1455   :  { %v1619_v49 = vrot.slane %v1612_v48, 2 }
0x1456   :  { %v3656_v16 = vpop.f32.mrf.mxu0 }
0x1457   :  { %v1621_v50 = vadd.f32 %v1619_v49, %v4576_v32  ;;  %v4934_v49 = vld [vmem:[%s5234_s8 + $0x8] sm:$0xff]  }
0x1458   :  { %v1615_v53 = vpop.f32.mrf.mxu0 }
0x1459   :  { %3992 = vtanh.f32 %v1621_v50  ;;  %v3326_v62 = vmul.f32 -1.442695, %v1621_v50  ;;  %v4936_v53 = vld [vmem:[#allocation19 + $0x8] sm:$0xff]  }
0x145a   :  { %v3657_v17 = vpop.f32.mrf.mxu0 }
0x1460   :  { %v1696_v52 = vpop.f32.mrf.mxu1 }
0x1461   :  { %v1702_v55 = vadd.f32 %v1696_v52, %v4572_v23  ;;  %v4945_v52 = vld [vmem:[%s5234_s8] sm:$0xff]  }
0x1462   :  { %v3664_v57 = vpop.f32.mrf.mxu1 }
0x1463   :  { %3994 = vtanh.f32 %v1702_v55  ;;  %v3328_v63 = vmul.f32 -1.442695, %v1702_v55  ;;  %v4947_v55 = vld [vmem:[#allocation19] sm:$0xff]  }
0x1464   :  { %v1699_v56 = vpop.f32.mrf.mxu1  ;;  %3996 = vpow2.f32 %v3326_v62  ;;  %v3329_v62 = vld [vmem:[#allocation16] ss:$0 sm:$0xff] }
0x1465   :  { %3998 = vpow2.f32 %v3328_v63 }
0x1466   :  { %v3993_v18 = vpop.eup %3992  ;;  %v3665_v59 = vpop.f32.mrf.mxu1 }
0x1467   :  { %1634 = vrot.lane.b32.xlu0 %v3993_v18, %s4372_s23 }
0x1470   :  { %v3995_v61 = vpop.eup %3994 }
0x1471   :  { %1715 = vrot.lane.b32.xlu1 %v3995_v61, %s4372_s23  ;;  %v3997_v32 = vpop.eup %3996 }
0x1472   :  { %v1625_v20 = vadd.f32 1.0, %v3997_v32  ;;  %v3999_v2 = vpop.eup %3998 }
0x1473   :  { %v1706_v3 = vadd.f32 1.0, %v3999_v2 }
0x1474   :  { %4000 = vrcp.f32 %v1625_v20 }
0x1475   :  { %4002 = vrcp.f32 %v1706_v3 }
0x1481   :  { %v4001_v23 = vpop.eup %4000 }
0x1482   :  { %v4855_v7 = vpop.eup %4002  ;;  %v1632_v12 = vmul.f32 %v4001_v23, %v1630_v11 }
0x1483   :  { %v1713_v21 = vmul.f32 %v4855_v7, %v1711_v15 }
0x14d9   :  { %v1635_v4 = vpop.permute.xlu0 %1634 }
0x14da   :  { %v1637_v5 = vmul.f32 %v4001_v23, %v1635_v4 }
0x14dc   :  { %1639 = vrot.lane.b32.xlu0 %v1637_v5, %s4385_s10 }
0x14e3   :  { %v1716_v8 = vpop.permute.xlu1 %1715 }
0x14e4   :  { %v1718_v10 = vmul.f32 %v4855_v7, %v1716_v8 }
0x14e6   :  { %1720 = vrot.lane.b32.xlu1 %v1718_v10, %s4385_s10 }
0x154e   :  { %v1640_v13 = vpop.permute.xlu0 %1639 }
0x154f   :  { %v1642_v14 = vadd.f32 %v1640_v13, %v1632_v12 }
0x1551   :  { %4004 = vtanh.f32 %v1642_v14 }
0x1558   :  { %v1721_v22 = vpop.permute.xlu1 %1720 }
0x1559   :  { %v1723_v24 = vadd.f32 %v1721_v22, %v1713_v21 }
0x155b   :  { %4006 = vtanh.f32 %v1723_v24 }
0x155e   :  { %v4005_v25 = vpop.eup %4004 }
0x155f   :  { %1645 = vrot.lane.b32.xlu0 %v4005_v25, %s4372_s23 }
0x1563   :  { %474 = vrot.lane.b32.xlu0 %v4594_v6, %s4385_s10  ;;  %v3864_v6 = vld [vmem:[%s5233_s7 + $0x18] sm:$0xff]  }
0x1564   :  { %3667 = vmatpush3.bf16.msra.mxu0 %v3864_v6 }
0x1565   :  { %3668 = vmatprep.subr.bf16.mxu0 %v4382_v0 }
0x1567   :  { %644 = vrot.lane.b32.xlu0 %v4634_v60, %s4385_s10  ;;  %v3866_v60 = vld [vmem:[#allocation18 + $0x10] sm:$0xff]  }
0x1568   :  { %v4007_v29 = vpop.eup %4006 }
0x1569   :  { %1726 = vrot.lane.b32.xlu1 %v4007_v29, %s4372_s23 }
0x156b   :  { %814 = vrot.lane.b32.xlu0 %v4674_v54, %s4385_s10 }
0x156d   :  { %560 = vrot.lane.b32.xlu1 %v4599_v9, %s4372_s23  ;;  %v3865_v9 = vld [vmem:[#allocation18 + $0x18] sm:$0xff]  }
0x156e   :  { %3679 = vmatpush3.bf16.msra.mxu1 %v3865_v9 }
0x156f   :  { %984 = vrot.lane.b32.xlu0 %v4714_v47, %s4385_s10  ;;  %3680 = vmatprep.subr.bf16.mxu1 %v4382_v0  ;;  %v3869_v47 = vld [vmem:[#allocation18 + $0x8] sm:$0xff]  }
0x1571   :  { %729 = vrot.lane.b32.xlu1 %v4639_v1, %s4372_s23  ;;  %v3867_v1 = vld [vmem:[%s5233_s7 + $0x10] sm:$0xff]  }
0x1572   :  { %3681 = vmatpush3.bf16.msra.mxu1 %v3866_v60  ;;  %3669 = vmatpush3.bf16.msra.mxu0 %v3867_v1 }
0x1573   :  { %1148 = vrot.lane.b32.xlu0 %v4754_v41, %s4385_s10  ;;  %3682 = vmatprep.subr.bf16.mxu1 %v4382_v0  ;;  %v3871_v41 = vld [vmem:[#allocation18] sm:$0xff]  }
0x1574   :  { %3670 = vmatprep.subr.bf16.mxu0 %v4382_v0 }
0x1575   :  { %899 = vrot.lane.b32.xlu1 %v4679_v58, %s4372_s23  ;;  %v3868_v58 = vld [vmem:[%s5233_s7 + $0x8] sm:$0xff]  }
0x1576   :  { %3683 = vmatpush3.bf16.msra.mxu1 %v3869_v47  ;;  %3671 = vmatpush3.bf16.msra.mxu0 %v3868_v58 }
0x1577   :  { %1314 = vrot.lane.b32.xlu0 %v4794_v39, %s4385_s10  ;;  %3672 = vmatprep.subr.bf16.mxu0 %v4382_v0 }
0x1578   :  { %3684 = vmatprep.subr.bf16.mxu1 %v4382_v0 }
0x1579   :  { %1066 = vrot.lane.b32.xlu1 %v4719_v51, %s4372_s23 }
0x157a   :  { %3685 = vmatpush3.bf16.msra.mxu1 %v3871_v41 }
0x157b   :  { %1482 = vrot.lane.b32.xlu0 %v4834_v35, %s4385_s10  ;;  %3698 = vmatprep.subr.bf16.mxu1 %v4382_v0 }
0x157d   :  { %1231 = vrot.lane.b32.xlu1 %v4759_v44, %s4372_s23  ;;  %v3870_v44 = vld [vmem:[%s5233_s7] sm:$0xff]  }
0x157e   :  { %3673 = vmatpush3.bf16.msra.mxu0 %v3870_v44 }
0x157f   :  { %3690 = vmatprep.subr.bf16.mxu0 %v4382_v0 }
0x1581   :  { %1398 = vrot.lane.b32.xlu1 %v4799_v43, %s4372_s23 }
0x1585   :  { %1566 = vrot.lane.b32.xlu1 %v4839_v38, %s4372_s23 }
0x15d1   :  { %v1646_v54 = vpop.permute.xlu0 %1645 }
0x15d2   :  { %v1648_v51 = vmul.f32 %v4001_v23, %v1646_v54 }
0x15d4   :  { %1650 = vrot.lane.b32.xlu0 %v1648_v51, %s4385_s10 }
0x15d5   :  { %v475_v39 = vpop.permute.xlu0 %474 }
0x15d6   :  { %478 = vst.msk [vmem:[#allocation2] sm:$0x3] %vm477_vm4, %v475_v39 }
0x15d9   :  { %v645_v43 = vpop.permute.xlu0 %644 }
0x15da   :  { %648 = vst.msk [vmem:[#allocation2] sm:$0xc] %vm647_vm5, %v645_v43 }
0x15db   :  { %v1727_v26 = vpop.permute.xlu1 %1726 }
0x15dc   :  { %v1729_v27 = vmul.f32 %v4855_v7, %v1727_v26 }
0x15dd   :  { %v815_v28 = vpop.permute.xlu0 %814 }
0x15de   :  { %818 = vst.msk [vmem:[#allocation2] sm:$0x30] %vm817_vm6, %v815_v28  ;;  %1731 = vrot.lane.b32.xlu1 %v1729_v27, %s4372_s23 }
0x15df   :  { %v561_v30 = vpop.permute.xlu1 %560 }
0x15e0   :  { %564 = vst.msk [vmem:[#allocation2 + $0x8] sm:$0xc0] %vm563_vm7, %v561_v30 }
0x15e1   :  { %v985_v33 = vpop.permute.xlu0 %984 }
0x15e2   :  { %988 = vst.msk [vmem:[#allocation2] sm:$0xc0] %vm987_vm8, %v985_v33 }
0x15e3   :  { %v730_v40 = vpop.permute.xlu1 %729 }
0x15e4   :  { %733 = vst.msk [vmem:[#allocation2 + $0x8] sm:$0x30] %vm732_vm9, %v730_v40 }
0x15e5   :  { %v1149_v35 = vpop.permute.xlu0 %1148 }
0x15e7   :  { %v900_v37 = vpop.permute.xlu1 %899 }
0x15e8   :  { %903 = vst.msk [vmem:[#allocation2 + $0x8] sm:$0xc] %vm902_vm10, %v900_v37 }
0x15e9   :  { %v1315_v31 = vpop.permute.xlu0 %1314 }
0x15ea   :  { %1317 = vst.msk [vmem:[#allocation2 + $0x8] sm:$0xc] %vm647_vm5, %v1315_v31 }
0x15eb   :  { %v1067_v34 = vpop.permute.xlu1 %1066 }
0x15ec   :  { %1070 = vst.msk [vmem:[#allocation2 + $0x8] sm:$0x3] %vm1069_vm11, %v1067_v34 }
0x15ed   :  { %1151 = vst.msk [vmem:[#allocation2 + $0x8] sm:$0x3] %vm477_vm4, %v1149_v35  ;;  %v1483_v38 = vpop.permute.xlu0 %1482 }
0x15ee   :  { %1485 = vst.msk [vmem:[#allocation2 + $0x8] sm:$0x30] %vm817_vm6, %v1483_v38 }
0x15ef   :  { %v1232_v42 = vpop.permute.xlu1 %1231 }
0x15f0   :  { %1234 = vst.msk [vmem:[#allocation2] sm:$0xc0] %vm563_vm7, %v1232_v42 }
0x15f3   :  { %v1399_v36 = vpop.permute.xlu1 %1398 }
0x15f4   :  { %1401 = vst.msk [vmem:[#allocation2] sm:$0x30] %vm732_vm9, %v1399_v36 }
0x15f7   :  { %v1567_v45 = vpop.permute.xlu1 %1566 }
0x15f8   :  { %1569 = vst.msk [vmem:[#allocation2] sm:$0xc] %vm902_vm10, %v1567_v45 }
0x1646   :  { %v1651_v46 = vpop.permute.xlu0 %1650 }
0x1647   :  { %1653 = vst.msk [vmem:[#allocation2 + $0x8] sm:$0xc0] %vm987_vm8, %v1651_v46 }
0x164e   :  { %v1736_v50 = vld [vmem:[#allocation2 + $0x8] sm:$0xff] }
0x1650   :  { %v1732_v48 = vpop.permute.xlu1 %1731 }
0x1651   :  { %1734 = vst.msk [vmem:[#allocation2] sm:$0x3] %vm1069_vm11, %v1732_v48 }
0x1658   :  { %v1735_v16 = vld [vmem:[#allocation2] sm:$0xff] }
0x1659   :  { %v1737_v17 = vpack.c.bf16 %v1736_v50, %v1735_v16 }
0x165b   :  { %3675 = vmatmul.mubr.msk.bf16.vlgmr.msra.gmra.mxu0 %vm1777_vm12, %v1737_v17  ;;  %3687 = vmatmul.mubr.msk.bf16.vlgmr.msra.gmra.mxu1 %vm1777_vm12, %v1737_v17 }
0x165c   :  { %3691 = vmatpush3.bf16.msra.mxu0 %v4934_v49  ;;  %3699 = vmatpush3.bf16.msra.mxu1 %v4936_v53 }
0x165d   :  { %3692 = vmatprep.subr.bf16.mxu0 %v4382_v0  ;;  %3700 = vmatprep.subr.bf16.mxu1 %v4382_v0 }
0x165e   :  { %3694 = vmatprep.mubr.msk.bf16.mxu0 %vm4383_vm0, %v4382_v0  ;;  %3702 = vmatprep.mubr.msk.bf16.mxu1 %vm4383_vm0, %v4382_v0 }
0x1660   :  { %3693 = vmatpush3.bf16.msra.mxu0 %v4945_v52  ;;  %3701 = vmatpush3.bf16.msra.mxu1 %v4947_v55 }
0x1661   :  { %3706 = vmatprep.subr.bf16.mxu0 %v4382_v0  ;;  %3714 = vmatprep.subr.bf16.mxu1 %v4382_v0 }
0x1663   :  { %3695 = vmatmul.mubr.bf16.vlgmr.msra.gmra.mxu0 %v4384_v19  ;;  %3703 = vmatmul.mubr.bf16.vlgmr.msra.gmra.mxu1 %v4384_v19  ;;  %v3335_v19 = vld [vmem:[%s5238_s12] ss:$0 sm:$0xff] }
0x1664   :  { %3707 = vmatpush3.bf16.msra.mxu0 %v4934_v49  ;;  %3715 = vmatpush3.bf16.msra.mxu1 %v4936_v53 }
0x1665   :  { %3708 = vmatprep.subr.bf16.mxu0 %v4382_v0  ;;  %3710 = vmatprep.mubr.msk.bf16.mxu0 %vm4383_vm0, %v4382_v0 }
0x1666   :  { %3716 = vmatprep.subr.bf16.mxu1 %v4382_v0  ;;  %3718 = vmatprep.mubr.msk.bf16.mxu1 %vm4383_vm0, %v4382_v0 }
0x1668   :  { %3709 = vmatpush3.bf16.msra.mxu0 %v4945_v52  ;;  %3717 = vmatpush3.bf16.msra.mxu1 %v4947_v55 }
0x1669   :  { %3722 = vmatprep.subr.bf16.mxu0 %v4382_v0  ;;  %3730 = vmatprep.subr.bf16.mxu1 %v4382_v0 }
0x171b   :  { %v1815_v57 = vpop.f32.mrf.mxu0  ;;  %v1899_v56 = vpop.f32.mrf.mxu1 }
0x171c   :  { %v4976_v18 = vadd.f32 %v3335_v19, %v1899_v56  ;;  %v4980_v23 = vadd.f32 %v3329_v62, %v1815_v57 }
0x171d   :  { %v3676_v59 = vpop.f32.mrf.mxu0  ;;  %v3688_v61 = vpop.f32.mrf.mxu1 }
0x171f   :  { %v1818_v63 = vpop.f32.mrf.mxu0  ;;  %v1902_v32 = vpop.f32.mrf.mxu1 }
0x1720   :  { %v4978_v20 = vadd.f32 %v3329_v62, %v1818_v63  ;;  %v4982_v7 = vadd.f32 %v3335_v19, %v1902_v32 }
0x1721   :  { %v3677_v2 = vpop.f32.mrf.mxu0  ;;  %v3689_v3 = vpop.f32.mrf.mxu1 }
0x1723   :  { %v1956_v4 = vpop.f32.mrf.mxu0  ;;  %v2033_v5 = vpop.f32.mrf.mxu1 }
0x1724   :  { %v1962_v8 = vadd.f32 %v1956_v4, %v4980_v23  ;;  %v2040_v10 = vrot.slane %v2033_v5, 2 }
0x1725   :  { %v3696_v11 = vpop.f32.mrf.mxu0  ;;  %v3704_v12 = vpop.f32.mrf.mxu1 }
0x1726   :  { %4008 = vtanh.f32 %v1962_v8  ;;  %v2042_v13 = vadd.f32 %v2040_v10, %v4982_v7  ;;  %v3343_v29 = vmul.f32 -1.442695, %v1962_v8 }
0x1727   :  { %v1959_v14 = vpop.f32.mrf.mxu0  ;;  %v2036_v15 = vpop.f32.mrf.mxu1 }
0x1728   :  { %4010 = vtanh.f32 %v2042_v13  ;;  %v3346_v6 = vmul.f32 -1.442695, %v2042_v13 }
0x1729   :  { %v3697_v21 = vpop.f32.mrf.mxu0  ;;  %v3705_v22 = vpop.f32.mrf.mxu1  ;;  %4012 = vpow2.f32 %v3343_v29 }
0x172a   :  { %4014 = vpow2.f32 %v3346_v6 }
0x1733   :  { %v4009_v24 = vpop.eup %4008 }
0x1734   :  { %1972 = vrot.lane.b32.xlu1 %v4009_v24, %s4372_s23 }
0x1735   :  { %v4011_v25 = vpop.eup %4010 }
0x1736   :  { %2052 = vrot.lane.b32.xlu0 %v4011_v25, %s4372_s23  ;;  %v4013_v9 = vpop.eup %4012 }
0x1737   :  { %v4015_v60 = vpop.eup %4014  ;;  %v1966_v1 = vadd.f32 1.0, %v4013_v9 }
0x1738   :  { %v2046_v54 = vadd.f32 1.0, %v4015_v60 }
0x1739   :  { %4016 = vrcp.f32 %v1966_v1 }
0x173a   :  { %4018 = vrcp.f32 %v2046_v54 }
0x1746   :  { %v4017_v58 = vpop.eup %4016 }
0x1747   :  { %v4019_v41 = vpop.eup %4018  ;;  %v1970_v43 = vmul.f32 0.0, %v4017_v58 }
0x1748   :  { %v2050_v28 = vmul.f32 0.0, %v4019_v41 }
0x17a6   :  { %v1973_v47 = vpop.permute.xlu1 %1972 }
0x17a7   :  { %v1975_v51 = vmul.f32 %v4017_v58, %v1973_v47 }
0x17a8   :  { %v2053_v44 = vpop.permute.xlu0 %2052 }
0x17a9   :  { %1977 = vrot.lane.b32.xlu1 %v1975_v51, %s4385_s10  ;;  %v2055_v39 = vmul.f32 %v4019_v41, %v2053_v44 }
0x17ab   :  { %2057 = vrot.lane.b32.xlu0 %v2055_v39, %s4385_s10 }
0x181b   :  { %v1978_v26 = vpop.permute.xlu1 %1977 }
0x181c   :  { %v4990_v27 = vadd.f32 %v1978_v26, %v1970_v43 }
0x181d   :  { %v2058_v30 = vpop.permute.xlu0 %2057 }
0x181e   :  { %4020 = vtanh.f32 %v4990_v27  ;;  %v4993_v33 = vadd.f32 %v2058_v30, %v2050_v28  ;;  %v2126_v29 = vrot.slane %v4990_v27, 6 }
0x1820   :  { %4022 = vtanh.f32 %v4993_v33  ;;  %v2205_v1 = vrot.slane %v4993_v33, 2 }
0x182b   :  { %v4021_v40 = vpop.eup %4020 }
0x182c   :  { %1983 = vrot.lane.b32.xlu1 %v4021_v40, %s4372_s23 }
0x182d   :  { %v4023_v35 = vpop.eup %4022 }
0x182e   :  { %2063 = vrot.lane.b32.xlu0 %v4023_v35, %s4372_s23 }
0x189e   :  { %v1984_v37 = vpop.permute.xlu1 %1983 }
0x189f   :  { %v1986_v31 = vmul.f32 %v4017_v58, %v1984_v37 }
0x18a0   :  { %v2064_v38 = vpop.permute.xlu0 %2063 }
0x18a1   :  { %v2067_v34 = vpack.c.bf16 %v1986_v31, %v1986_v31  ;;  %v2066_v42 = vmul.f32 %v4019_v41, %v2064_v38 }
0x18a3   :  { %2069 = vrot.lane.b32.xlu0 %v2067_v34, %s4385_s10  ;;  %v2145_v36 = vpack.c.bf16 %v2066_v42, %v2066_v42 }
0x18a5   :  { %v2147_v45 = vrot.slane %v2145_v36, 3 }
0x18a7   :  { %2148 = vrot.lane.b32.xlu1 %v2147_v45, %s4385_s10 }
0x1915   :  { %v2070_v46 = vpop.permute.xlu0 %2069 }
0x1916   :  { %3711 = vmatmul.mubr.msk.bf16.vlgmr.msra.gmra.mxu0 %vm404_vm3, %v2070_v46 }
0x1917   :  { %3723 = vmatpush3.bf16.msra.mxu0 %v4934_v49  ;;  %3726 = vmatprep.mubr.msk.bf16.mxu0 %vm4383_vm0, %v4382_v0 }
0x1918   :  { %3724 = vmatprep.subr.bf16.mxu0 %v4382_v0 }
0x1919   :  { %v2149_v48 = vpop.permute.xlu1 %2148 }
0x191a   :  { %3719 = vmatmul.mubr.msk.bf16.vlgmr.msra.gmra.mxu1 %vm404_vm3, %v2149_v48 }
0x191b   :  { %3725 = vmatpush3.bf16.msra.mxu0 %v4945_v52  ;;  %3731 = vmatpush3.bf16.msra.mxu1 %v4936_v53 }
0x191c   :  { %3734 = vmatprep.mubr.msk.bf16.mxu1 %vm4383_vm0, %v4382_v0  ;;  %3732 = vmatprep.subr.bf16.mxu1 %v4382_v0 }
0x191d   :  { %3738 = vmatprep.subr.bf16.mxu0 %v4382_v0 }
0x191f   :  { %3733 = vmatpush3.bf16.msra.mxu1 %v4947_v55 }
0x1920   :  { %3746 = vmatprep.subr.bf16.mxu1 %v4382_v0 }
0x19d6   :  { %v2108_v16 = vpop.f32.mrf.mxu0 }
0x19d7   :  { %v2115_v50 = vrot.slane %v2108_v16, 6 }
0x19d8   :  { %v3712_v17 = vpop.f32.mrf.mxu0 }
0x19d9   :  { %v2117_v19 = vadd.f32 %v2115_v50, %v4980_v23 }
0x19da   :  { %v2111_v57 = vpop.f32.mrf.mxu0  ;;  %v2187_v56 = vpop.f32.mrf.mxu1 }
0x19db   :  { %4024 = vtanh.f32 %v2117_v19  ;;  %v2194_v59 = vrot.slane %v2187_v56, 4  ;;  %v3348_v5 = vmul.f32 -1.442695, %v2117_v19 }
0x19dc   :  { %v3713_v61 = vpop.f32.mrf.mxu0  ;;  %v3720_v62 = vpop.f32.mrf.mxu1 }
0x19dd   :  { %v2196_v63 = vadd.f32 %v2194_v59, %v4982_v7 }
0x19de   :  { %v2190_v32 = vpop.f32.mrf.mxu1 }
0x19df   :  { %4026 = vtanh.f32 %v2196_v63  ;;  %v3350_v8 = vmul.f32 -1.442695, %v2196_v63 }
0x19e0   :  { %v3721_v2 = vpop.f32.mrf.mxu1  ;;  %4028 = vpow2.f32 %v3348_v5 }
0x19e1   :  { %4030 = vpow2.f32 %v3350_v8 }
0x19e8   :  { %v4025_v3 = vpop.eup %4024 }
0x19e9   :  { %2130 = vrot.lane.b32.xlu0 %v4025_v3, %s4372_s23 }
0x19ec   :  { %v4027_v4 = vpop.eup %4026 }
0x19ed   :  { %2209 = vrot.lane.b32.xlu1 %v4027_v4, %s4372_s23  ;;  %v4029_v10 = vpop.eup %4028 }
0x19ee   :  { %v2121_v11 = vadd.f32 1.0, %v4029_v10  ;;  %v4031_v12 = vpop.eup %4030 }
0x19ef   :  { %v2200_v13 = vadd.f32 1.0, %v4031_v12 }
0x19f0   :  { %4032 = vrcp.f32 %v2121_v11 }
0x19f1   :  { %4034 = vrcp.f32 %v2200_v13 }
0x19fd   :  { %v4033_v14 = vpop.eup %4032 }
0x19fe   :  { %v4035_v22 = vpop.eup %4034  ;;  %v2128_v6 = vmul.f32 %v4033_v14, %v2126_v29 }
0x19ff   :  { %v2207_v54 = vmul.f32 %v4035_v22, %v2205_v1 }
0x1a5b   :  { %v2131_v15 = vpop.permute.xlu0 %2130 }
0x1a5c   :  { %v2133_v21 = vmul.f32 %v4033_v14, %v2131_v15 }
0x1a5e   :  { %2135 = vrot.lane.b32.xlu0 %v2133_v21, %s4385_s10 }
0x1a5f   :  { %v2210_v24 = vpop.permute.xlu1 %2209 }
0x1a60   :  { %v2212_v25 = vmul.f32 %v4035_v22, %v2210_v24 }
0x1a62   :  { %2214 = vrot.lane.b32.xlu1 %v2212_v25, %s4385_s10 }
0x1ad0   :  { %v2136_v9 = vpop.permute.xlu0 %2135 }
0x1ad1   :  { %v5021_v60 = vadd.f32 %v2136_v9, %v2128_v6 }
0x1ad3   :  { %4036 = vtanh.f32 %v5021_v60  ;;  %v2284_v11 = vrot.slane %v5021_v60, 6 }
0x1ad4   :  { %v2215_v58 = vpop.permute.xlu1 %2214 }
0x1ad5   :  { %v5025_v47 = vadd.f32 %v2215_v58, %v2207_v54 }
0x1ad7   :  { %4038 = vtanh.f32 %v5025_v47  ;;  %v2363_v15 = vrot.slane %v5025_v47, 2 }
0x1ae0   :  { %v4037_v51 = vpop.eup %4036 }
0x1ae1   :  { %2141 = vrot.lane.b32.xlu0 %v4037_v51, %s4372_s23 }
0x1ae4   :  { %v4039_v41 = vpop.eup %4038 }
0x1ae5   :  { %2220 = vrot.lane.b32.xlu1 %v4039_v41, %s4372_s23 }
0x1b53   :  { %v2142_v44 = vpop.permute.xlu0 %2141 }
0x1b54   :  { %v2144_v39 = vmul.f32 %v4033_v14, %v2142_v44 }
0x1b56   :  { %v2224_v43 = vpack.c.bf16 %v2144_v39, %v2144_v39 }
0x1b57   :  { %v2221_v27 = vpop.permute.xlu1 %2220 }
0x1b58   :  { %v2226_v26 = vrot.slane %v2224_v43, 1  ;;  %v2223_v28 = vmul.f32 %v4035_v22, %v2221_v27 }
0x1b5a   :  { %2227 = vrot.lane.b32.xlu0 %v2226_v26, %s4385_s10  ;;  %v2303_v30 = vpack.c.bf16 %v2223_v28, %v2223_v28 }
0x1b5c   :  { %v2305_v33 = vrot.slane %v2303_v30, 2 }
0x1b5e   :  { %2306 = vrot.lane.b32.xlu1 %v2305_v33, %s4385_s10 }
0x1bcc   :  { %v2228_v40 = vpop.permute.xlu0 %2227 }
0x1bcd   :  { %3727 = vmatmul.mubr.msk.bf16.vlgmr.msra.gmra.mxu0 %vm404_vm3, %v2228_v40 }
0x1bce   :  { %3739 = vmatpush3.bf16.msra.mxu0 %v4934_v49  ;;  %3742 = vmatprep.mubr.msk.bf16.mxu0 %vm4383_vm0, %v4382_v0 }
0x1bcf   :  { %3740 = vmatprep.subr.bf16.mxu0 %v4382_v0 }
0x1bd0   :  { %v2307_v35 = vpop.permute.xlu1 %2306 }
0x1bd1   :  { %3735 = vmatmul.mubr.msk.bf16.vlgmr.msra.gmra.mxu1 %vm404_vm3, %v2307_v35 }
0x1bd2   :  { %3741 = vmatpush3.bf16.msra.mxu0 %v4945_v52  ;;  %3747 = vmatpush3.bf16.msra.mxu1 %v4936_v53 }
0x1bd3   :  { %3750 = vmatprep.mubr.msk.bf16.mxu1 %vm4383_vm0, %v4382_v0  ;;  %3748 = vmatprep.subr.bf16.mxu1 %v4382_v0 }
0x1bd4   :  { %3754 = vmatprep.subr.bf16.mxu0 %v4382_v0 }
0x1bd6   :  { %3749 = vmatpush3.bf16.msra.mxu1 %v4947_v55 }
0x1bd7   :  { %3762 = vmatprep.subr.bf16.mxu1 %v4382_v0 }
0x1c8d   :  { %v2266_v37 = vpop.f32.mrf.mxu0 }
0x1c8e   :  { %v2273_v31 = vrot.slane %v2266_v37, 4 }
0x1c8f   :  { %v3728_v34 = vpop.f32.mrf.mxu0 }
0x1c90   :  { %v2275_v38 = vadd.f32 %v2273_v31, %v4980_v23 }
0x1c91   :  { %v2269_v42 = vpop.f32.mrf.mxu0  ;;  %v2345_v36 = vpop.f32.mrf.mxu1 }
0x1c92   :  { %4040 = vtanh.f32 %v2275_v38  ;;  %v2352_v45 = vrot.slane %v2345_v36, 6  ;;  %v3352_v56 = vmul.f32 -1.442695, %v2275_v38 }
0x1c93   :  { %v3729_v46 = vpop.f32.mrf.mxu0  ;;  %v3736_v48 = vpop.f32.mrf.mxu1 }
0x1c94   :  { %v2354_v16 = vadd.f32 %v2352_v45, %v4982_v7 }
0x1c95   :  { %v2348_v50 = vpop.f32.mrf.mxu1 }
0x1c96   :  { %4042 = vtanh.f32 %v2354_v16  ;;  %v3354_v59 = vmul.f32 -1.442695, %v2354_v16 }
0x1c97   :  { %v3737_v17 = vpop.f32.mrf.mxu1  ;;  %4044 = vpow2.f32 %v3352_v56 }
0x1c98   :  { %4046 = vpow2.f32 %v3354_v59 }
0x1c9f   :  { %v4041_v19 = vpop.eup %4040 }
0x1ca0   :  { %2288 = vrot.lane.b32.xlu0 %v4041_v19, %s4372_s23 }
0x1ca3   :  { %v4043_v57 = vpop.eup %4042 }
0x1ca4   :  { %2367 = vrot.lane.b32.xlu1 %v4043_v57, %s4372_s23  ;;  %v4045_v61 = vpop.eup %4044 }
0x1ca5   :  { %v2279_v62 = vadd.f32 1.0, %v4045_v61  ;;  %v4047_v63 = vpop.eup %4046 }
0x1ca6   :  { %v2358_v32 = vadd.f32 1.0, %v4047_v63 }
0x1ca7   :  { %4048 = vrcp.f32 %v2279_v62 }
0x1ca8   :  { %4050 = vrcp.f32 %v2358_v32 }
0x1cb4   :  { %v4049_v2 = vpop.eup %4048 }
0x1cb5   :  { %v4051_v5 = vpop.eup %4050  ;;  %v2286_v12 = vmul.f32 %v4049_v2, %v2284_v11 }
0x1cb6   :  { %v2365_v21 = vmul.f32 %v4051_v5, %v2363_v15 }
0x1d12   :  { %v2289_v3 = vpop.permute.xlu0 %2288 }
0x1d13   :  { %v2291_v4 = vmul.f32 %v4049_v2, %v2289_v3 }
0x1d15   :  { %2293 = vrot.lane.b32.xlu0 %v2291_v4, %s4385_s10 }
0x1d16   :  { %v2368_v8 = vpop.permute.xlu1 %2367 }
0x1d17   :  { %v2370_v10 = vmul.f32 %v4051_v5, %v2368_v8 }
0x1d19   :  { %2372 = vrot.lane.b32.xlu1 %v2370_v10, %s4385_s10 }
0x1d87   :  { %v2294_v13 = vpop.permute.xlu0 %2293 }
0x1d88   :  { %v5053_v14 = vadd.f32 %v2294_v13, %v2286_v12 }
0x1d8a   :  { %4052 = vtanh.f32 %v5053_v14  ;;  %v2442_v56 = vrot.slane %v5053_v14, 6 }
0x1d8b   :  { %v2373_v22 = vpop.permute.xlu1 %2372 }
0x1d8c   :  { %v5057_v24 = vadd.f32 %v2373_v22, %v2365_v21 }
0x1d8e   :  { %4054 = vtanh.f32 %v5057_v24  ;;  %v2518_v61 = vrot.slane %v5057_v24, 2 }
0x1d97   :  { %v4053_v25 = vpop.eup %4052 }
0x1d98   :  { %2299 = vrot.lane.b32.xlu0 %v4053_v25, %s4372_s23 }
0x1d9b   :  { %v4055_v29 = vpop.eup %4054 }
0x1d9c   :  { %2378 = vrot.lane.b32.xlu1 %v4055_v29, %s4372_s23 }
0x1e0a   :  { %v2300_v6 = vpop.permute.xlu0 %2299 }
0x1e0b   :  { %v2302_v9 = vmul.f32 %v4049_v2, %v2300_v6 }
0x1e0d   :  { %v2382_v60 = vpack.c.bf16 %v2302_v9, %v2302_v9 }
0x1e0e   :  { %v2379_v54 = vpop.permute.xlu1 %2378 }
0x1e0f   :  { %v2384_v1 = vrot.slane %v2382_v60, 2  ;;  %v2381_v58 = vmul.f32 %v4051_v5, %v2379_v54 }
0x1e11   :  { %2385 = vrot.lane.b32.xlu0 %v2384_v1, %s4385_s10  ;;  %v2461_v47 = vpack.c.bf16 %v2381_v58, %v2381_v58 }
0x1e13   :  { %v2463_v51 = vrot.slane %v2461_v47, 1 }
0x1e15   :  { %2464 = vrot.lane.b32.xlu1 %v2463_v51, %s4385_s10 }
0x1e83   :  { %v2386_v41 = vpop.permute.xlu0 %2385 }
0x1e84   :  { %3743 = vmatmul.mubr.msk.bf16.vlgmr.msra.gmra.mxu0 %vm404_vm3, %v2386_v41 }
0x1e85   :  { %3755 = vmatpush3.bf16.msra.mxu0 %v4934_v49  ;;  %3758 = vmatprep.mubr.msk.bf16.mxu0 %vm4383_vm0, %v4382_v0 }
0x1e86   :  { %3756 = vmatprep.subr.bf16.mxu0 %v4382_v0 }
0x1e87   :  { %v2465_v44 = vpop.permute.xlu1 %2464 }
0x1e88   :  { %3751 = vmatmul.mubr.msk.bf16.vlgmr.msra.gmra.mxu1 %vm404_vm3, %v2465_v44 }
0x1e89   :  { %3757 = vmatpush3.bf16.msra.mxu0 %v4945_v52  ;;  %3763 = vmatpush3.bf16.msra.mxu1 %v4936_v53 }
0x1e8a   :  { %3766 = vmatprep.mubr.msk.bf16.mxu1 %vm4383_vm0, %v4382_v0  ;;  %3764 = vmatprep.subr.bf16.mxu1 %v4382_v0 }
0x1e8b   :  { %3770 = vmatprep.subr.bf16.mxu0 %v4382_v0 }
0x1e8d   :  { %3765 = vmatpush3.bf16.msra.mxu1 %v4947_v55 }
0x1e8e   :  { %3778 = vmatprep.subr.bf16.mxu1 %v4382_v0 }
0x1f44   :  { %v2424_v39 = vpop.f32.mrf.mxu0 }
0x1f45   :  { %v2431_v43 = vrot.slane %v2424_v39, 2 }
0x1f46   :  { %v3744_v26 = vpop.f32.mrf.mxu0 }
0x1f47   :  { %v2433_v27 = vadd.f32 %v2431_v43, %v4980_v23 }
0x1f48   :  { %v2427_v28 = vpop.f32.mrf.mxu0  ;;  %v2503_v30 = vpop.f32.mrf.mxu1 }
0x1f49   :  { %4056 = vtanh.f32 %v2433_v27  ;;  %v2509_v33 = vadd.f32 %v2503_v30, %v4982_v7  ;;  %v3356_v42 = vmul.f32 -1.442695, %v2433_v27 }
0x1f4a   :  { %v3745_v40 = vpop.f32.mrf.mxu0  ;;  %v3752_v35 = vpop.f32.mrf.mxu1 }
0x1f4b   :  { %4058 = vtanh.f32 %v2509_v33  ;;  %v3358_v36 = vmul.f32 -1.442695, %v2509_v33 }
0x1f4c   :  { %v2506_v37 = vpop.f32.mrf.mxu1  ;;  %4060 = vpow2.f32 %v3356_v42 }
0x1f4d   :  { %4062 = vpow2.f32 %v3358_v36 }
0x1f4e   :  { %v3753_v31 = vpop.f32.mrf.mxu1 }
0x1f56   :  { %v4057_v34 = vpop.eup %4056 }
0x1f57   :  { %2446 = vrot.lane.b32.xlu1 %v4057_v34, %s4372_s23 }
0x1f58   :  { %v4059_v38 = vpop.eup %4058 }
0x1f59   :  { %2522 = vrot.lane.b32.xlu0 %v4059_v38, %s4372_s23  ;;  %v4061_v23 = vpop.eup %4060 }
0x1f5a   :  { %v4063_v45 = vpop.eup %4062  ;;  %v2437_v46 = vadd.f32 1.0, %v4061_v23 }
0x1f5b   :  { %v2513_v48 = vadd.f32 1.0, %v4063_v45 }
0x1f5c   :  { %4064 = vrcp.f32 %v2437_v46 }
0x1f5d   :  { %4066 = vrcp.f32 %v2513_v48 }
0x1f69   :  { %v4065_v7 = vpop.eup %4064 }
0x1f6a   :  { %v4067_v17 = vpop.eup %4066  ;;  %v2444_v59 = vmul.f32 %v4065_v7, %v2442_v56 }
0x1f6b   :  { %v2520_v32 = vmul.f32 %v4067_v17, %v2518_v61 }
0x1fc9   :  { %v2447_v16 = vpop.permute.xlu1 %2446 }
0x1fca   :  { %v2449_v50 = vmul.f32 %v4065_v7, %v2447_v16 }
0x1fcb   :  { %v2523_v19 = vpop.permute.xlu0 %2522 }
0x1fcc   :  { %2451 = vrot.lane.b32.xlu1 %v2449_v50, %s4385_s10  ;;  %v2525_v57 = vmul.f32 %v4067_v17, %v2523_v19 }
0x1fce   :  { %2527 = vrot.lane.b32.xlu0 %v2525_v57, %s4385_s10 }
0x203e   :  { %v2452_v62 = vpop.permute.xlu1 %2451 }
0x203f   :  { %v5086_v63 = vadd.f32 %v2452_v62, %v2444_v59 }
0x2040   :  { %v2528_v2 = vpop.permute.xlu0 %2527 }
0x2041   :  { %4068 = vtanh.f32 %v5086_v63  ;;  %v5089_v3 = vadd.f32 %v2528_v2, %v2520_v32  ;;  %v2594_v38 = vrot.slane %v5086_v63, 6 }
0x2043   :  { %4070 = vtanh.f32 %v5089_v3  ;;  %v2672_v36 = vrot.slane %v5089_v3, 2 }
0x204e   :  { %v4069_v4 = vpop.eup %4068 }
0x204f   :  { %2457 = vrot.lane.b32.xlu1 %v4069_v4, %s4372_s23 }
0x2050   :  { %v4071_v5 = vpop.eup %4070 }
0x2051   :  { %2533 = vrot.lane.b32.xlu0 %v4071_v5, %s4372_s23 }
0x20c1   :  { %v2458_v8 = vpop.permute.xlu1 %2457 }
0x20c2   :  { %v2460_v10 = vmul.f32 %v4065_v7, %v2458_v8 }
0x20c3   :  { %v2534_v12 = vpop.permute.xlu0 %2533 }
0x20c4   :  { %v2537_v11 = vpack.c.bf16 %v2460_v10, %v2460_v10  ;;  %v2536_v13 = vmul.f32 %v4067_v17, %v2534_v12 }
0x20c6   :  { %v2539_v14 = vrot.slane %v2537_v11, 3  ;;  %v2613_v15 = vpack.c.bf16 %v2536_v13, %v2536_v13 }
0x20c8   :  { %2540 = vrot.lane.b32.xlu1 %v2539_v14, %s4385_s10  ;;  %2615 = vrot.lane.b32.xlu0 %v2613_v15, %s4385_s10 }
0x213a   :  { %v2541_v21 = vpop.permute.xlu1 %2540  ;;  %v2616_v22 = vpop.permute.xlu0 %2615 }
0x213b   :  { %3759 = vmatmul.mubr.msk.bf16.vlgmr.msra.gmra.mxu0 %vm404_vm3, %v2541_v21  ;;  %3767 = vmatmul.mubr.msk.bf16.vlgmr.msra.gmra.mxu1 %vm404_vm3, %v2616_v22 }
0x213c   :  { %3771 = vmatpush3.bf16.msra.mxu0 %v4934_v49  ;;  %3779 = vmatpush3.bf16.msra.mxu1 %v4936_v53 }
0x213d   :  { %3772 = vmatprep.subr.bf16.mxu0 %v4382_v0  ;;  %3774 = vmatprep.mubr.msk.bf16.mxu0 %vm4383_vm0, %v4382_v0 }
0x213e   :  { %3780 = vmatprep.subr.bf16.mxu1 %v4382_v0  ;;  %3782 = vmatprep.mubr.msk.bf16.mxu1 %vm4383_vm0, %v4382_v0 }
0x2140   :  { %3773 = vmatpush3.bf16.msra.mxu0 %v4945_v52  ;;  %3781 = vmatpush3.bf16.msra.mxu1 %v4947_v55 }
0x2141   :  { %3786 = vmatprep.subr.bf16.mxu0 %v4382_v0  ;;  %3794 = vmatprep.subr.bf16.mxu1 %v4382_v0 }
0x21fb   :  { %v2579_v24 = vpop.f32.mrf.mxu0  ;;  %v2654_v29 = vpop.f32.mrf.mxu1 }
0x21fc   :  { %v2585_v25 = vadd.f32 %v2579_v24, %v4978_v20  ;;  %v2661_v6 = vrot.slane %v2654_v29, 2 }
0x21fd   :  { %v3760_v9 = vpop.f32.mrf.mxu0  ;;  %v3768_v60 = vpop.f32.mrf.mxu1 }
0x21fe   :  { %4072 = vtanh.f32 %v2585_v25  ;;  %v2663_v1 = vadd.f32 %v2661_v6, %v4976_v18  ;;  %v3360_v39 = vmul.f32 -1.442695, %v2585_v25 }
0x21ff   :  { %v2582_v54 = vpop.f32.mrf.mxu0  ;;  %v2657_v58 = vpop.f32.mrf.mxu1 }
0x2200   :  { %4074 = vtanh.f32 %v2663_v1  ;;  %v3362_v43 = vmul.f32 -1.442695, %v2663_v1 }
0x2201   :  { %v3761_v47 = vpop.f32.mrf.mxu0  ;;  %v3769_v51 = vpop.f32.mrf.mxu1  ;;  %4076 = vpow2.f32 %v3360_v39 }
0x2202   :  { %4078 = vpow2.f32 %v3362_v43 }
0x220b   :  { %v4073_v41 = vpop.eup %4072 }
0x220c   :  { %2598 = vrot.lane.b32.xlu1 %v4073_v41, %s4372_s23 }
0x220d   :  { %v4075_v44 = vpop.eup %4074 }
0x220e   :  { %2676 = vrot.lane.b32.xlu0 %v4075_v44, %s4372_s23  ;;  %v4077_v26 = vpop.eup %4076 }
0x220f   :  { %v4079_v27 = vpop.eup %4078  ;;  %v2589_v28 = vadd.f32 1.0, %v4077_v26 }
0x2210   :  { %v2667_v30 = vadd.f32 1.0, %v4079_v27 }
0x2211   :  { %4080 = vrcp.f32 %v2589_v28 }
0x2212   :  { %4082 = vrcp.f32 %v2667_v30 }
0x221e   :  { %v4081_v33 = vpop.eup %4080 }
0x221f   :  { %v4083_v37 = vpop.eup %4082  ;;  %v2596_v42 = vmul.f32 %v4081_v33, %v2594_v38 }
0x2220   :  { %v2674_v46 = vmul.f32 %v4083_v37, %v2672_v36 }
0x227e   :  { %v2599_v40 = vpop.permute.xlu1 %2598 }
0x227f   :  { %v2601_v35 = vmul.f32 %v4081_v33, %v2599_v40 }
0x2280   :  { %v2677_v31 = vpop.permute.xlu0 %2676 }
0x2281   :  { %2603 = vrot.lane.b32.xlu1 %v2601_v35, %s4385_s10  ;;  %v2679_v34 = vmul.f32 %v4083_v37, %v2677_v31 }
0x2283   :  { %2681 = vrot.lane.b32.xlu0 %v2679_v34, %s4385_s10 }
0x22f3   :  { %v2604_v23 = vpop.permute.xlu1 %2603 }
0x22f4   :  { %v5118_v45 = vadd.f32 %v2604_v23, %v2596_v42 }
0x22f5   :  { %v2682_v48 = vpop.permute.xlu0 %2681 }
0x22f6   :  { %4084 = vtanh.f32 %v5118_v45  ;;  %v5121_v7 = vadd.f32 %v2682_v48, %v2674_v46  ;;  %v2750_v39 = vrot.slane %v5118_v45, 6 }
0x22f8   :  { %4086 = vtanh.f32 %v5121_v7  ;;  %v2829_v28 = vrot.slane %v5121_v7, 2 }
0x2303   :  { %v4085_v16 = vpop.eup %4084 }
0x2304   :  { %2609 = vrot.lane.b32.xlu1 %v4085_v16, %s4372_s23 }
0x2305   :  { %v4087_v50 = vpop.eup %4086 }
0x2306   :  { %2687 = vrot.lane.b32.xlu0 %v4087_v50, %s4372_s23 }
0x2376   :  { %v2610_v17 = vpop.permute.xlu1 %2609 }
0x2377   :  { %v2612_v19 = vmul.f32 %v4081_v33, %v2610_v17 }
0x2378   :  { %v2688_v56 = vpop.permute.xlu0 %2687 }
0x2379   :  { %v2691_v57 = vpack.c.bf16 %v2612_v19, %v2612_v19  ;;  %v2690_v59 = vmul.f32 %v4083_v37, %v2688_v56 }
0x237b   :  { %2693 = vrot.lane.b32.xlu0 %v2691_v57, %s4385_s10  ;;  %v2769_v61 = vpack.c.bf16 %v2690_v59, %v2690_v59 }
0x237d   :  { %v2771_v62 = vrot.slane %v2769_v61, 3 }
0x237f   :  { %2772 = vrot.lane.b32.xlu1 %v2771_v62, %s4385_s10 }
0x23ed   :  { %v2694_v63 = vpop.permute.xlu0 %2693 }
0x23ee   :  { %3775 = vmatmul.mubr.msk.bf16.vlgmr.msra.gmra.mxu0 %vm404_vm3, %v2694_v63 }
0x23ef   :  { %3787 = vmatpush3.bf16.msra.mxu0 %v4934_v49  ;;  %3790 = vmatprep.mubr.msk.bf16.mxu0 %vm4383_vm0, %v4382_v0 }
0x23f0   :  { %3788 = vmatprep.subr.bf16.mxu0 %v4382_v0 }
0x23f1   :  { %v2773_v32 = vpop.permute.xlu1 %2772 }
0x23f2   :  { %3783 = vmatmul.mubr.msk.bf16.vlgmr.msra.gmra.mxu1 %vm404_vm3, %v2773_v32 }
0x23f3   :  { %3789 = vmatpush3.bf16.msra.mxu0 %v4945_v52  ;;  %3795 = vmatpush3.bf16.msra.mxu1 %v4936_v53 }
0x23f4   :  { %3798 = vmatprep.mubr.msk.bf16.mxu1 %vm4383_vm0, %v4382_v0  ;;  %3796 = vmatprep.subr.bf16.mxu1 %v4382_v0 }
0x23f5   :  { %3802 = vmatprep.subr.bf16.mxu0 %v4382_v0 }
0x23f7   :  { %3797 = vmatpush3.bf16.msra.mxu1 %v4947_v55 }
0x23f8   :  { %3810 = vmatprep.subr.bf16.mxu1 %v4382_v0 }
0x24ae   :  { %v2732_v2 = vpop.f32.mrf.mxu0 }
0x24af   :  { %v2739_v3 = vrot.slane %v2732_v2, 6 }
0x24b0   :  { %v3776_v4 = vpop.f32.mrf.mxu0 }
0x24b1   :  { %v2741_v5 = vadd.f32 %v2739_v3, %v4978_v20 }
0x24b2   :  { %v2735_v8 = vpop.f32.mrf.mxu0  ;;  %v2811_v10 = vpop.f32.mrf.mxu1 }
0x24b3   :  { %4088 = vtanh.f32 %v2741_v5  ;;  %v2818_v11 = vrot.slane %v2811_v10, 4  ;;  %v3364_v25 = vmul.f32 -1.442695, %v2741_v5 }
0x24b4   :  { %v3777_v12 = vpop.f32.mrf.mxu0  ;;  %v3784_v13 = vpop.f32.mrf.mxu1 }
0x24b5   :  { %v2820_v14 = vadd.f32 %v2818_v11, %v4976_v18 }
0x24b6   :  { %v2814_v15 = vpop.f32.mrf.mxu1 }
0x24b7   :  { %4090 = vtanh.f32 %v2820_v14  ;;  %v3366_v29 = vmul.f32 -1.442695, %v2820_v14 }
0x24b8   :  { %v3785_v21 = vpop.f32.mrf.mxu1  ;;  %4092 = vpow2.f32 %v3364_v25 }
0x24b9   :  { %4094 = vpow2.f32 %v3366_v29 }
0x24c0   :  { %v4089_v22 = vpop.eup %4088 }
0x24c1   :  { %2754 = vrot.lane.b32.xlu0 %v4089_v22, %s4372_s23 }
0x24c4   :  { %v4091_v24 = vpop.eup %4090 }
0x24c5   :  { %2833 = vrot.lane.b32.xlu1 %v4091_v24, %s4372_s23  ;;  %v4093_v6 = vpop.eup %4092 }
0x24c6   :  { %v2745_v9 = vadd.f32 1.0, %v4093_v6  ;;  %v4095_v60 = vpop.eup %4094 }
0x24c7   :  { %v2824_v1 = vadd.f32 1.0, %v4095_v60 }
0x24c8   :  { %4096 = vrcp.f32 %v2745_v9 }
0x24c9   :  { %4098 = vrcp.f32 %v2824_v1 }
0x24d5   :  { %v4097_v54 = vpop.eup %4096 }
0x24d6   :  { %v4099_v51 = vpop.eup %4098  ;;  %v2752_v43 = vmul.f32 %v4097_v54, %v2750_v39 }
0x24d7   :  { %v2831_v30 = vmul.f32 %v4099_v51, %v2829_v28 }
0x2533   :  { %v2755_v58 = vpop.permute.xlu0 %2754 }
0x2534   :  { %v2757_v47 = vmul.f32 %v4097_v54, %v2755_v58 }
0x2536   :  { %2759 = vrot.lane.b32.xlu0 %v2757_v47, %s4385_s10 }
0x2537   :  { %v2834_v41 = vpop.permute.xlu1 %2833 }
0x2538   :  { %v2836_v44 = vmul.f32 %v4099_v51, %v2834_v41 }
0x253a   :  { %2838 = vrot.lane.b32.xlu1 %v2836_v44, %s4385_s10 }
0x25a8   :  { %v2760_v26 = vpop.permute.xlu0 %2759 }
0x25a9   :  { %v5149_v27 = vadd.f32 %v2760_v26, %v2752_v43 }
0x25ab   :  { %4100 = vtanh.f32 %v5149_v27  ;;  %v2908_v21 = vrot.slane %v5149_v27, 6 }
0x25ac   :  { %v2839_v33 = vpop.permute.xlu1 %2838 }
0x25ad   :  { %v5153_v40 = vadd.f32 %v2839_v33, %v2831_v30 }
0x25af   :  { %4102 = vtanh.f32 %v5153_v40  ;;  %v2987_v29 = vrot.slane %v5153_v40, 2 }
0x25b8   :  { %v4101_v35 = vpop.eup %4100 }
0x25b9   :  { %2765 = vrot.lane.b32.xlu0 %v4101_v35, %s4372_s23 }
0x25bc   :  { %v4103_v37 = vpop.eup %4102 }
0x25bd   :  { %2844 = vrot.lane.b32.xlu1 %v4103_v37, %s4372_s23 }
0x262b   :  { %v2766_v31 = vpop.permute.xlu0 %2765 }
0x262c   :  { %v2768_v34 = vmul.f32 %v4097_v54, %v2766_v31 }
0x262e   :  { %v2848_v38 = vpack.c.bf16 %v2768_v34, %v2768_v34 }
0x262f   :  { %v2845_v36 = vpop.permute.xlu1 %2844 }
0x2630   :  { %v2850_v42 = vrot.slane %v2848_v38, 1  ;;  %v2847_v23 = vmul.f32 %v4099_v51, %v2845_v36 }
0x2632   :  { %2851 = vrot.lane.b32.xlu0 %v2850_v42, %s4385_s10  ;;  %v2927_v45 = vpack.c.bf16 %v2847_v23, %v2847_v23 }
0x2634   :  { %v2929_v46 = vrot.slane %v2927_v45, 2 }
0x2636   :  { %2930 = vrot.lane.b32.xlu1 %v2929_v46, %s4385_s10 }
0x26a4   :  { %v2852_v48 = vpop.permute.xlu0 %2851 }
0x26a5   :  { %3791 = vmatmul.mubr.msk.bf16.vlgmr.msra.gmra.mxu0 %vm404_vm3, %v2852_v48 }
0x26a6   :  { %3803 = vmatpush3.bf16.msra.mxu0 %v4934_v49  ;;  %3806 = vmatprep.mubr.msk.bf16.mxu0 %vm4383_vm0, %v4382_v0 }
0x26a7   :  { %3804 = vmatprep.subr.bf16.mxu0 %v4382_v0 }
0x26a8   :  { %v2931_v7 = vpop.permute.xlu1 %2930 }
0x26a9   :  { %3799 = vmatmul.mubr.msk.bf16.vlgmr.msra.gmra.mxu1 %vm404_vm3, %v2931_v7 }
0x26aa   :  { %3805 = vmatpush3.bf16.msra.mxu0 %v4945_v52  ;;  %3811 = vmatpush3.bf16.msra.mxu1 %v4936_v53 }
0x26ab   :  { %3814 = vmatprep.mubr.msk.bf16.mxu1 %vm4383_vm0, %v4382_v0  ;;  %3812 = vmatprep.subr.bf16.mxu1 %v4382_v0 }
0x26ac   :  { %3818 = vmatprep.subr.bf16.mxu0 %v4382_v0 }
0x26ae   :  { %3813 = vmatpush3.bf16.msra.mxu1 %v4947_v55 }
0x2765   :  { %v2890_v49 = vpop.f32.mrf.mxu0 }
0x2766   :  { %v2897_v16 = vrot.slane %v2890_v49, 4 }
0x2767   :  { %v3792_v50 = vpop.f32.mrf.mxu0 }
0x2768   :  { %v2899_v17 = vadd.f32 %v2897_v16, %v4978_v20 }
0x2769   :  { %v2893_v19 = vpop.f32.mrf.mxu0  ;;  %v2969_v57 = vpop.f32.mrf.mxu1 }
0x276a   :  { %4104 = vtanh.f32 %v2899_v17  ;;  %v2976_v52 = vrot.slane %v2969_v57, 6  ;;  %v3368_v32 = vmul.f32 -1.442695, %v2899_v17 }
0x276b   :  { %v3793_v56 = vpop.f32.mrf.mxu0  ;;  %v3800_v53 = vpop.f32.mrf.mxu1 }
0x276c   :  { %v2978_v59 = vadd.f32 %v2976_v52, %v4976_v18 }
0x276d   :  { %v2972_v61 = vpop.f32.mrf.mxu1 }
0x276e   :  { %4106 = vtanh.f32 %v2978_v59  ;;  %v3370_v2 = vmul.f32 -1.442695, %v2978_v59 }
0x276f   :  { %v3801_v62 = vpop.f32.mrf.mxu1  ;;  %4108 = vpow2.f32 %v3368_v32 }
0x2770   :  { %4110 = vpow2.f32 %v3370_v2 }
0x2777   :  { %v4105_v63 = vpop.eup %4104 }
0x2778   :  { %2912 = vrot.lane.b32.xlu0 %v4105_v63, %s4372_s23 }
0x277b   :  { %v4107_v55 = vpop.eup %4106 }
0x277c   :  { %2991 = vrot.lane.b32.xlu1 %v4107_v55, %s4372_s23  ;;  %v4109_v3 = vpop.eup %4108 }
0x277d   :  { %v2903_v4 = vadd.f32 1.0, %v4109_v3  ;;  %v4111_v5 = vpop.eup %4110  ;;  %v3876_v3 = vld [vmem:[%s5239_s13 + $0x18] sm:$0xff]  }
0x277e   :  { %v2982_v8 = vadd.f32 1.0, %v4111_v5 }
0x277f   :  { %4112 = vrcp.f32 %v2903_v4  ;;  %v3877_v4 = vld [vmem:[%s5239_s13 + $0x10] sm:$0xff]  }
0x2780   :  { %4114 = vrcp.f32 %v2982_v8 }
0x278c   :  { %v4113_v10 = vpop.eup %4112 }
0x278d   :  { %v4115_v13 = vpop.eup %4114  ;;  %v2910_v22 = vmul.f32 %v4113_v10, %v2908_v21 }
0x278e   :  { %v2989_v6 = vmul.f32 %v4115_v13, %v2987_v29 }
0x27ea   :  { %v2913_v11 = vpop.permute.xlu0 %2912 }
0x27eb   :  { %v2915_v12 = vmul.f32 %v4113_v10, %v2913_v11  ;;  %v3879_v11 = vld [vmem:[%s5239_s13] sm:$0xff]  }
0x27ed   :  { %2917 = vrot.lane.b32.xlu0 %v2915_v12, %s4385_s10 }
0x27ee   :  { %v2992_v14 = vpop.permute.xlu1 %2991 }
0x27ef   :  { %v2994_v15 = vmul.f32 %v4115_v13, %v2992_v14 }
0x27f1   :  { %2996 = vrot.lane.b32.xlu1 %v2994_v15, %s4385_s10 }
0x285f   :  { %v2918_v24 = vpop.permute.xlu0 %2917 }
0x2860   :  { %v5180_v25 = vadd.f32 %v2918_v24, %v2910_v22 }
0x2862   :  { %4116 = vtanh.f32 %v5180_v25  ;;  %v3066_v53 = vrot.slane %v5180_v25, 6 }
0x2863   :  { %v2997_v9 = vpop.permute.xlu1 %2996 }
0x2864   :  { %v2999_v60 = vadd.f32 %v2997_v9, %v2989_v6  ;;  %v3375_v6 = vld [vmem:[%s5240_s14] ss:$0 sm:$0xff] }
0x2866   :  { %4118 = vtanh.f32 %v2999_v60  ;;  %v3142_v61 = vrot.slane %v2999_v60, 2 }
0x286f   :  { %v4117_v1 = vpop.eup %4116 }
0x2870   :  { %2923 = vrot.lane.b32.xlu0 %v4117_v1, %s4372_s23 }
0x2873   :  { %v4119_v54 = vpop.eup %4118 }
0x2874   :  { %3002 = vrot.lane.b32.xlu1 %v4119_v54, %s4372_s23 }
0x28e2   :  { %v2924_v58 = vpop.permute.xlu0 %2923 }
0x28e3   :  { %v2926_v47 = vmul.f32 %v4113_v10, %v2924_v58  ;;  %v3878_v10 = vld [vmem:[%s5239_s13 + $0x8] sm:$0xff]  }
0x28e5   :  { %v3006_v51 = vpack.c.bf16 %v2926_v47, %v2926_v47 }
0x28e6   :  { %v3003_v44 = vpop.permute.xlu1 %3002 }
0x28e7   :  { %v3008_v41 = vrot.slane %v3006_v51, 2  ;;  %v3005_v39 = vmul.f32 %v4115_v13, %v3003_v44 }
0x28e9   :  { %3009 = vrot.lane.b32.xlu0 %v3008_v41, %s4385_s10  ;;  %v3085_v43 = vpack.c.bf16 %v3005_v39, %v3005_v39 }
0x28eb   :  { %v3087_v26 = vrot.slane %v3085_v43, 1 }
0x28ed   :  { %3088 = vrot.lane.b32.xlu1 %v3087_v26, %s4385_s10 }
0x295b   :  { %v3010_v27 = vpop.permute.xlu0 %3009 }
0x295c   :  { %3807 = vmatmul.mubr.msk.bf16.vlgmr.msra.gmra.mxu0 %vm404_vm3, %v3010_v27 }
0x295d   :  { %3826 = vmatprep.mubr.msk.bf16.mxu0 %vm4383_vm0, %v4382_v0  ;;  %3819 = vmatpush3.bf16.msra.mxu0 %v3876_v3 }
0x295e   :  { %3820 = vmatprep.subr.bf16.mxu0 %v4382_v0 }
0x295f   :  { %v3089_v28 = vpop.permute.xlu1 %3088 }
0x2960   :  { %3815 = vmatmul.mubr.msk.bf16.vlgmr.msra.gmra.mxu1 %vm404_vm3, %v3089_v28 }
0x2961   :  { %3821 = vmatpush3.bf16.msra.mxu0 %v3877_v4 }
0x2962   :  { %3822 = vmatprep.subr.bf16.mxu0 %v4382_v0 }
0x2965   :  { %3823 = vmatpush3.bf16.msra.mxu0 %v3878_v10 }
0x2966   :  { %3824 = vmatprep.subr.bf16.mxu0 %v4382_v0 }
0x2969   :  { %3825 = vmatpush3.bf16.msra.mxu0 %v3879_v11 }
0x2a1c   :  { %v3048_v30 = vpop.f32.mrf.mxu0 }
0x2a1d   :  { %v3055_v33 = vrot.slane %v3048_v30, 2 }
0x2a1e   :  { %v3808_v40 = vpop.f32.mrf.mxu0 }
0x2a1f   :  { %v3057_v35 = vadd.f32 %v3055_v33, %v4978_v20 }
0x2a20   :  { %v3051_v37 = vpop.f32.mrf.mxu0  ;;  %v3127_v31 = vpop.f32.mrf.mxu1 }
0x2a21   :  { %4120 = vtanh.f32 %v3057_v35  ;;  %v3133_v34 = vadd.f32 %v3127_v31, %v4976_v18  ;;  %v3372_v48 = vmul.f32 -1.442695, %v3057_v35 }
0x2a22   :  { %v3809_v38 = vpop.f32.mrf.mxu0  ;;  %v3816_v42 = vpop.f32.mrf.mxu1 }
0x2a23   :  { %4122 = vtanh.f32 %v3133_v34  ;;  %v3374_v7 = vmul.f32 -1.442695, %v3133_v34 }
0x2a24   :  { %v3130_v36 = vpop.f32.mrf.mxu1  ;;  %4124 = vpow2.f32 %v3372_v48 }
0x2a25   :  { %4126 = vpow2.f32 %v3374_v7 }
0x2a26   :  { %v3817_v23 = vpop.f32.mrf.mxu1 }
0x2a2e   :  { %v4121_v45 = vpop.eup %4120 }
0x2a2f   :  { %3070 = vrot.lane.b32.xlu1 %v4121_v45, %s4372_s23 }
0x2a30   :  { %v4123_v46 = vpop.eup %4122 }
0x2a31   :  { %3146 = vrot.lane.b32.xlu0 %v4123_v46, %s4372_s23  ;;  %v4125_v20 = vpop.eup %4124 }
0x2a32   :  { %v4127_v49 = vpop.eup %4126  ;;  %v3061_v16 = vadd.f32 1.0, %v4125_v20 }
0x2a33   :  { %v3137_v50 = vadd.f32 1.0, %v4127_v49 }
0x2a34   :  { %4128 = vrcp.f32 %v3061_v16 }
0x2a35   :  { %4130 = vrcp.f32 %v3137_v50 }
0x2a41   :  { %v4129_v18 = vpop.eup %4128 }
0x2a42   :  { %v4131_v57 = vpop.eup %4130  ;;  %v3068_v59 = vmul.f32 %v4129_v18, %v3066_v53 }
0x2a43   :  { %v3144_v55 = vmul.f32 %v4131_v57, %v3142_v61 }
0x2aa1   :  { %v3071_v17 = vpop.permute.xlu1 %3070 }
0x2aa2   :  { %v3073_v19 = vmul.f32 %v4129_v18, %v3071_v17 }
0x2aa3   :  { %v3147_v52 = vpop.permute.xlu0 %3146 }
0x2aa4   :  { %3075 = vrot.lane.b32.xlu1 %v3073_v19, %s4385_s10  ;;  %v3149_v56 = vmul.f32 %v4131_v57, %v3147_v52 }
0x2aa6   :  { %3151 = vrot.lane.b32.xlu0 %v3149_v56, %s4385_s10 }
0x2b16   :  { %v3076_v62 = vpop.permute.xlu1 %3075 }
0x2b17   :  { %v3078_v63 = vadd.f32 %v3076_v62, %v3068_v59 }
0x2b18   :  { %v3152_v32 = vpop.permute.xlu0 %3151 }
0x2b19   :  { %4132 = vtanh.f32 %v3078_v63  ;;  %v3154_v2 = vadd.f32 %v3152_v32, %v3144_v55 }
0x2b1b   :  { %4134 = vtanh.f32 %v3154_v2 }
0x2b26   :  { %v4133_v5 = vpop.eup %4132 }
0x2b27   :  { %3081 = vrot.lane.b32.xlu1 %v4133_v5, %s4372_s23 }
0x2b28   :  { %v4135_v8 = vpop.eup %4134 }
0x2b29   :  { %3157 = vrot.lane.b32.xlu0 %v4135_v8, %s4372_s23 }
0x2b99   :  { %v3082_v12 = vpop.permute.xlu1 %3081 }
0x2b9a   :  { %v3084_v13 = vmul.f32 %v4129_v18, %v3082_v12 }
0x2b9b   :  { %v3158_v14 = vpop.permute.xlu0 %3157 }
0x2b9c   :  { %3162 = vrot.lane.b32.xlu0 %v3084_v13, %s4385_s10  ;;  %v3160_v15 = vmul.f32 %v4131_v57, %v3158_v14 }
0x2b9e   :  { %v3166_v21 = vrot.slane %v3160_v15, 2 }
0x2ba0   :  { %3167 = vrot.lane.b32.xlu1 %v3166_v21, %s4372_s23  ;;  %s4336_s23 = scalar_lea.vmem %s3265_s18, 32 }
0x2ba1   :  { %p4337_p8 = scmp.ne.s32.totalorder %s3265_s18, %s4336_s23  ;;  %p4342_p10 = scmp.lt.s32.totalorder %s4336_s23, %s4336_s23 }
0x2ba3   :  { %p4343_p11 = por %p4342_p10, %p4341_p9 }
0x2ba5   :  { %p4344_p12 = pnand %p4343_p11, %p4337_p8 }
0x2c0e   :  { %v3163_v22 = vpop.permute.xlu0 %3162 }
0x2c12   :  { %v3168_v24 = vpop.permute.xlu1 %3167 }
0x2c13   :  { %v3170_v25 = vsel %vm404_vm3, %v3163_v22, %v3168_v24 }
0x2c14   :  { %v3171_v29 = vpack.c.bf16 %v3170_v25, %v3170_v25 }
0x2c16   :  { %v3188_v0 = vrot.slane %v3171_v29, 3 }
0x2c18   :  { %3827 = vmatmul.mubr.msk.bf16.vlgmr.msra.gmra.mxu0 %vm1777_vm12, %v3188_v0 }
0x2cd8   :  { %v3250_v9 = vpop.f32.mrf.mxu0 }
0x2cd9   :  { %v3251_v60 = vadd.f32 %v3375_v6, %v3250_v9 }
0x2cda   :  { %v3828_v1 = vpop.f32.mrf.mxu0 }
0x2cdb   :  { %3257 = vst.msk [vmem:[#allocation21] sm:$0x3] %vm3256_vm13, %v3251_v60 }
0x2cdc   :  { %v3253_v54 = vpop.f32.mrf.mxu0 }
0x2cdd   :  { %4347 = shalt.err (!%p4344_p12)
}
0x2cde   :  { %3267 = dma.vmem_to_hbm [thread:$0]  %s3265_s18, 32, %s5241_s15, [#allocation6]   ;;  %v3829_v58 = vpop.f32.mrf.mxu0 }
0x2cdf   :  { %4368 = dma.done.wait [#allocation6], 32  }
0x2ce0   :  { %4369 = vsyncadd [#allocation6], 4294967264 }
0x2ce1   :  { %3271 = vsyncpa [#allocation5], 1 }
0x2ce2   :  { %3272 = vsyncpa [#allocation8], 1 }
0x2ce3   :  { %3273 = vsyncpa [#allocation11], 1 }
0x2ce4   :  { %3274 = vsyncpa [#allocation14], 1 }
0x2ce5   :  { %3275 = vsyncpa [#allocation17], 1 }
0x2ce6   :  { %3276 = vsyncpa [#allocation20], 1 }
0x2ce7   :  { %3277 = vsyncpa [#allocation6], 1 }

</bundles_post_ra>
